<compile_context>
chip_gen: v6e
topology: v6e:2x2x1
jax: 0.10.0
libtpu: 0.0.40
codegen_flags: <defaults>
</compile_context>

<pallas_src>
import functools

import jax
import jax.numpy as jnp
import numpy as np
from jax.experimental import pallas as pl
from jax.experimental.pallas import tpu as pltpu

_MIB = 1024 * 1024


# ---------------------------------------------------------------------------
# Static index helpers (PyTorch default / legacy 'nearest' semantics):
#   src = floor(dst * (in_size / out_size)) computed in float32, clipped.
# ---------------------------------------------------------------------------
def _nearest_src_indices(in_size: int, out_size: int) -> np.ndarray:
    scale = np.float32(in_size) / np.float32(out_size)
    idx = np.floor(np.arange(out_size, dtype=np.float32) * scale).astype(np.int64)
    return np.minimum(idx, in_size - 1)


def _row_pieces(rows: np.ndarray):
    """Group static nearest row indices into maximal pieces.

    Returns a list of (kind, src_start, count):
      ("slice", s, c) -> c consecutive source rows s..s+c-1, each taken once
      ("bcast", s, c) -> source row s repeated c times
    Pieces are emitted in output-row order and cover exactly len(rows) rows.
    """
    rows = [int(r) for r in rows]
    pieces, i, n = [], 0, len(rows)
    while i < n:
        j = i
        while j + 1 < n and rows[j + 1] == rows[i]:
            j += 1
        if j > i:                                   # repeat run
            pieces.append(("bcast", rows[i], j - i + 1))
            i = j + 1
            continue
        j = i                                       # consecutive run
        while j + 1 < n and rows[j + 1] == rows[j] + 1:
            j += 1
        pieces.append(("slice", rows[i], j - i + 1))
        i = j + 1
    assert sum(p[2] for p in pieces) == n
    return pieces


def _vmem_capacity_bytes() -> int:
    try:
        return int(pltpu.get_tpu_info().vmem_capacity_bytes)
    except Exception:
        return 64 * _MIB          # conservative fallback: v7x per-TensorCore VMEM


def _pick_plane_block(n_planes, per_plane_bytes, *, packing, block_budget,
                      requested=None, max_block=1024):
    """Largest plane block whose (already double-buffer-accounted) tiles fit
    `block_budget`, rounded to the dtype sublane packing, capped so the 1-D
    'parallel' grid keeps >=2 steps when possible (v7x megacore)."""
    if requested is not None:
        blk = max(1, int(requested))
    else:
        blk = int(block_budget) // max(int(per_plane_bytes), 1)
        blk = min(blk, max_block)
        if n_planes >= 2 * packing:
            blk = min(blk, max(packing, (n_planes // 2) // packing * packing))
    blk = max(blk, packing)
    if blk >= n_planes:
        return n_planes
    return max(packing, (blk // packing) * packing)


# ---------------------------------------------------------------------------
# Kernels
# ---------------------------------------------------------------------------
def _fused_select_matmul_kernel(s_ref, x_ref, o_ref, *, precision):
    # s_ref: (H_in*W_in, H_out*W_out) fused one-hot selection, resident in VMEM.
    # x_ref: (n_blk, H_in*W_in)   flattened input planes (lane-dense load).
    # o_ref: (n_blk, H_out*W_out) flattened output planes (lane-dense store).
    o_ref[...] = jnp.dot(
        x_ref[...], s_ref[...],
        precision=precision, preferred_element_type=jnp.float32,
    ).astype(o_ref.dtype)


def _make_general_kernel(h_in, w_in, h_out, w_out, pieces, up, col_identity,
                         precision):
    """General-path kernel: one column GEMM on the MXU + static row pieces.

    up (H_out >= H_in):  column GEMM on (nb*H_in, W_in) first, then expand the
                         rows of the (smaller) result into o_ref.
    down (H_out < H_in): gather the needed rows first (shrinks M), then GEMM
                         and store the whole block.
    """

    def kernel(s_cols_t_ref, x_ref, o_ref):
        nb = x_ref.shape[0]
        x = x_ref[...]                                     # input dtype, no up-cast

        if up:
            if col_identity:
                v = x                                      # (nb, H_in, W_out)
            else:
                u = x.reshape(nb * h_in, w_in)
                v = jnp.dot(u, s_cols_t_ref[...],
                            precision=precision,
                            preferred_element_type=jnp.float32)
                v = v.reshape(nb, h_in, w_out).astype(o_ref.dtype)
            off = 0
            for kind, src, cnt in pieces:                  # static row expansion
                if kind == "slice":
                    o_ref[:, off:off + cnt, :] = v[:, src:src + cnt, :]
                else:
                    o_ref[:, off:off + cnt, :] = jnp.broadcast_to(
                        v[:, src:src + 1, :], (nb, cnt, w_out))
                off += cnt
        else:
            parts = []
            for kind, src, cnt in pieces:                  # static row gather
                if kind == "slice":
                    parts.append(x[:, src:src + cnt, :])
                else:
                    parts.append(jnp.broadcast_to(
                        x[:, src:src + 1, :], (nb, cnt, w_in)))
            t = parts[0] if len(parts) == 1 else jnp.concatenate(parts, axis=1)
            if col_identity:
                o_ref[...] = t
            else:
                u = t.reshape(nb * h_out, w_in)
                v = jnp.dot(u, s_cols_t_ref[...],
                            precision=precision,
                            preferred_element_type=jnp.float32)
                o_ref[...] = v.reshape(nb, h_out, w_out).astype(o_ref.dtype)

    return kernel


# ---------------------------------------------------------------------------
# Wrapper (== InterpolationLayer.forward)
# ---------------------------------------------------------------------------
def interpolation_layer(inp, out_size, *, plane_block=None,
                        fused_s_bytes_limit=2 * _MIB,
                        fused_intensity_limit=128.0):
    """Nearest-neighbour interpolation of NCHW `inp` to spatial size `out_size`.

    Matches torch.nn.functional.interpolate(inp, out_size) (default 'nearest').
    """
    if isinstance(out_size, int):
        out_size = (out_size, out_size)
    if inp.ndim != 4:
        raise ValueError("expected 4-D NCHW input")  # TODO(synk): 3-D/5-D variants
    B, C, H_in, W_in = inp.shape
    H_out, W_out = int(out_size[0]), int(out_size[1])
    N = B * C

    if inp.dtype not in (jnp.bfloat16, jnp.float32, jnp.float16):
        # TODO(synk): integer dtypes fall back to float32 compute/output.
        inp = inp.astype(jnp.float32)
    dtype = inp.dtype
    itemsize = jnp.dtype(dtype).itemsize
    packing = 8 if itemsize >= 4 else 16            # sublane packing per dtype

    if (H_out, W_out) == (H_in, W_in):
        return inp

    # Exactness: for f32/f16 force the full-precision MXU path so the one-hot
    # selection is a bit-exact copy; bf16 is exact with default precision.
    precision = None if dtype == jnp.bfloat16 else jax.lax.Precision.HIGHEST

    rows = _nearest_src_indices(H_in, H_out)
    cols = _nearest_src_indices(W_in, W_out)
    s_rows_np = np.zeros((H_out, H_in), np.float32)
    s_rows_np[np.arange(H_out), rows] = 1.0
    s_cols_np = np.zeros((W_out, W_in), np.float32)
    s_cols_np[np.arange(W_out), cols] = 1.0

    k_in, k_out = H_in * W_in, H_out * W_out

    # --- VMEM budget (honest: double buffering + resident selection matrix) --
    vmem_cap = _vmem_capacity_bytes()
    vmem_limit = int(min(vmem_cap * 3 // 4, 112 * _MIB))   # ~96 MiB on 128-MiB parts, ~48 MiB on v7x
    compiler_params = pltpu.CompilerParams(
        dimension_semantics=("parallel",),                  # megacore: split plane blocks
        vmem_limit_bytes=vmem_limit,
    )

    # --- Dispatch: fused single GEMM only while it stays memory-bound --------
    s_bytes_fused = k_in * k_out * itemsize
    intensity = (2.0 * k_in * k_out) / float((k_in + k_out) * itemsize)  # dtype-FLOP/byte
    use_fused = (s_bytes_fused <= fused_s_bytes_limit
                 and intensity <= fused_intensity_limit)

    if use_fused:
        # ---- Fused path: one lane-dense GEMM per plane block ----------------
        # S[h*W_in + w, o*W_out + j] = (h == rows[o]) & (w == cols[j])
        s_fused = jnp.asarray(np.kron(s_rows_np, s_cols_np).T, dtype)
        resident = 2 * s_bytes_fused                       # constant-index S is still double-buffered
        per_plane = 2 * (k_in + k_out) * itemsize          # 2x in-tile + 2x out-tile
        block_budget = max(4 * _MIB, min(vmem_limit - resident - 8 * _MIB, 32 * _MIB))
        n_blk = _pick_plane_block(N, per_plane, packing=packing,
                                  block_budget=block_budget, requested=plane_block)

        x2 = inp.reshape(N, k_in)                          # free reshape on HBM
        out2 = pl.pallas_call(
            functools.partial(_fused_select_matmul_kernel, precision=precision),
            out_shape=jax.ShapeDtypeStruct((N, k_out), dtype),
            grid_spec=pltpu.PrefetchScalarGridSpec(
                num_scalar_prefetch=0,
                grid=(pl.cdiv(N, n_blk),),
                in_specs=[
                    pl.BlockSpec((k_in, k_out), lambda i: (0, 0)),   # resident
                    pl.BlockSpec((n_blk, k_in), lambda i: (i, 0)),
                ],
                out_specs=pl.BlockSpec((n_blk, k_out), lambda i: (i, 0)),
            ),
            compiler_params=compiler_params,
        )(s_fused, x2)
        return out2.reshape(B, C, H_out, W_out)

    # ---- General path: static row pieces + one column GEMM ------------------
    # 3-D (n_blk, H, W) blocks: the general path only triggers for large planes
    # (wide W), so lanes are dense and no in-kernel lane<->sublane relayout of a
    # flattened layout is needed.
    up = H_out >= H_in
    pieces = _row_pieces(rows)
    col_identity = (W_out == W_in) and bool(np.all(cols == np.arange(W_out)))
    s_cols_t = jnp.asarray(s_cols_np.T, dtype)             # pre-transposed (W_in, W_out)

    h_src = H_in if up else H_out
    per_plane = 2 * (k_in + k_out) * itemsize              # 2x in-tile + 2x out-tile
    if not col_identity:
        per_plane += h_src * W_out * (4 + itemsize)        # f32 GEMM result + cast copy
    if not up:
        per_plane += H_out * W_in * itemsize               # row-gathered intermediate
    per_plane = int(per_plane * 1.25) + 256
    resident = 2 * W_in * W_out * itemsize
    block_budget = max(4 * _MIB, min(vmem_limit - resident - 8 * _MIB, 32 * _MIB))
    n_blk = _pick_plane_block(N, per_plane, packing=packing,
                              block_budget=block_budget, requested=plane_block)

    x3 = inp.reshape(N, H_in, W_in)
    kernel = _make_general_kernel(H_in, W_in, H_out, W_out, pieces, up,
                                  col_identity, precision)
    out3 = pl.pallas_call(
        kernel,
        out_shape=jax.ShapeDtypeStruct((N, H_out, W_out), dtype),
        grid_spec=pltpu.PrefetchScalarGridSpec(
            num_scalar_prefetch=0,
            grid=(pl.cdiv(N, n_blk),),
            in_specs=[
                pl.BlockSpec((W_in, W_out), lambda i: (0, 0)),       # resident
                pl.BlockSpec((n_blk, H_in, W_in), lambda i: (i, 0, 0)),
            ],
            out_specs=pl.BlockSpec((n_blk, H_out, W_out), lambda i: (i, 0, 0)),
        ),
        compiler_params=compiler_params,
    )(s_cols_t, x3)
    return out3.reshape(B, C, H_out, W_out)


# ---------------------------------------------------------------------------
# Pure-numpy reference matching PyTorch default 'nearest' semantics.
# ---------------------------------------------------------------------------
def _reference_nearest(inp, out_size):
    x = np.asarray(inp)
    H_in, W_in = x.shape[-2:]
    rows = _nearest_src_indices(H_in, out_size[0])
    cols = _nearest_src_indices(W_in, out_size[1])
    return x[..., rows[:, None], cols[None, :]]


if __name__ == "__main__":
    key = jax.random.PRNGKey(0)
    B, C, H, W = 2, 4, 16, 16
    out_size = (32, 24)                      # the module's __init__ argument

    x = jax.random.normal(key, (B, C, H, W), dtype=jnp.float32)
    y_ref = _reference_nearest(x, out_size)

    # 1) Fused single-GEMM path (auto-selected: small plane, low intensity).
    y = jax.block_until_ready(interpolation_layer(x, out_size))
    assert y.shape == (B, C, out_size[0], out_size[1]), y.shape
    np.testing.assert_allclose(np.asarray(y), y_ref, rtol=1e-6, atol=1e-6)

    # 2) General path (upsampling order: column GEMM first, then static row
    #    expansion) — forced so it is also compiled / run / verified.
    y2 = jax.block_until_ready(
        interpolation_layer(x, out_size, fused_s_bytes_limit=0))
    assert y2.shape == (B, C, out_size[0], out_size[1]), y2.shape
    np.testing.assert_allclose(np.asarray(y2), y_ref, rtol=1e-6, atol=1e-6)

    # 3) General path, downsampling order (row gather first, then column GEMM).
    down_size = (8, 12)
    y3 = jax.block_until_ready(
        interpolation_layer(x, down_size, fused_s_bytes_limit=0))
    assert y3.shape == (B, C, down_size[0], down_size[1]), y3.shape
    np.testing.assert_allclose(np.asarray(y3), _reference_nearest(x, down_size),
                               rtol=1e-6, atol=1e-6)

    # 4) bf16 (sublane packing 16, native MXU dtype) through the fused path.
    xb = x.astype(jnp.bfloat16)
    yb = jax.block_until_ready(interpolation_layer(xb, out_size))
    np.testing.assert_allclose(
        np.asarray(yb.astype(jnp.float32)),
        _reference_nearest(xb.astype(jnp.float32), out_size),
        rtol=1e-6, atol=1e-6)

    print("KERNEL_OK")
</pallas_src>

<mosaic_0001>
module attributes {stable_mosaic.version = 11 : i64} {
  func.func @_fused_select_matmul_kernel(%arg0: i32, %arg1: memref<256x768xf32, #tpu.memory_space<vmem>>, %arg2: memref<8x256xf32, #tpu.memory_space<vmem>>, %arg3: memref<8x768xf32, #tpu.memory_space<vmem>>) attributes {dimension_semantics = [#tpu.dimension_semantics<parallel>], iteration_bounds = array<i64: 1>, scalar_prefetch = 0 : i64, scratch_operands = 0 : i64, tpu.core_type = #tpu.core_type<tc>, window_params = [{pipeline_mode = #tpu.pipeline_mode<synchronous>, transform_indices = @transform_0, window_bounds = array<i64: 256, 768>}, {transform_indices = @transform_1, window_bounds = array<i64: 8, 256>}, {transform_indices = @transform_2, window_bounds = array<i64: 8, 768>}]} {
    %c0 = arith.constant 0 : index
    %c0_0 = arith.constant 0 : index
    %0 = vector.load %arg2[%c0, %c0_0] : memref<8x256xf32, #tpu.memory_space<vmem>>, vector<8x256xf32>
    %c0_1 = arith.constant 0 : index
    %c0_2 = arith.constant 0 : index
    %1 = vector.load %arg1[%c0_1, %c0_2] : memref<256x768xf32, #tpu.memory_space<vmem>>, vector<256x768xf32>
    %cst = arith.constant dense<0.000000e+00> : vector<8x768xf32>
    %2 = tpu.matmul %0, %1, %cst {dimension_numbers = #tpu.dot_dimension_numbers<[1], [0], [0], [1], [0, 0, 1, 1], [], []>, precision = #tpu.contract_precision<fp32>} : vector<8x256xf32>, vector<256x768xf32>, vector<8x768xf32> -> vector<8x768xf32>
    %c0_3 = arith.constant 0 : index
    %c0_4 = arith.constant 0 : index
    %3 = vector.load %arg3[%c0_3, %c0_4] : memref<8x768xf32, #tpu.memory_space<vmem>>, vector<8x768xf32>
    tpu.vector_store %arg3[%c0_3, %c0_4], %2 {strides = array<i32>} : memref<8x768xf32, #tpu.memory_space<vmem>>, vector<8x768xf32>,
    return
  }
  func.func @transform_0(%arg0: i32) -> (i32, i32) {
    %c0_i32 = arith.constant 0 : i32
    %c0_i32_0 = arith.constant 0 : i32
    %c0_i32_1 = arith.constant 0 : i32
    return %c0_i32, %c0_i32_0 : i32, i32
  }
  func.func @transform_1(%arg0: i32) -> (i32, i32) {
    %c0_i32 = arith.constant 0 : i32
    %c0_i32_0 = arith.constant 0 : i32
    return %arg0, %c0_i32 : i32, i32
  }
  func.func @transform_2(%arg0: i32) -> (i32, i32) {
    %c0_i32 = arith.constant 0 : i32
    %c0_i32_0 = arith.constant 0 : i32
    return %arg0, %c0_i32 : i32, i32
  }
}

</mosaic_0001>

<bundles_post_ra>
// kernel: tpu_custom_call.1
= control target key start
LH: loop header
LB: loop body
LE: loop exit
PB: predicated region body
PF: predicated region fallthrough
CT: control target
= control target key end

     0   :  { %7 = vsyncpa [#allocation3], 0  ;;  %s7784_s0 = inlined_call_operand.hbm [shape: f32[256,768], index: 0, kind: input, shape index: {}]   ;;  %s7785_s1 = inlined_call_operand.hbm [shape: f32[8,256], index: 1, kind: input, shape index: {}]   ;;  %s7786_s2 = inlined_call_operand.hbm [shape: f32[8,768], index: 2, kind: output, shape index: {}]  }
   0x1   :  { %8 = vsyncpa [#allocation6], 0 }
   0x2   :  { %9 = vsyncpa [#allocation4], 0  ;;  %s4177_s9 = smov [#allocation2]  }
   0x3   :  { %s15_s10 = sshll.u32 %s4177_s9, 4  ;;  %s16_s10 = int_to_ptr.vmem [resolvable:$true] %s15_s10 }
   0x4   :  { %s4119_s11 = scalar_lea.vmem %s16_s10, 24576  ;;  %p4124_p1 = scmp.lt.s32.totalorder %s16_s10, %s16_s10 }
   0x5   :  { %p4120_p0 = scmp.ne.s32.totalorder %s16_s10, %s4119_s11  ;;  %p4125_p2 = scmp.lt.s32.totalorder %s4119_s11, %s4119_s11 }
   0x7   :  { %p4126_p3 = por %p4125_p2, %p4124_p1 }
   0x9   :  { %p4127_p4 = pnand %p4126_p3, %p4120_p0 }
   0xb   :  { %4130 = shalt.err (!%p4127_p4)
}
   0xc   :  { %s4178_s12 = smov 768   ;;  %s4179_s13 = smov 48  }
   0xd   :  { %21 = dma.hbm_to_vmem [thread:$0]  %s7784_s0, 24576, %s16_s10, [#allocation3], %s4178_s12, %s4178_s12, %s4179_s13  }
   0xe   :  { %s4180_s16 = smov [#allocation5]  }
   0xf   :  { %s28_s17 = sshll.u32 %s4180_s16, 4  ;;  %s29_s17 = int_to_ptr.vmem [resolvable:$true] %s28_s17 }
  0x10   :  { %s4139_s18 = scalar_lea.vmem %s29_s17, 256  ;;  %p4144_p6 = scmp.lt.s32.totalorder %s29_s17, %s29_s17 }
  0x11   :  { %p4140_p5 = scmp.ne.s32.totalorder %s29_s17, %s4139_s18  ;;  %p4145_p7 = scmp.lt.s32.totalorder %s4139_s18, %s4139_s18 }
  0x13   :  { %p4146_p8 = por %p4145_p7, %p4144_p6 }
  0x15   :  { %p4147_p9 = pnand %p4146_p8, %p4140_p5 }
  0x17   :  { %4150 = shalt.err (!%p4147_p9)
}
  0x18   :  { %31 = dma.hbm_to_vmem [thread:$0]  %s7785_s1, 256, %s29_s17, [#allocation6]  }
  0x19   :  { %4171 = dma.done.wait [#allocation3], 24576  }
  0x1a   :  { %4172 = vsyncadd [#allocation3], 4294942720 }
  0x1b   :  { %4173 = dma.done.wait [#allocation6], 256  }
  0x1c   :  { %4174 = vsyncadd [#allocation6], 4294967040  ;;  %v131_v0 = vld [vmem:[#allocation2 + $0x2d8] sm:$0xff]  ;;  %v130_v1 = vld [vmem:[#allocation2 + $0x2d0] sm:$0xff]  ;;  %s4181_s0 = smov [#allocation7]  }
  0x1d   :  { %v125_v2 = vld [vmem:[#allocation2 + $0x2a8] sm:$0xff]  ;;  %v4203_v3 = vand.u32 4294901760, %v131_v0  ;;  %v4205_v4 = vand.u32 4294901760, %v130_v1  ;;  %v124_v6 = vld [vmem:[#allocation2 + $0x2a0] sm:$0xff]  ;;  %v119_v7 = vld [vmem:[#allocation2 + $0x278] sm:$0xff]  ;;  %s4096_s1 = sshll.u32 %s4181_s0, 4  ;;  %s4097_s1 = int_to_ptr.vmem [resolvable:$true] %s4096_s1 }
  0x1e   :  { %v4207_v5 = vand.u32 4294901760, %v125_v2  ;;  %v118_v8 = vld [vmem:[#allocation2 + $0x270] sm:$0xff]  ;;  %v4209_v9 = vand.u32 4294901760, %v124_v6  ;;  %v4211_v10 = vand.u32 4294901760, %v119_v7  ;;  %v113_v12 = vld [vmem:[#allocation2 + $0x248] sm:$0xff]  ;;  %v112_v13 = vld [vmem:[#allocation2 + $0x240] sm:$0xff]  ;;  %p4156_p11 = scmp.lt.s32.totalorder %s4097_s1, %s4097_s1 }
  0x1f   :  { %v4213_v11 = vand.u32 4294901760, %v118_v8  ;;  %v107_v14 = vld [vmem:[#allocation2 + $0x218] sm:$0xff]  ;;  %233 = vmatprep.subr.mxu0 %v4203_v3  ;;  %v4216_v15 = vand.u32 4294901760, %v113_v12  ;;  %v4218_v16 = vand.u32 4294901760, %v112_v13  ;;  %v4223_v18 = vsub.f32 %v131_v0, %v4203_v3  ;;  %v4225_v19 = vld [vmem:[#allocation2 + $0x210] sm:$0xff]  ;;  %v4227_v20 = vld [vmem:[#allocation2 + $0x1e8] sm:$0xff] }
  0x20   :  { %v4220_v17 = vand.u32 4294901760, %v107_v14  ;;  %v4229_v21 = vld [vmem:[#allocation2 + $0x1e0] sm:$0xff]  ;;  %235 = vmatpush1.msra.mxu0 %v4205_v4  ;;  %v4233_v22 = vand.u32 4294901760, %v4225_v19  ;;  %v4236_v23 = vsub.f32 %v130_v1, %v4205_v4  ;;  %v4239_v24 = vand.u32 4294901760, %v4227_v20  ;;  %v4244_v26 = vld [vmem:[#allocation2 + $0x1b8] sm:$0xff]  ;;  %v4246_v27 = vld [vmem:[#allocation2 + $0x1b0] sm:$0xff] }
  0x21   :  { %v4242_v25 = vsub.f32 %v125_v2, %v4207_v5  ;;  %v4248_v28 = vld [vmem:[#allocation2 + $0x188] sm:$0xff]  ;;  %237 = vmatprep.subr.mxu0 %v4207_v5  ;;  %v7800_v29 = vand.u32 4294901760, %v4223_v18  ;;  %v4253_v30 = vand.u32 4294901760, %v4229_v21  ;;  %v4256_v31 = vsub.f32 %v124_v6, %v4209_v9  ;;  %v4270_v37 = vld [vmem:[#allocation2 + $0x180] sm:$0xff]  ;;  %v4294_v46 = vld [vmem:[#allocation2 + $0x158] sm:$0xff]  ;;  %s4151_s21 = scalar_lea.vmem %s4097_s1, 768 }
  0x22   :  { %8412 = vst [vmem:[#allocation11_spill] sm:$0xff] %v4239_v24  ;;  %v4259_v32 = vand.u32 4294901760, %v4244_v26  ;;  %239 = vmatpush1.msra.mxu0 %v4209_v9  ;;  %v7798_v33 = vand.u32 4294901760, %v4236_v23  ;;  %v4265_v35 = vsub.f32 %v119_v7, %v4211_v10  ;;  %v4268_v36 = vand.u32 4294901760, %v4246_v27  ;;  %v4304_v51 = vld [vmem:[#allocation2 + $0x150] sm:$0xff]  ;;  %v4311_v56 = vld [vmem:[#allocation2 + $0x128] sm:$0xff]  ;;  %p4152_p10 = scmp.ne.s32.totalorder %s4097_s1, %s4151_s21  ;;  %p4157_p12 = scmp.lt.s32.totalorder %s4151_s21, %s4151_s21 }
  0x23   :  { %8413 = vst [vmem:[#allocation12_spill] sm:$0xff] %v4253_v30  ;;  %v7797_v34 = vand.u32 4294901760, %v4242_v25  ;;  %241 = vmatprep.subr.mxu0 %v4211_v10  ;;  %v380_v38 = vsub.f32 %v4223_v18, %v7800_v29  ;;  %v7795_v39 = vand.u32 4294901760, %v4256_v31  ;;  %v4278_v40 = vsub.f32 %v118_v8, %v4213_v11  ;;  %v4323_v61 = vld [vmem:[#allocation2 + $0x120] sm:$0xff]  ;;  %v4335_v2 = vld [vmem:[#allocation2 + $0xf8] sm:$0xff] }
  0x24   :  { %8414 = vst [vmem:[#allocation13_spill] sm:$0xff] %v4259_v32  ;;  %8415 = vst [vmem:[#allocation14_spill] sm:$0xff] %v4268_v36  ;;  %v4281_v41 = vand.u32 4294901760, %v4248_v28  ;;  %243 = vmatpush1.msra.mxu0 %v4213_v11  ;;  %v386_v42 = vsub.f32 %v4236_v23, %v7798_v33  ;;  %v7793_v44 = vand.u32 4294901760, %v4265_v35  ;;  %v4292_v45 = vsub.f32 %v113_v12, %v4216_v15  ;;  %p4158_p13 = por %p4157_p12, %p4156_p11 }
  0x25   :  { %v392_v43 = vsub.f32 %v4242_v25, %v7797_v34  ;;  %245 = vmatprep.subr.mxu0 %v4216_v15  ;;  %v381_v47 = vand.u32 4294901760, %v380_v38  ;;  %v398_v48 = vsub.f32 %v4256_v31, %v7795_v39  ;;  %v7792_v49 = vand.u32 4294901760, %v4278_v40  ;;  %v4426_v39 = vld [vmem:[#allocation2 + $0x68] sm:$0xff]  ;;  %v4436_v34 = vld [vmem:[#allocation2 + $0x60] sm:$0xff] }
  0x26   :  { %8416 = vst [vmem:[#allocation15_spill] sm:$0xff] %v4281_v41  ;;  %v4302_v50 = vand.u32 4294901760, %v4270_v37  ;;  %247 = vmatpush1.msra.mxu0 %v4218_v16  ;;  %v387_v52 = vand.u32 4294901760, %v386_v42  ;;  %v404_v54 = vsub.f32 %v4265_v35, %v7793_v44  ;;  %v7790_v55 = vand.u32 4294901760, %v4292_v45  ;;  %p4159_p0 = pnand %p4158_p13, %p4152_p10 }
  0x27   :  { %v393_v53 = vand.u32 4294901760, %v392_v43  ;;  %249 = vmatprep.subr.mxu0 %v4220_v17  ;;  %382 = vmatprep.subr.mxu1 %v381_v47  ;;  %v399_v57 = vand.u32 4294901760, %v398_v48  ;;  %v410_v58 = vsub.f32 %v4278_v40, %v7792_v49  ;;  %v4318_v59 = vsub.f32 %v112_v13, %v4218_v16  ;;  %v4346_v13 = vld [vmem:[#allocation2 + $0xf0] sm:$0xff] }
  0x28   :  { %8417 = vst [vmem:[#allocation16_spill] sm:$0xff] %v4302_v50  ;;  %v4321_v60 = vand.u32 4294901760, %v4294_v46  ;;  %251 = vmatpush1.msra.mxu0 %v4233_v22  ;;  %388 = vmatpush1.msra.mxu1 %v387_v52  ;;  %v405_v62 = vand.u32 4294901760, %v404_v54  ;;  %v416_v63 = vsub.f32 %v4292_v45, %v7790_v55  ;;  %v4330_v0 = vsub.f32 %v107_v14, %v4220_v17  ;;  %v4413_v49 = vld [vmem:[#allocation2 + $0x90] sm:$0xff] }
  0x29   :  { %v4333_v1 = vand.u32 4294901760, %v4304_v51  ;;  %253 = vmatprep.subr.mxu0 %v4239_v24  ;;  %394 = vmatprep.subr.mxu1 %v393_v53  ;;  %v411_v6 = vand.u32 4294901760, %v410_v58  ;;  %v7788_v7 = vand.u32 4294901760, %v4318_v59  ;;  %v4341_v8 = vsub.f32 %v4225_v19, %v4233_v22 }
  0x2a   :  { %8418 = vst [vmem:[#allocation17_spill] sm:$0xff] %v4321_v60  ;;  %v4344_v12 = vand.u32 4294901760, %v4311_v56  ;;  %255 = vmatpush1.msra.mxu0 %v4253_v30  ;;  %400 = vmatpush1.msra.mxu1 %v399_v57  ;;  %v417_v14 = vand.u32 4294901760, %v416_v63  ;;  %v7787_v38 = vand.u32 4294901760, %v4330_v0  ;;  %v4352_v42 = vsub.f32 %v4227_v20, %v4239_v24  ;;  %v4369_v20 = vld [vmem:[#allocation2 + $0xc8] sm:$0xff] }
  0x2b   :  { %8419 = vst [vmem:[#allocation18_spill] sm:$0xff] %v4333_v1  ;;  %v4355_v43 = vand.u32 4294901760, %v4323_v61  ;;  %257 = vmatprep.subr.mxu0 %v4259_v32  ;;  %406 = vmatprep.subr.mxu1 %v405_v62  ;;  %v422_v19 = vsub.f32 %v4318_v59, %v7788_v7  ;;  %v7789_v47 = vand.u32 4294901760, %v4341_v8  ;;  %v4364_v48 = vsub.f32 %v4229_v21, %v4253_v30 }
  0x2c   :  { %8420 = vst [vmem:[#allocation19_spill] sm:$0xff] %v4344_v12  ;;  %v4367_v52 = vand.u32 4294901760, %v4335_v2  ;;  %259 = vmatpush1.msra.mxu0 %v4268_v36  ;;  %412 = vmatpush1.msra.mxu1 %v411_v6  ;;  %v428_v53 = vsub.f32 %v4330_v0, %v7787_v38  ;;  %v7791_v54 = vand.u32 4294901760, %v4352_v42  ;;  %v4378_v57 = vsub.f32 %v4244_v26, %v4259_v32  ;;  %v4392_v38 = vld [vmem:[#allocation2 + $0xc0] sm:$0xff] }
  0x2d   :  { %8421 = vst [vmem:[#allocation20_spill] sm:$0xff] %v4355_v43  ;;  %v4381_v21 = vand.u32 4294901760, %v4346_v13  ;;  %261 = vmatprep.subr.mxu0 %v4281_v41  ;;  %418 = vmatprep.subr.mxu1 %v417_v14  ;;  %v423_v58 = vand.u32 4294901760, %v422_v19  ;;  %v434_v62 = vsub.f32 %v4341_v8, %v7789_v47  ;;  %v7794_v63 = vand.u32 4294901760, %v4364_v48  ;;  %v4402_v47 = vld [vmem:[#allocation2 + $0x98] sm:$0xff] }
  0x2e   :  { %8422 = vst [vmem:[#allocation21_spill] sm:$0xff] %v4367_v52  ;;  %v4390_v6 = vsub.f32 %v4246_v27, %v4268_v36  ;;  %263 = vmatpush1.msra.mxu0 %v4302_v50  ;;  %v429_v26 = vand.u32 4294901760, %v428_v53  ;;  %v440_v14 = vsub.f32 %v4352_v42, %v7791_v54  ;;  %v7796_v19 = vand.u32 4294901760, %v4378_v57  ;;  %v4516_v36 = vld [vmem:[#allocation2 + $0x5d8] sm:$0xff] }
  0x2f   :  { %8423 = vst [vmem:[#allocation22_spill] sm:$0xff] %v4381_v21  ;;  %v4400_v7 = vand.u32 4294901760, %v4369_v20  ;;  %424 = vmatpush1.msra.mxu1 %v423_v58  ;;  %265 = vmatprep.subr.mxu0 %v4321_v60  ;;  %v435_v27 = vand.u32 4294901760, %v434_v62  ;;  %v446_v55 = vsub.f32 %v4364_v48, %v7794_v63  ;;  %v4411_v54 = vsub.f32 %v4248_v28, %v4281_v41 }
  0x30   :  { %v7799_v53 = vand.u32 4294901760, %v4390_v6  ;;  %430 = vmatprep.subr.mxu1 %v429_v26  ;;  %267 = vmatpush1.msra.mxu0 %v4333_v1  ;;  %v441_v44 = vand.u32 4294901760, %v440_v14  ;;  %v452_v58 = vsub.f32 %v4378_v57, %v7796_v19  ;;  %v4420_v62 = vand.u32 4294901760, %v4392_v38 }
  0x31   :  { %8424 = vst [vmem:[#allocation23_spill] sm:$0xff] %v4400_v7  ;;  %v4424_v63 = vsub.f32 %v4270_v37, %v4302_v50  ;;  %436 = vmatpush1.msra.mxu1 %v435_v27  ;;  %269 = vmatprep.subr.mxu0 %v4344_v12  ;;  %v447_v28 = vand.u32 4294901760, %v446_v55  ;;  %v7803_v14 = vand.u32 4294901760, %v4411_v54  ;;  %v4434_v19 = vand.u32 4294901760, %v4402_v47 }
  0x32   :  { %8425 = vst [vmem:[#allocation24_spill] sm:$0xff] %v4420_v62  ;;  %v458_v26 = vsub.f32 %v4390_v6, %v7799_v53  ;;  %442 = vmatprep.subr.mxu1 %v441_v44  ;;  %271 = vmatpush1.msra.mxu0 %v4355_v43  ;;  %v453_v37 = vand.u32 4294901760, %v452_v58  ;;  %v4442_v55 = vsub.f32 %v4294_v46, %v4321_v60  ;;  %v4445_v33 = vand.u32 4294901760, %v4413_v49  ;;  %v4447_v53 = vld [vmem:[#allocation2 + $0x38] sm:$0xff] }
  0x33   :  { %8426 = vst [vmem:[#allocation25_spill] sm:$0xff] %v4434_v19  ;;  %v7806_v27 = vand.u32 4294901760, %v4424_v63  ;;  %448 = vmatpush1.msra.mxu1 %v447_v28  ;;  %273 = vmatprep.subr.mxu0 %v4367_v52  ;;  %v464_v44 = vsub.f32 %v4411_v54, %v7803_v14  ;;  %v4455_v58 = vsub.f32 %v4304_v51, %v4333_v1  ;;  %v4458_v46 = vand.u32 4294901760, %v4426_v39  ;;  %v4472_v51 = vld [vmem:[#allocation2 + $0x30] sm:$0xff] }
  0x34   :  { %8427 = vst [vmem:[#allocation26_spill] sm:$0xff] %v4445_v33  ;;  %v459_v29 = vand.u32 4294901760, %v458_v26  ;;  %454 = vmatprep.subr.mxu1 %v453_v37  ;;  %275 = vmatpush1.msra.mxu0 %v4381_v21  ;;  %v4467_v60 = vsub.f32 %v4311_v56, %v4344_v12  ;;  %v4470_v14 = vand.u32 4294901760, %v4436_v34  ;;  %v4481_v26 = vand.u32 4294901760, %v4447_v53  ;;  %v4483_v56 = vld [vmem:[#allocation2 + $0x8] sm:$0xff] }
  0x35   :  { %8428 = vst [vmem:[#allocation27_spill] sm:$0xff] %v4458_v46  ;;  %v470_v28 = vsub.f32 %v4424_v63, %v7806_v27  ;;  %277 = vmatprep.subr.mxu0 %v4400_v7  ;;  %v465_v37 = vand.u32 4294901760, %v464_v44  ;;  %v4478_v27 = vsub.f32 %v4323_v61, %v4355_v43  ;;  %v8432_v50 = vand.u32 4294901760, %v4442_v55  ;;  %v4506_v44 = vld [vmem:[#allocation2] sm:$0xff] }
  0x36   :  { %8429 = vst [vmem:[#allocation28_spill] sm:$0xff] %v4470_v14  ;;  %460 = vmatpush1.msra.mxu1 %v459_v29  ;;  %8431 = vst [vmem:[#allocation30_spill] sm:$0xff] %v4481_v26  ;;  %279 = vmatpush1.msra.mxu0 %v4420_v62  ;;  %v4492_v1 = vsub.f32 %v4335_v2, %v4367_v52  ;;  %v8434_v61 = vand.u32 4294901760, %v4455_v58  ;;  %v4514_v41 = vand.u32 4294901760, %v4483_v56  ;;  %v4534_v24 = vand.u32 4294901760, %v4506_v44 }
  0x37   :  { %8430 = vst [vmem:[#allocation29_spill] sm:$0xff] %v4478_v27  ;;  %v471_v12 = vand.u32 4294901760, %v470_v28  ;;  %v476_v29 = vsub.f32 %v4442_v55, %v8432_v50  ;;  %466 = vmatprep.subr.mxu1 %v465_v37  ;;  %281 = vmatprep.subr.mxu0 %v4434_v19  ;;  %v4500_v28 = vand.u32 4294901760, %v4472_v51  ;;  %v4504_v50 = vsub.f32 %v4346_v13, %v4381_v21 }
  0x38   :  { %8433 = vst [vmem:[#allocation31_spill] sm:$0xff] %v4492_v1  ;;  %v482_v43 = vsub.f32 %v4455_v58, %v8434_v61  ;;  %283 = vmatpush1.msra.mxu0 %v4445_v33  ;;  %v8437_v37 = vand.u32 4294901760, %v4467_v60  ;;  %8438 = vst [vmem:[#allocation34_spill] sm:$0xff] %v4514_v41  ;;  %v8439_v13 = vand.u32 4294901760, %v4478_v27  ;;  %v4525_v21 = vsub.f32 %v4369_v20, %v4400_v7 }
  0x39   :  { %8435 = vst [vmem:[#allocation32_spill] sm:$0xff] %v4500_v28  ;;  %8436 = vst [vmem:[#allocation33_spill] sm:$0xff] %v4504_v50  ;;  %472 = vmatpush1.msra.mxu1 %v471_v12  ;;  %v477_v2 = vand.u32 4294901760, %v476_v29  ;;  %285 = vmatprep.subr.mxu0 %v4458_v46  ;;  %v4540_v29 = vld [vmem:[#allocation2 + $0x5a8] sm:$0xff] }
  0x3a   :  { %v488_v52 = vsub.f32 %v4467_v60, %v8437_v37  ;;  %v483_v32 = vand.u32 4294901760, %v482_v43  ;;  %v494_v12 = vsub.f32 %v4478_v27, %v8439_v13  ;;  %8440 = vst [vmem:[#allocation35_spill] sm:$0xff] %v4525_v21  ;;  %v4527_v37 = vld [vmem:[#allocation2 + $0x5d0] sm:$0xff]  ;;  %287 = vmatpush1.msra.mxu0 %v4470_v14  ;;  %v8441_v43 = vand.u32 4294901760, %v4492_v1  ;;  %8442 = vst [vmem:[#allocation36_spill] sm:$0xff] %v4534_v24 }
  0x3b   :  { %478 = vmatprep.subr.mxu1 %v477_v2  ;;  %v4538_v13 = vsub.f32 %v4392_v38, %v4420_v62  ;;  %289 = vmatprep.subr.mxu0 %v4481_v26  ;;  %v4559_v62 = vand.u32 4294901760, %v4527_v37 }
  0x3c   :  { %v489_v61 = vand.u32 4294901760, %v488_v52  ;;  %v500_v30 = vsub.f32 %v4492_v1, %v8441_v43  ;;  %484 = vmatpush1.msra.mxu1 %v483_v32  ;;  %v495_v20 = vand.u32 4294901760, %v494_v12  ;;  %v8444_v52 = vand.u32 4294901760, %v4504_v50  ;;  %v4550_v1 = vld [vmem:[#allocation2 + $0x5a0] sm:$0xff]  ;;  %291 = vmatpush1.msra.mxu0 %v4500_v28 }
  0x3d   :  { %8443 = vst [vmem:[#allocation37_spill] sm:$0xff] %v4538_v13  ;;  %v4548_v43 = vand.u32 4294901760, %v4516_v36  ;;  %v4556_v12 = vsub.f32 %v4402_v47, %v4434_v19  ;;  %8447 = vst [vmem:[#allocation40_spill] sm:$0xff] %v4559_v62  ;;  %293 = vmatprep.subr.mxu0 %v4514_v41  ;;  %v4569_v32 = vsub.f32 %v4413_v49, %v4445_v33  ;;  %v4572_v47 = vand.u32 4294901760, %v4540_v29  ;;  %v4586_v49 = vld [vmem:[#allocation2 + $0x570] sm:$0xff] }
  0x3e   :  { %v506_v2 = vsub.f32 %v4504_v50, %v8444_v52  ;;  %490 = vmatprep.subr.mxu1 %v489_v61  ;;  %v501_v38 = vand.u32 4294901760, %v500_v30  ;;  %v4561_v52 = vld [vmem:[#allocation2 + $0x578] sm:$0xff]  ;;  %v8448_v61 = vand.u32 4294901760, %v4525_v21  ;;  %295 = vmatpush1.msra.mxu0 %v4534_v24  ;;  %v8451_v19 = vand.u32 4294901760, %v4538_v13 }
  0x3f   :  { %8445 = vst [vmem:[#allocation38_spill] sm:$0xff] %v4548_v43  ;;  %8446 = vst [vmem:[#allocation39_spill] sm:$0xff] %v4556_v12  ;;  %496 = vmatpush1.msra.mxu1 %v495_v20  ;;  %v4581_v50 = vsub.f32 %v4426_v39, %v4458_v46  ;;  %297 = vmatprep.subr.mxu0 %v4548_v43  ;;  %v4597_v39 = vld [vmem:[#allocation2 + $0x548] sm:$0xff] }
  0x40   :  { %v507_v7 = vand.u32 4294901760, %v506_v2  ;;  %v512_v30 = vsub.f32 %v4525_v21, %v8448_v61  ;;  %8449 = vst [vmem:[#allocation41_spill] sm:$0xff] %v4569_v32  ;;  %8450 = vst [vmem:[#allocation42_spill] sm:$0xff] %v4572_v47  ;;  %502 = vmatprep.subr.mxu1 %v501_v38  ;;  %v518_v20 = vsub.f32 %v4538_v13, %v8451_v19  ;;  %v4584_v61 = vand.u32 4294901760, %v4550_v1 }
  0x41   :  { %8452 = vst [vmem:[#allocation43_spill] sm:$0xff] %v4581_v50  ;;  %v7849_v38 = vand.u32 4294901760, %v4569_v32  ;;  %v4592_v19 = vsub.f32 %v4436_v34, %v4470_v14  ;;  %v4595_v2 = vand.u32 4294901760, %v4561_v52  ;;  %v8456_v13 = vand.u32 4294901760, %v4556_v12  ;;  %299 = vmatpush2.msra.mxu0 %v4559_v62 }
  0x42   :  { %8453 = vst [vmem:[#allocation44_spill] sm:$0xff] %v4584_v61  ;;  %508 = vmatpush1.msra.mxu1 %v507_v7  ;;  %v513_v33 = vand.u32 4294901760, %v512_v30  ;;  %v519_v46 = vand.u32 4294901760, %v518_v20  ;;  %v4606_v30 = vsub.f32 %v4447_v53, %v4481_v26  ;;  %301 = vmatprep.subr.mxu0 %v4572_v47  ;;  %v4614_v14 = vand.u32 4294901760, %v4586_v49  ;;  %v4620_v7 = vld [vmem:[#allocation2 + $0x540] sm:$0xff] }
  0x43   :  { %8454 = vst [vmem:[#allocation45_spill] sm:$0xff] %v4592_v19  ;;  %8455 = vst [vmem:[#allocation46_spill] sm:$0xff] %v4595_v2  ;;  %v524_v21 = vsub.f32 %v4556_v12, %v8456_v13  ;;  %v530_v34 = vsub.f32 %v4569_v32, %v7849_v38  ;;  %v4618_v13 = vsub.f32 %v4472_v51, %v4500_v28  ;;  %303 = vmatpush2.msra.mxu0 %v4584_v61  ;;  %v4630_v32 = vld [vmem:[#allocation2 + $0x518] sm:$0xff] }
  0x44   :  { %8457 = vst [vmem:[#allocation47_spill] sm:$0xff] %v4606_v30  ;;  %514 = vmatprep.subr.mxu1 %v513_v33  ;;  %8458 = vst [vmem:[#allocation48_spill] sm:$0xff] %v4614_v14  ;;  %v8460_v33 = vand.u32 4294901760, %v4581_v50  ;;  %v4628_v20 = vand.u32 4294901760, %v4597_v39  ;;  %v8462_v51 = vand.u32 4294901760, %v4592_v19  ;;  %305 = vmatprep.subr.mxu0 %v4595_v2 }
  0x45   :  { %8459 = vst [vmem:[#allocation49_spill] sm:$0xff] %v4618_v13  ;;  %520 = vmatpush1.msra.mxu1 %v519_v46  ;;  %v525_v53 = vand.u32 4294901760, %v524_v21  ;;  %v531_v12 = vand.u32 4294901760, %v530_v34  ;;  %v4639_v46 = vsub.f32 %v4483_v56, %v4514_v41  ;;  %307 = vmatpush2.msra.mxu0 %v4614_v14  ;;  %v4652_v21 = vsub.f32 %v4506_v44, %v4534_v24  ;;  %v4675_v24 = vld [vmem:[#allocation2 + $0x4b8] sm:$0xff] }
  0x46   :  { %v536_v26 = vsub.f32 %v4581_v50, %v8460_v33  ;;  %8461 = vst [vmem:[#allocation50_spill] sm:$0xff] %v4628_v20  ;;  %v542_v28 = vsub.f32 %v4592_v19, %v8462_v51  ;;  %v4641_v33 = vld [vmem:[#allocation2 + $0x510] sm:$0xff]  ;;  %v8464_v50 = vand.u32 4294901760, %v4606_v30  ;;  %v4648_v51 = vand.u32 4294901760, %v4620_v7  ;;  %v4654_v19 = vld [vmem:[#allocation2 + $0x4e8] sm:$0xff]  ;;  %309 = vmatprep.subr.mxu0 %v4628_v20 }
  0x47   :  { %8463 = vst [vmem:[#allocation51_spill] sm:$0xff] %v4639_v46  ;;  %526 = vmatprep.subr.mxu1 %v525_v53  ;;  %8466 = vst [vmem:[#allocation53_spill] sm:$0xff] %v4652_v21  ;;  %v8467_v53 = vand.u32 4294901760, %v4618_v13  ;;  %v4662_v41 = vand.u32 4294901760, %v4630_v32 }
  0x48   :  { %v537_v38 = vand.u32 4294901760, %v536_v26  ;;  %v548_v34 = vsub.f32 %v4606_v30, %v8464_v50  ;;  %8465 = vst [vmem:[#allocation52_spill] sm:$0xff] %v4648_v51  ;;  %532 = vmatpush1.msra.mxu1 %v531_v12  ;;  %v543_v56 = vand.u32 4294901760, %v542_v28  ;;  %v4664_v30 = vld [vmem:[#allocation2 + $0x4e0] sm:$0xff]  ;;  %311 = vmatpush2.msra.mxu0 %v4648_v51  ;;  %v7872_v12 = vand.u32 4294901760, %v4652_v21 }
  0x49   :  { %v554_v26 = vsub.f32 %v4618_v13, %v8467_v53  ;;  %8468 = vst [vmem:[#allocation54_spill] sm:$0xff] %v4662_v41  ;;  %v4670_v28 = vsub.f32 %v4516_v36, %v4548_v43  ;;  %v4673_v53 = vand.u32 4294901760, %v4641_v33  ;;  %v8471_v13 = vand.u32 4294901760, %v4639_v46  ;;  %313 = vmatprep.subr.mxu0 %v4662_v41 }
  0x4a   :  { %538 = vmatprep.subr.mxu1 %v537_v38  ;;  %v549_v44 = vand.u32 4294901760, %v548_v34  ;;  %v4683_v34 = vsub.f32 %v4527_v37, %v4559_v62  ;;  %v4686_v36 = vand.u32 4294901760, %v4654_v19  ;;  %v566_v43 = vsub.f32 %v4652_v21, %v7872_v12  ;;  %v4700_v37 = vld [vmem:[#allocation2 + $0x4b0] sm:$0xff] }
  0x4b   :  { %8469 = vst [vmem:[#allocation55_spill] sm:$0xff] %v4670_v28  ;;  %8470 = vst [vmem:[#allocation56_spill] sm:$0xff] %v4673_v53  ;;  %544 = vmatpush1.msra.mxu1 %v543_v56  ;;  %v555_v50 = vand.u32 4294901760, %v554_v26  ;;  %v560_v38 = vsub.f32 %v4639_v46, %v8471_v13  ;;  %315 = vmatpush2.msra.mxu0 %v4673_v53  ;;  %v4695_v13 = vsub.f32 %v4540_v29, %v4572_v47  ;;  %v4711_v29 = vld [vmem:[#allocation2 + $0x488] sm:$0xff] }
  0x4c   :  { %8472 = vst [vmem:[#allocation57_spill] sm:$0xff] %v4683_v34  ;;  %8473 = vst [vmem:[#allocation58_spill] sm:$0xff] %v4686_v36  ;;  %550 = vmatprep.subr.mxu1 %v549_v44  ;;  %v4698_v26 = vand.u32 4294901760, %v4664_v30  ;;  %v7883_v44 = vand.u32 4294901760, %v4683_v34  ;;  %317 = vmatprep.subr.mxu0 %v4686_v36  ;;  %v4706_v12 = vsub.f32 %v4550_v1, %v4584_v61  ;;  %v4709_v56 = vand.u32 4294901760, %v4675_v24 }
  0x4d   :  { %8474 = vst [vmem:[#allocation59_spill] sm:$0xff] %v4695_v13  ;;  %556 = vmatpush1.msra.mxu1 %v555_v50  ;;  %v561_v62 = vand.u32 4294901760, %v560_v38  ;;  %v567_v47 = vand.u32 4294901760, %v566_v43  ;;  %v8478_v21 = vand.u32 4294901760, %v4670_v28  ;;  %v4720_v38 = vsub.f32 %v4561_v52, %v4595_v2  ;;  %v4734_v50 = vld [vmem:[#allocation2 + $0x480] sm:$0xff] }
  0x4e   :  { %8475 = vst [vmem:[#allocation60_spill] sm:$0xff] %v4698_v26  ;;  %8476 = vst [vmem:[#allocation61_spill] sm:$0xff] %v4706_v12  ;;  %319 = vmatpush2.msra.mxu0 %v4698_v26  ;;  %v578_v1 = vsub.f32 %v4683_v34, %v7883_v44  ;;  %v4728_v43 = vand.u32 4294901760, %v4700_v37  ;;  %v4741_v61 = vand.u32 4294901760, %v4711_v29  ;;  %v4743_v34 = vld [vmem:[#allocation2 + $0x458] sm:$0xff]  ;;  %v8484_v27 = vand.u32 4294901760, %v4706_v12 }
  0x4f   :  { %8477 = vst [vmem:[#allocation62_spill] sm:$0xff] %v4709_v56  ;;  %v572_v46 = vsub.f32 %v4670_v28, %v8478_v21  ;;  %8479 = vst [vmem:[#allocation63_spill] sm:$0xff] %v4720_v38  ;;  %562 = vmatprep.subr.mxu1 %v561_v62  ;;  %321 = vmatprep.subr.mxu0 %v4709_v56  ;;  %v4732_v21 = vsub.f32 %v4586_v49, %v4614_v14  ;;  %v8482_v62 = vand.u32 4294901760, %v4695_v13 }
  0x50   :  { %8480 = vst [vmem:[#allocation64_spill] sm:$0xff] %v4728_v43  ;;  %568 = vmatpush1.msra.mxu1 %v567_v47  ;;  %8483 = vst [vmem:[#allocation66_spill] sm:$0xff] %v4741_v61  ;;  %v579_v28 = vand.u32 4294901760, %v578_v1  ;;  %v590_v49 = vsub.f32 %v4706_v12, %v8484_v27  ;;  %323 = vmatpush2.msra.mxu0 %v4728_v43  ;;  %v8486_v14 = vand.u32 4294901760, %v4720_v38  ;;  %v4761_v27 = vand.u32 4294901760, %v4734_v50  ;;  %v4767_v12 = vld [vmem:[#allocation2 + $0x428] sm:$0xff] }
  0x51   :  { %8481 = vst [vmem:[#allocation65_spill] sm:$0xff] %v4732_v21  ;;  %v573_v52 = vand.u32 4294901760, %v572_v46  ;;  %v584_v2 = vsub.f32 %v4695_v13, %v8482_v62  ;;  %v4752_v46 = vsub.f32 %v4597_v39, %v4628_v20  ;;  %v4754_v62 = vld [vmem:[#allocation2 + $0x450] sm:$0xff]  ;;  %325 = vmatprep.subr.mxu0 %v4741_v61  ;;  %v4765_v47 = vsub.f32 %v4620_v7, %v4648_v51 }
  0x52   :  { %v596_v1 = vsub.f32 %v4720_v38, %v8486_v14  ;;  %8487 = vst [vmem:[#allocation68_spill] sm:$0xff] %v4761_v27  ;;  %v591_v39 = vand.u32 4294901760, %v590_v49  ;;  %v4774_v14 = vand.u32 4294901760, %v4743_v34  ;;  %v4776_v38 = vld [vmem:[#allocation2 + $0x420] sm:$0xff]  ;;  %327 = vmatpush2.msra.mxu0 %v4761_v27  ;;  %v4785_v49 = vand.u32 4294901760, %v4754_v62 }
  0x53   :  { %8485 = vst [vmem:[#allocation67_spill] sm:$0xff] %v4752_v46  ;;  %574 = vmatprep.subr.mxu1 %v573_v52  ;;  %v585_v44 = vand.u32 4294901760, %v584_v2  ;;  %8488 = vst [vmem:[#allocation69_spill] sm:$0xff] %v4765_v47  ;;  %v8489_v52 = vand.u32 4294901760, %v4732_v21  ;;  %v7906_v7 = vand.u32 4294901760, %v4765_v47  ;;  %v8493_v51 = vand.u32 4294901760, %v4752_v46 }
  0x54   :  { %580 = vmatpush2.msra.mxu1 %v579_v28  ;;  %8490 = vst [vmem:[#allocation70_spill] sm:$0xff] %v4774_v14  ;;  %v597_v13 = vand.u32 4294901760, %v596_v1  ;;  %v4782_v28 = vsub.f32 %v4630_v32, %v4662_v41  ;;  %8492 = vst [vmem:[#allocation72_spill] sm:$0xff] %v4785_v49  ;;  %329 = vmatprep.subr.mxu0 %v4774_v14  ;;  %v4795_v1 = vsub.f32 %v4641_v33, %v4673_v53  ;;  %v4812_v33 = vld [vmem:[#allocation2 + $0x3f0] sm:$0xff] }
  0x55   :  { %v602_v2 = vsub.f32 %v4732_v21, %v8489_v52  ;;  %586 = vmatprep.subr.mxu1 %v585_v44  ;;  %v4787_v52 = vld [vmem:[#allocation2 + $0x3f8] sm:$0xff]  ;;  %v608_v44 = vsub.f32 %v4752_v46, %v8493_v51  ;;  %v4798_v32 = vand.u32 4294901760, %v4767_v12  ;;  %v614_v41 = vsub.f32 %v4765_v47, %v7906_v7  ;;  %331 = vmatpush2.msra.mxu0 %v4785_v49 }
  0x56   :  { %8491 = vst [vmem:[#allocation71_spill] sm:$0xff] %v4782_v28  ;;  %592 = vmatpush2.msra.mxu1 %v591_v39  ;;  %8494 = vst [vmem:[#allocation73_spill] sm:$0xff] %v4795_v1  ;;  %v4807_v51 = vsub.f32 %v4654_v19, %v4686_v36  ;;  %v4818_v7 = vsub.f32 %v4664_v30, %v4698_v26  ;;  %v4821_v39 = vand.u32 4294901760, %v4787_v52  ;;  %v4823_v19 = vld [vmem:[#allocation2 + $0x3c8] sm:$0xff]  ;;  %v8500_v47 = vand.u32 4294901760, %v4782_v28 }
  0x57   :  { %v603_v20 = vand.u32 4294901760, %v602_v2  ;;  %8495 = vst [vmem:[#allocation74_spill] sm:$0xff] %v4798_v32  ;;  %598 = vmatprep.subr.mxu1 %v597_v13  ;;  %v4810_v2 = vand.u32 4294901760, %v4776_v38  ;;  %v609_v53 = vand.u32 4294901760, %v608_v44  ;;  %v7917_v13 = vand.u32 4294901760, %v4795_v1  ;;  %333 = vmatprep.subr.mxu0 %v4798_v32 }
  0x58   :  { %8496 = vst [vmem:[#allocation75_spill] sm:$0xff] %v4807_v51  ;;  %8498 = vst [vmem:[#allocation77_spill] sm:$0xff] %v4818_v7  ;;  %v615_v36 = vand.u32 4294901760, %v614_v41  ;;  %v620_v46 = vsub.f32 %v4782_v28, %v8500_v47  ;;  %v4832_v44 = vsub.f32 %v4675_v24, %v4709_v56  ;;  %v4840_v41 = vand.u32 4294901760, %v4812_v33 }
  0x59   :  { %8497 = vst [vmem:[#allocation76_spill] sm:$0xff] %v4810_v2  ;;  %604 = vmatpush2.msra.mxu1 %v603_v20  ;;  %8499 = vst [vmem:[#allocation78_spill] sm:$0xff] %v4821_v39  ;;  %335 = vmatpush2.msra.mxu0 %v4810_v2  ;;  %v626_v30 = vsub.f32 %v4795_v1, %v7917_v13  ;;  %v4844_v47 = vsub.f32 %v4700_v37, %v4728_v43  ;;  %v4846_v20 = vld [vmem:[#allocation2 + $0x3c0] sm:$0xff]  ;;  %v4853_v26 = vand.u32 4294901760, %v4823_v19  ;;  %v4855_v1 = vld [vmem:[#allocation2 + $0x398] sm:$0xff] }
  0x5a   :  { %8501 = vst [vmem:[#allocation79_spill] sm:$0xff] %v4832_v44  ;;  %610 = vmatprep.subr.mxu1 %v609_v53  ;;  %337 = vmatprep.subr.mxu0 %v4821_v39  ;;  %8502 = vst [vmem:[#allocation80_spill] sm:$0xff] %v4840_v41  ;;  %v621_v24 = vand.u32 4294901760, %v620_v46  ;;  %v8504_v53 = vand.u32 4294901760, %v4807_v51  ;;  %v8506_v21 = vand.u32 4294901760, %v4818_v7  ;;  %v4864_v46 = vsub.f32 %v4711_v29, %v4741_v61 }
  0x5b   :  { %8503 = vst [vmem:[#allocation81_spill] sm:$0xff] %v4844_v47  ;;  %616 = vmatpush2.msra.mxu1 %v615_v36  ;;  %8505 = vst [vmem:[#allocation82_spill] sm:$0xff] %v4853_v26  ;;  %v627_v28 = vand.u32 4294901760, %v626_v30  ;;  %339 = vmatpush2.msra.mxu0 %v4840_v41  ;;  %v8508_v43 = vand.u32 4294901760, %v4832_v44  ;;  %v4877_v36 = vsub.f32 %v4734_v50, %v4761_v27 }
  0x5c   :  { %v632_v56 = vsub.f32 %v4807_v51, %v8504_v53  ;;  %v638_v37 = vsub.f32 %v4818_v7, %v8506_v21  ;;  %8507 = vst [vmem:[#allocation83_spill] sm:$0xff] %v4864_v46  ;;  %v4866_v53 = vld [vmem:[#allocation2 + $0x390] sm:$0xff]  ;;  %622 = vmatprep.subr.mxu1 %v621_v24  ;;  %341 = vmatprep.subr.mxu0 %v4853_v26  ;;  %v4873_v21 = vand.u32 4294901760, %v4846_v20  ;;  %v4879_v7 = vld [vmem:[#allocation2 + $0x368] sm:$0xff]  ;;  %v8511_v24 = vand.u32 4294901760, %v4844_v47 }
  0x5d   :  { %v644_v30 = vsub.f32 %v4832_v44, %v8508_v43  ;;  %8510 = vst [vmem:[#allocation85_spill] sm:$0xff] %v4877_v36  ;;  %628 = vmatpush2.msra.mxu1 %v627_v28  ;;  %v4886_v43 = vand.u32 4294901760, %v4855_v1  ;;  %v4888_v44 = vld [vmem:[#allocation2 + $0x360] sm:$0xff]  ;;  %v7940_v50 = vand.u32 4294901760, %v4877_v36  ;;  %v4894_v28 = vsub.f32 %v4743_v34, %v4774_v14 }
  0x5e   :  { %v633_v13 = vand.u32 4294901760, %v632_v56  ;;  %8509 = vst [vmem:[#allocation84_spill] sm:$0xff] %v4873_v21  ;;  %v639_v29 = vand.u32 4294901760, %v638_v37  ;;  %v650_v56 = vsub.f32 %v4844_v47, %v8511_v24  ;;  %343 = vmatpush2.msra.mxu0 %v4873_v21  ;;  %v4897_v37 = vand.u32 4294901760, %v4866_v53  ;;  %v4899_v24 = vld [vmem:[#allocation2 + $0x338] sm:$0xff] }
  0x5f   :  { %v645_v51 = vand.u32 4294901760, %v644_v30  ;;  %8512 = vst [vmem:[#allocation86_spill] sm:$0xff] %v4894_v28  ;;  %v8513_v27 = vand.u32 4294901760, %v4864_v46  ;;  %345 = vmatprep.subr.mxu0 %v4886_v43  ;;  %v4907_v30 = vsub.f32 %v4754_v62, %v4785_v49  ;;  %v4910_v34 = vand.u32 4294901760, %v4879_v7  ;;  %v4924_v62 = vld [vmem:[#allocation2 + $0x330] sm:$0xff] }
  0x60   :  { %634 = vmatprep.subr.mxu1 %v633_v13  ;;  %v651_v61 = vand.u32 4294901760, %v650_v56  ;;  %v662_v14 = vsub.f32 %v4877_v36, %v7940_v50  ;;  %347 = vmatpush2.msra.mxu0 %v4897_v37  ;;  %v4922_v56 = vand.u32 4294901760, %v4888_v44  ;;  %v4930_v50 = vsub.f32 %v4776_v38, %v4810_v2 }
  0x61   :  { %640 = vmatpush2.msra.mxu1 %v639_v29  ;;  %v656_v13 = vsub.f32 %v4864_v46, %v8513_v27  ;;  %8514 = vst [vmem:[#allocation87_spill] sm:$0xff] %v4907_v30  ;;  %8515 = vst [vmem:[#allocation88_spill] sm:$0xff] %v4910_v34  ;;  %v4919_v27 = vsub.f32 %v4767_v12, %v4798_v32  ;;  %349 = vmatprep.subr.mxu0 %v4910_v34  ;;  %v4933_v29 = vand.u32 4294901760, %v4899_v24  ;;  %v4935_v12 = vld [vmem:[#allocation2 + $0x308] sm:$0xff] }
  0x62   :  { %646 = vmatprep.subr.mxu1 %v645_v51  ;;  %8517 = vst [vmem:[#allocation90_spill] sm:$0xff] %v4922_v56  ;;  %v7951_v51 = vand.u32 4294901760, %v4907_v30  ;;  %8518 = vst [vmem:[#allocation91_spill] sm:$0xff] %v4930_v50  ;;  %v663_v32 = vand.u32 4294901760, %v662_v14  ;;  %v8520_v36 = vand.u32 4294901760, %v4894_v28  ;;  %351 = vmatpush2.msra.mxu0 %v4922_v56  ;;  %v4952_v14 = vand.u32 4294901760, %v4924_v62 }
  0x63   :  { %8516 = vst [vmem:[#allocation89_spill] sm:$0xff] %v4919_v27  ;;  %652 = vmatpush2.msra.mxu1 %v651_v61  ;;  %v657_v49 = vand.u32 4294901760, %v656_v13  ;;  %8519 = vst [vmem:[#allocation92_spill] sm:$0xff] %v4933_v29  ;;  %v4944_v13 = vsub.f32 %v4787_v52, %v4821_v39  ;;  %353 = vmatprep.subr.mxu0 %v4933_v29  ;;  %v4958_v61 = vld [vmem:[#allocation2 + $0x300] sm:$0xff]  ;;  %v4965_v2 = vand.u32 4294901760, %v4935_v12  ;;  %v8524_v47 = vand.u32 4294901760, %v4930_v50 }
  0x64   :  { %v668_v46 = vsub.f32 %v4894_v28, %v8520_v36  ;;  %v674_v38 = vsub.f32 %v4907_v30, %v7951_v51  ;;  %v4956_v36 = vsub.f32 %v4812_v33, %v4840_v41  ;;  %v39_v30 = vld [vmem:[#allocation5 + $0x8] sm:$0xff]  ;;  %355 = vmatpush2.msra.mxu0 %v4952_v14 }
  0x65   :  { %8521 = vst [vmem:[#allocation93_spill] sm:$0xff] %v4944_v13  ;;  %658 = vmatprep.subr.mxu1 %v657_v49  ;;  %v8523_v49 = vand.u32 4294901760, %v4919_v27  ;;  %v686_v33 = vsub.f32 %v4930_v50, %v8524_v47  ;;  %v8526_v41 = vand.u32 4294901760, %v4944_v13  ;;  %357 = vmatprep.subr.mxu0 %v4965_v2  ;;  %v4985_v47 = vsub.f32 %v4846_v20, %v4873_v21 }
  0x66   :  { %8522 = vst [vmem:[#allocation94_spill] sm:$0xff] %v4956_v36  ;;  %664 = vmatpush2.msra.mxu1 %v663_v32  ;;  %v669_v52 = vand.u32 4294901760, %v668_v46  ;;  %v675_v28 = vand.u32 4294901760, %v674_v38  ;;  %v4974_v46 = vsub.f32 %v4823_v19, %v4853_v26  ;;  %v4981_v38 = vand.u32 4294901760, %v4958_v61 }
  0x67   :  { %v680_v39 = vsub.f32 %v4919_v27, %v8523_v49  ;;  %v38_v49 = vld [vmem:[#allocation5] sm:$0xff]  ;;  %v692_v27 = vsub.f32 %v4944_v13, %v8526_v41  ;;  %8527 = vst [vmem:[#allocation96_spill] sm:$0xff] %v4985_v47  ;;  %v687_v32 = vand.u32 4294901760, %v686_v33  ;;  %v8528_v19 = vand.u32 4294901760, %v4956_v36 }
  0x68   :  { %8525 = vst [vmem:[#allocation95_spill] sm:$0xff] %v4974_v46  ;;  %670 = vmatprep.subr.mxu1 %v669_v52  ;;  %v4991_v26 = vand.u32 4294901760, %v39_v30  ;;  %359 = vmatpush2.msra.mxu0 %v4981_v38  ;;  %v7968_v13 = vand.u32 4294901760, %v4985_v47  ;;  %v4997_v20 = vsub.f32 %v4855_v1, %v4886_v43 }
  0x69   :  { %v681_v51 = vand.u32 4294901760, %v680_v39  ;;  %676 = vmatpush2.msra.mxu1 %v675_v28  ;;  %v698_v52 = vsub.f32 %v4956_v36, %v8528_v19  ;;  %v7969_v39 = vand.u32 4294901760, %v4974_v46  ;;  %v693_v41 = vand.u32 4294901760, %v692_v27  ;;  %772 = vmatprep.subr.mxu0 %v4223_v18 }
  0x6a   :  { %8529 = vst [vmem:[#allocation97_spill] sm:$0xff] %v4991_v26  ;;  %8530 = vst [vmem:[#allocation98_spill] sm:$0xff] %v4997_v20  ;;  %v4999_v28 = vand.u32 4294901760, %v38_v49  ;;  %v5005_v21 = vsub.f32 %v39_v30, %v4991_v26  ;;  %v5010_v27 = vsub.f32 %v4866_v53, %v4897_v37  ;;  %v710_v1 = vsub.f32 %v4985_v47, %v7968_v13 }
  0x6b   :  { %682 = vmatprep.subr.mxu1 %v681_v51  ;;  %v699_v33 = vand.u32 4294901760, %v698_v52  ;;  %v704_v19 = vsub.f32 %v4974_v46, %v7969_v39  ;;  %v7972_v51 = vand.u32 4294901760, %v4997_v20  ;;  %v5021_v30 = vsub.f32 %v4879_v7, %v4910_v34  ;;  %762 = vmatprep.mubr.f32.mxu1 %v4991_v26 }
  0x6c   :  { %8531 = vst [vmem:[#allocation99_spill] sm:$0xff] %v4999_v28  ;;  %688 = vmatpush2.msra.mxu1 %v687_v32  ;;  %8532 = vst [vmem:[#allocation100_spill] sm:$0xff] %v5005_v21  ;;  %v5017_v32 = vsub.f32 %v38_v49, %v4999_v28  ;;  %v5025_v53 = vand.u32 4294901760, %v5005_v21  ;;  %v5030_v13 = vsub.f32 %v4888_v44, %v4922_v56  ;;  %v711_v39 = vand.u32 4294901760, %v710_v1 }
  0x6d   :  { %8533 = vst [vmem:[#allocation101_spill] sm:$0xff] %v5010_v27  ;;  %694 = vmatprep.subr.mxu1 %v693_v41  ;;  %8535 = vst [vmem:[#allocation103_spill] sm:$0xff] %v5021_v30  ;;  %v705_v52 = vand.u32 4294901760, %v704_v19  ;;  %v7977_v41 = vand.u32 4294901760, %v5010_v27  ;;  %v716_v49 = vsub.f32 %v4997_v20, %v7972_v51  ;;  %v5047_v1 = vsub.f32 %v4899_v24, %v4933_v29 }
  0x6e   :  { %8534 = vst [vmem:[#allocation102_spill] sm:$0xff] %v5017_v32  ;;  %700 = vmatpush2.msra.mxu1 %v699_v33  ;;  %8536 = vst [vmem:[#allocation104_spill] sm:$0xff] %v5025_v53  ;;  %v5036_v7 = vand.u32 4294901760, %v5017_v32  ;;  %v7984_v33 = vand.u32 4294901760, %v5021_v30  ;;  %v363_v19 = vsub.f32 %v5005_v21, %v5025_v53  ;;  %v5056_v53 = vsub.f32 %v4924_v62, %v4952_v14 }
  0x6f   :  { %706 = vmatprep.subr.mxu1 %v705_v52  ;;  %v722_v26 = vsub.f32 %v5010_v27, %v7977_v41  ;;  %8538 = vst [vmem:[#allocation106_spill] sm:$0xff] %v5047_v1  ;;  %v717_v51 = vand.u32 4294901760, %v716_v49  ;;  %v8541_v34 = vand.u32 4294901760, %v5030_v13  ;;  %v5077_v62 = vsub.f32 %v4958_v61, %v4981_v38 }
  0x70   :  { %8537 = vst [vmem:[#allocation105_spill] sm:$0xff] %v5036_v7  ;;  %712 = vmatpush2.msra.mxu1 %v711_v39  ;;  %v369_v56 = vsub.f32 %v5017_v32, %v5036_v7  ;;  %v728_v52 = vsub.f32 %v5021_v30, %v7984_v33  ;;  %8539 = vst [vmem:[#allocation107_spill] sm:$0xff] %v5056_v53  ;;  %v5058_v41 = vand.u32 4294901760, %v363_v19  ;;  %v7988_v39 = vand.u32 4294901760, %v5047_v1 }
  0x71   :  { %v723_v44 = vand.u32 4294901760, %v722_v26  ;;  %v734_v24 = vsub.f32 %v5030_v13, %v8541_v34  ;;  %718 = vmatprep.subr.mxu1 %v717_v51  ;;  %v7987_v29 = vand.u32 4294901760, %v5056_v53  ;;  %v5069_v33 = vsub.f32 %v4935_v12, %v4965_v2  ;;  %8543 = vst [vmem:[#allocation110_spill] sm:$0xff] %v5077_v62 }
  0x72   :  { %8540 = vst [vmem:[#allocation108_spill] sm:$0xff] %v5058_v41  ;;  %v5064_v49 = vand.u32 4294901760, %v369_v56  ;;  %v729_v7 = vand.u32 4294901760, %v728_v52  ;;  %365 = vmatprep.mubr.f32.mxu0 %v5058_v41  ;;  %v740_v34 = vsub.f32 %v5047_v1, %v7988_v39  ;;  %v7985_v19 = vand.u32 4294901760, %v5077_v62  ;;  %v8556_v39 = vld [vmem:[#allocation17_spill] sm:$0xff]  ;;  %v8559_v41 = vld [vmem:[#allocation43_spill] sm:$0xff] }
  0x73   :  { %724 = vmatpush2.msra.mxu1 %v723_v44  ;;  %v735_v26 = vand.u32 4294901760, %v734_v24  ;;  %v746_v56 = vsub.f32 %v5056_v53, %v7987_v29  ;;  %v7986_v12 = vand.u32 4294901760, %v5069_v33  ;;  %v8555_v29 = vld [vmem:[#allocation39_spill] sm:$0xff] }
  0x74   :  { %8542 = vst [vmem:[#allocation109_spill] sm:$0xff] %v5064_v49  ;;  %371 = vmatmul.mubr.f32.vlgmr.msra.gmra.mxu0 %v5064_v49  ;;  %730 = vmatprep.subr.mxu1 %v729_v7  ;;  %v741_v51 = vand.u32 4294901760, %v740_v34  ;;  %v758_v7 = vsub.f32 %v5077_v62, %v7985_v19  ;;  %v8545_v34 = vld [vmem:[#allocation29_spill] sm:$0xff]  ;;  %v8558_v49 = vld [vmem:[#allocation18_spill] sm:$0xff] }
  0x75   :  { %775 = vmatpush1.msra.mxu0 %v4236_v23  ;;  %736 = vmatpush2.msra.mxu1 %v735_v26  ;;  %v747_v44 = vand.u32 4294901760, %v746_v56  ;;  %v752_v61 = vsub.f32 %v5069_v33, %v7986_v12  ;;  %v8544_v26 = vld [vmem:[#allocation11_spill] sm:$0xff]  ;;  %v8546_v56 = vld [vmem:[#allocation12_spill] sm:$0xff]  ;;  %v8553_v19 = vld [vmem:[#allocation37_spill] sm:$0xff] }
  0x76   :  { %778 = vmatprep.subr.mxu0 %v4242_v25  ;;  %964 = vmatprep.mubr.f32.mxu0 %v5005_v21  ;;  %v759_v24 = vand.u32 4294901760, %v758_v7  ;;  %v8550_v7 = vld [vmem:[#allocation14_spill] sm:$0xff]  ;;  %v8554_v12 = vld [vmem:[#allocation16_spill] sm:$0xff]  ;;  %v8557_v21 = vld [vmem:[#allocation41_spill] sm:$0xff] }
  0x77   :  { %781 = vmatpush1.msra.mxu0 %v4256_v31  ;;  %742 = vmatprep.subr.mxu1 %v741_v51  ;;  %v753_v52 = vand.u32 4294901760, %v752_v61  ;;  %v8547_v51 = vld [vmem:[#allocation31_spill] sm:$0xff]  ;;  %v8549_v61 = vld [vmem:[#allocation33_spill] sm:$0xff] }
  0x78   :  { %784 = vmatprep.subr.mxu0 %v4265_v35  ;;  %748 = vmatpush2.msra.mxu1 %v747_v44  ;;  %v8548_v44 = vld [vmem:[#allocation13_spill] sm:$0xff] }
  0x79   :  { %787 = vmatpush1.msra.mxu0 %v4278_v40  ;;  %754 = vmatprep.subr.mxu1 %v753_v52  ;;  %v8551_v52 = vld [vmem:[#allocation35_spill] sm:$0xff] }
  0x7a   :  { %790 = vmatprep.subr.mxu0 %v4292_v45  ;;  %760 = vmatpush2.msra.mxu1 %v759_v24  ;;  %v8552_v24 = vld [vmem:[#allocation15_spill] sm:$0xff] }
  0x7b   :  { %793 = vmatpush1.msra.mxu0 %v4318_v59  ;;  %764 = vmatmul.mubr.f32.vlgmr.msra.gmra.mxu1 %v4999_v28  ;;  %v8560_v28 = vld [vmem:[#allocation19_spill] sm:$0xff] }
  0x7c   :  { %796 = vmatprep.subr.mxu0 %v4330_v0  ;;  %974 = vmatprep.subr.mxu1 %v4203_v3 }
  0x7d   :  { %799 = vmatpush1.msra.mxu0 %v4341_v8  ;;  %976 = vmatpush1.msra.mxu1 %v4205_v4 }
  0x7e   :  { %802 = vmatprep.subr.mxu0 %v4352_v42  ;;  %978 = vmatprep.subr.mxu1 %v4207_v5 }
  0x7f   :  { %805 = vmatpush1.msra.mxu0 %v4364_v48  ;;  %980 = vmatpush1.msra.mxu1 %v4209_v9 }
  0x80   :  { %808 = vmatprep.subr.mxu0 %v4378_v57  ;;  %982 = vmatprep.subr.mxu1 %v4211_v10 }
  0x81   :  { %811 = vmatpush1.msra.mxu0 %v4390_v6  ;;  %984 = vmatpush1.msra.mxu1 %v4213_v11 }
  0x82   :  { %814 = vmatprep.subr.mxu0 %v4411_v54  ;;  %986 = vmatprep.subr.mxu1 %v4216_v15 }
  0x83   :  { %817 = vmatpush1.msra.mxu0 %v4424_v63  ;;  %988 = vmatpush1.msra.mxu1 %v4218_v16 }
  0x84   :  { %820 = vmatprep.subr.mxu0 %v4442_v55  ;;  %990 = vmatprep.subr.mxu1 %v4220_v17 }
  0x85   :  { %823 = vmatpush1.msra.mxu0 %v4455_v58  ;;  %992 = vmatpush1.msra.mxu1 %v4233_v22 }
  0x86   :  { %826 = vmatprep.subr.mxu0 %v4467_v60  ;;  %994 = vmatprep.subr.mxu1 %v8544_v26 }
  0x87   :  { %829 = vmatpush1.msra.mxu0 %v8545_v34  ;;  %996 = vmatpush1.msra.mxu1 %v8546_v56 }
  0x88   :  { %832 = vmatprep.subr.mxu0 %v8547_v51  ;;  %998 = vmatprep.subr.mxu1 %v8548_v44 }
  0x89   :  { %835 = vmatpush1.msra.mxu0 %v8549_v61  ;;  %1000 = vmatpush1.msra.mxu1 %v8550_v7  ;;  %v8561_v7 = vld [vmem:[#allocation45_spill] sm:$0xff] }
  0x8a   :  { %838 = vmatprep.subr.mxu0 %v8551_v52  ;;  %1002 = vmatprep.subr.mxu1 %v8552_v24  ;;  %v8562_v52 = vld [vmem:[#allocation20_spill] sm:$0xff]  ;;  %v8563_v24 = vld [vmem:[#allocation47_spill] sm:$0xff] }
  0x8b   :  { %841 = vmatpush1.msra.mxu0 %v8553_v19  ;;  %1004 = vmatpush1.msra.mxu1 %v8554_v12  ;;  %v8564_v19 = vld [vmem:[#allocation21_spill] sm:$0xff] }
  0x8c   :  { %844 = vmatprep.subr.mxu0 %v8555_v29  ;;  %1006 = vmatprep.subr.mxu1 %v8556_v39  ;;  %v8565_v12 = vld [vmem:[#allocation49_spill] sm:$0xff]  ;;  %v8566_v29 = vld [vmem:[#allocation22_spill] sm:$0xff]  ;;  %v8567_v39 = vld [vmem:[#allocation51_spill] sm:$0xff] }
  0x8d   :  { %847 = vmatpush1.msra.mxu0 %v8557_v21  ;;  %1008 = vmatpush1.msra.mxu1 %v8558_v49  ;;  %v8568_v21 = vld [vmem:[#allocation23_spill] sm:$0xff]  ;;  %v8569_v49 = vld [vmem:[#allocation53_spill] sm:$0xff] }
  0x8e   :  { %850 = vmatprep.subr.mxu0 %v8559_v41  ;;  %1010 = vmatprep.subr.mxu1 %v8560_v28  ;;  %v8570_v41 = vld [vmem:[#allocation24_spill] sm:$0xff]  ;;  %v8571_v28 = vld [vmem:[#allocation55_spill] sm:$0xff] }
  0x8f   :  { %853 = vmatpush1.msra.mxu0 %v8561_v7  ;;  %1012 = vmatpush1.msra.mxu1 %v8562_v52  ;;  %v8572_v7 = vld [vmem:[#allocation25_spill] sm:$0xff] }
  0x90   :  { %856 = vmatprep.subr.mxu0 %v8563_v24  ;;  %1014 = vmatprep.subr.mxu1 %v8564_v19  ;;  %v8573_v52 = vld [vmem:[#allocation57_spill] sm:$0xff]  ;;  %v8574_v24 = vld [vmem:[#allocation26_spill] sm:$0xff]  ;;  %v8575_v19 = vld [vmem:[#allocation59_spill] sm:$0xff] }
  0x91   :  { %859 = vmatpush1.msra.mxu0 %v8565_v12  ;;  %1016 = vmatpush1.msra.mxu1 %v8566_v29  ;;  %v8576_v12 = vld [vmem:[#allocation27_spill] sm:$0xff]  ;;  %v8577_v29 = vld [vmem:[#allocation61_spill] sm:$0xff] }
  0x92   :  { %862 = vmatprep.subr.mxu0 %v8567_v39  ;;  %1018 = vmatprep.subr.mxu1 %v8568_v21  ;;  %v8578_v39 = vld [vmem:[#allocation28_spill] sm:$0xff]  ;;  %v8579_v21 = vld [vmem:[#allocation63_spill] sm:$0xff] }
  0x93   :  { %865 = vmatpush1.msra.mxu0 %v8569_v49  ;;  %1020 = vmatpush1.msra.mxu1 %v8570_v41  ;;  %v8580_v49 = vld [vmem:[#allocation30_spill] sm:$0xff]  ;;  %v8581_v41 = vld [vmem:[#allocation65_spill] sm:$0xff] }
  0x94   :  { %868 = vmatprep.subr.mxu0 %v8571_v28  ;;  %1022 = vmatprep.subr.mxu1 %v8572_v7  ;;  %v8582_v28 = vld [vmem:[#allocation32_spill] sm:$0xff]  ;;  %v8583_v7 = vld [vmem:[#allocation67_spill] sm:$0xff] }
  0x95   :  { %871 = vmatpush2.msra.mxu0 %v8573_v52  ;;  %1024 = vmatpush1.msra.mxu1 %v8574_v24  ;;  %v8584_v52 = vld [vmem:[#allocation34_spill] sm:$0xff]  ;;  %v8585_v24 = vld [vmem:[#allocation69_spill] sm:$0xff] }
  0x96   :  { %874 = vmatprep.subr.mxu0 %v8575_v19  ;;  %1026 = vmatprep.subr.mxu1 %v8576_v12  ;;  %v8586_v19 = vld [vmem:[#allocation36_spill] sm:$0xff]  ;;  %v8587_v12 = vld [vmem:[#allocation71_spill] sm:$0xff] }
  0x97   :  { %877 = vmatpush2.msra.mxu0 %v8577_v29  ;;  %1028 = vmatpush1.msra.mxu1 %v8578_v39  ;;  %v8588_v29 = vld [vmem:[#allocation38_spill] sm:$0xff]  ;;  %v8589_v39 = vld [vmem:[#allocation73_spill] sm:$0xff] }
  0x98   :  { %880 = vmatprep.subr.mxu0 %v8579_v21  ;;  %1030 = vmatprep.subr.mxu1 %v8580_v49  ;;  %v8590_v21 = vld [vmem:[#allocation40_spill] sm:$0xff]  ;;  %v8591_v49 = vld [vmem:[#allocation75_spill] sm:$0xff] }
  0x99   :  { %883 = vmatpush2.msra.mxu0 %v8581_v41  ;;  %1032 = vmatpush1.msra.mxu1 %v8582_v28  ;;  %v8592_v41 = vld [vmem:[#allocation42_spill] sm:$0xff]  ;;  %v8593_v28 = vld [vmem:[#allocation77_spill] sm:$0xff] }
  0x9a   :  { %886 = vmatprep.subr.mxu0 %v8583_v7  ;;  %1034 = vmatprep.subr.mxu1 %v8584_v52  ;;  %v8594_v7 = vld [vmem:[#allocation44_spill] sm:$0xff]  ;;  %v8595_v52 = vld [vmem:[#allocation79_spill] sm:$0xff] }
  0x9b   :  { %889 = vmatpush2.msra.mxu0 %v8585_v24  ;;  %1036 = vmatpush1.msra.mxu1 %v8586_v19  ;;  %v8596_v24 = vld [vmem:[#allocation46_spill] sm:$0xff]  ;;  %v8597_v19 = vld [vmem:[#allocation81_spill] sm:$0xff] }
  0x9c   :  { %892 = vmatprep.subr.mxu0 %v8587_v12  ;;  %1038 = vmatprep.subr.mxu1 %v8588_v29  ;;  %v8598_v12 = vld [vmem:[#allocation48_spill] sm:$0xff]  ;;  %v8599_v29 = vld [vmem:[#allocation83_spill] sm:$0xff] }
  0x9d   :  { %895 = vmatpush2.msra.mxu0 %v8589_v39  ;;  %1040 = vmatpush2.msra.mxu1 %v8590_v21  ;;  %v8600_v39 = vld [vmem:[#allocation50_spill] sm:$0xff]  ;;  %v8601_v21 = vld [vmem:[#allocation85_spill] sm:$0xff] }
  0x9e   :  { %898 = vmatprep.subr.mxu0 %v8591_v49  ;;  %1042 = vmatprep.subr.mxu1 %v8592_v41  ;;  %v8602_v49 = vld [vmem:[#allocation52_spill] sm:$0xff]  ;;  %v8603_v41 = vld [vmem:[#allocation86_spill] sm:$0xff] }
  0x9f   :  { %901 = vmatpush2.msra.mxu0 %v8593_v28  ;;  %1044 = vmatpush2.msra.mxu1 %v8594_v7  ;;  %v8604_v28 = vld [vmem:[#allocation54_spill] sm:$0xff]  ;;  %v8605_v7 = vld [vmem:[#allocation87_spill] sm:$0xff] }
  0xa0   :  { %904 = vmatprep.subr.mxu0 %v8595_v52  ;;  %1046 = vmatprep.subr.mxu1 %v8596_v24  ;;  %v8606_v52 = vld [vmem:[#allocation56_spill] sm:$0xff]  ;;  %v8607_v24 = vld [vmem:[#allocation89_spill] sm:$0xff] }
  0xa1   :  { %907 = vmatpush2.msra.mxu0 %v8597_v19  ;;  %1048 = vmatpush2.msra.mxu1 %v8598_v12  ;;  %v8608_v19 = vld [vmem:[#allocation58_spill] sm:$0xff] }
  0xa2   :  { %910 = vmatprep.subr.mxu0 %v8599_v29  ;;  %1050 = vmatprep.subr.mxu1 %v8600_v39  ;;  %v8609_v29 = vld [vmem:[#allocation60_spill] sm:$0xff]  ;;  %v8610_v39 = vld [vmem:[#allocation93_spill] sm:$0xff] }
  0xa3   :  { %913 = vmatpush2.msra.mxu0 %v8601_v21  ;;  %1052 = vmatpush2.msra.mxu1 %v8602_v49  ;;  %v8611_v21 = vld [vmem:[#allocation62_spill] sm:$0xff] }
  0xa4   :  { %916 = vmatprep.subr.mxu0 %v8603_v41  ;;  %1054 = vmatprep.subr.mxu1 %v8604_v28  ;;  %v8612_v41 = vld [vmem:[#allocation64_spill] sm:$0xff] }
  0xa5   :  { %919 = vmatpush2.msra.mxu0 %v8605_v7  ;;  %1056 = vmatpush2.msra.mxu1 %v8606_v52  ;;  %v8613_v7 = vld [vmem:[#allocation66_spill] sm:$0xff] }
  0xa6   :  { %922 = vmatprep.subr.mxu0 %v8607_v24  ;;  %1058 = vmatprep.subr.mxu1 %v8608_v19  ;;  %v8614_v24 = vld [vmem:[#allocation68_spill] sm:$0xff] }
  0xa7   :  { %925 = vmatpush2.msra.mxu0 %v4930_v50  ;;  %1060 = vmatpush2.msra.mxu1 %v8609_v29  ;;  %v8615_v50 = vld [vmem:[#allocation70_spill] sm:$0xff] }
  0xa8   :  { %928 = vmatprep.subr.mxu0 %v8610_v39  ;;  %1062 = vmatprep.subr.mxu1 %v8611_v21  ;;  %v8616_v39 = vld [vmem:[#allocation72_spill] sm:$0xff] }
  0xa9   :  { %931 = vmatpush2.msra.mxu0 %v4956_v36  ;;  %1064 = vmatpush2.msra.mxu1 %v8612_v41  ;;  %v8617_v36 = vld [vmem:[#allocation74_spill] sm:$0xff] }
  0xaa   :  { %934 = vmatprep.subr.mxu0 %v4974_v46  ;;  %1066 = vmatprep.subr.mxu1 %v8613_v7  ;;  %v8618_v46 = vld [vmem:[#allocation76_spill] sm:$0xff] }
  0xab   :  { %937 = vmatpush2.msra.mxu0 %v4985_v47  ;;  %1068 = vmatpush2.msra.mxu1 %v8614_v24  ;;  %v8619_v47 = vld [vmem:[#allocation78_spill] sm:$0xff] }
  0xac   :  { %940 = vmatprep.subr.mxu0 %v4997_v20  ;;  %1070 = vmatprep.subr.mxu1 %v8615_v50  ;;  %v8620_v20 = vld [vmem:[#allocation80_spill] sm:$0xff] }
  0xad   :  { %943 = vmatpush2.msra.mxu0 %v5010_v27  ;;  %1072 = vmatpush2.msra.mxu1 %v8616_v39  ;;  %v8621_v27 = vld [vmem:[#allocation82_spill] sm:$0xff] }
  0xae   :  { %946 = vmatprep.subr.mxu0 %v5021_v30  ;;  %1074 = vmatprep.subr.mxu1 %v8617_v36  ;;  %v8622_v30 = vld [vmem:[#allocation84_spill] sm:$0xff] }
  0xaf   :  { %949 = vmatpush2.msra.mxu0 %v5030_v13  ;;  %1076 = vmatpush2.msra.mxu1 %v8618_v46 }
  0xb0   :  { %952 = vmatprep.subr.mxu0 %v5047_v1  ;;  %1078 = vmatprep.subr.mxu1 %v8619_v47  ;;  %v8623_v1 = vand.u32 4294901760, %v4223_v18  ;;  %v8630_v18 = vand.u32 4294901760, %v4265_v35  ;;  %v8636_v35 = vand.u32 4294901760, %v4330_v0  ;;  %v8640_v0 = vand.u32 4294901760, %v4378_v57  ;;  %v8656_v57 = vld [vmem:[#allocation16_spill] sm:$0xff] }
  0xb1   :  { %955 = vmatpush2.msra.mxu0 %v5056_v53  ;;  %1080 = vmatpush2.msra.mxu1 %v8620_v20  ;;  %v8624_v53 = vand.u32 4294901760, %v4236_v23  ;;  %v8625_v20 = vld [vmem:[#allocation88_spill] sm:$0xff]  ;;  %v8631_v23 = vand.u32 4294901760, %v4278_v40  ;;  %v8637_v40 = vand.u32 4294901760, %v4341_v8  ;;  %v8650_v8 = vld [vmem:[#allocation14_spill] sm:$0xff] }
  0xb2   :  { %958 = vmatprep.subr.mxu0 %v5069_v33  ;;  %1082 = vmatprep.subr.mxu1 %v8621_v27  ;;  %v8626_v27 = vand.u32 4294901760, %v4242_v25  ;;  %v8632_v25 = vand.u32 4294901760, %v4292_v45  ;;  %v8638_v45 = vand.u32 4294901760, %v4352_v42  ;;  %v8653_v42 = vld [vmem:[#allocation15_spill] sm:$0xff] }
  0xb3   :  { %961 = vmatpush2.msra.mxu0 %v5077_v62  ;;  %1084 = vmatpush2.msra.mxu1 %v8622_v30  ;;  %v8627_v62 = vld [vmem:[#allocation90_spill] sm:$0xff]  ;;  %v8628_v30 = vand.u32 4294901760, %v4256_v31  ;;  %v8634_v31 = vand.u32 4294901760, %v4318_v59  ;;  %v8639_v59 = vand.u32 4294901760, %v4364_v48  ;;  %v8654_v48 = vld [vmem:[#allocation37_spill] sm:$0xff] }
  0xb4   :  { %967 = vmatmul.mubr.f32.vlgmr.msra.gmra.mxu0 %v5017_v32  ;;  %1086 = vmatprep.subr.mxu1 %v4886_v43  ;;  %v8629_v32 = vld [vmem:[#allocation92_spill] sm:$0xff] }
  0xb5   :  { %1117 = vmatprep.subr.mxu0 %v8623_v1  ;;  %1088 = vmatpush2.msra.mxu1 %v4897_v37  ;;  %v8662_v1 = vld [vmem:[#allocation18_spill] sm:$0xff] }
  0xb6   :  { %1121 = vmatpush1.msra.mxu0 %v8624_v53  ;;  %1090 = vmatprep.subr.mxu1 %v8625_v20 }
  0xb7   :  { %1125 = vmatprep.subr.mxu0 %v8626_v27  ;;  %1092 = vmatpush2.msra.mxu1 %v8627_v62  ;;  %v8633_v27 = vld [vmem:[#allocation104_spill] sm:$0xff] }
  0xb8   :  { %1129 = vmatpush1.msra.mxu0 %v8628_v30  ;;  %1094 = vmatprep.subr.mxu1 %v8629_v32  ;;  %v8635_v30 = vld [vmem:[#allocation105_spill] sm:$0xff] }
  0xb9   :  { %1133 = vmatprep.subr.mxu0 %v8630_v18  ;;  %1096 = vmatpush2.msra.mxu1 %v4952_v14  ;;  %v8669_v18 = vld [vmem:[#allocation47_spill] sm:$0xff] }
  0xba   :  { %1137 = vmatpush1.msra.mxu0 %v8631_v23  ;;  %1098 = vmatprep.subr.mxu1 %v4965_v2  ;;  %v8670_v23 = vand.u32 4294901760, %v8669_v18  ;;  %v8704_v18 = vld [vmem:[#allocation36_spill] sm:$0xff] }
  0xbb   :  { %1141 = vmatprep.subr.mxu0 %v8632_v25  ;;  %1100 = vmatpush2.msra.mxu1 %v4981_v38  ;;  %v8671_v25 = vld [vmem:[#allocation21_spill] sm:$0xff] }
  0xbc   :  { %1104 = vmatprep.mubr.f32.mxu1 %v8633_v27  ;;  %1145 = vmatpush1.msra.mxu0 %v8634_v31  ;;  %v8672_v31 = vld [vmem:[#allocation49_spill] sm:$0xff] }
  0xbd   :  { %1108 = vmatmul.mubr.f32.vlgmr.msra.gmra.mxu1 %v8635_v30  ;;  %1149 = vmatprep.subr.mxu0 %v8636_v35  ;;  %v8673_v35 = vand.u32 4294901760, %v8672_v31  ;;  %v8707_v31 = vld [vmem:[#allocation38_spill] sm:$0xff] }
  0xbe   :  { %1380 = vmatprep.subr.mxu1 %v4203_v3  ;;  %1153 = vmatpush1.msra.mxu0 %v8637_v40  ;;  %v8641_v3 = vand.u32 4294901760, %v4390_v6  ;;  %v8674_v40 = vld [vmem:[#allocation22_spill] sm:$0xff] }
  0xbf   :  { %1382 = vmatpush1.msra.mxu1 %v4205_v4  ;;  %1157 = vmatprep.subr.mxu0 %v8638_v45  ;;  %v8642_v4 = vand.u32 4294901760, %v4411_v54  ;;  %v8655_v54 = vand.u32 4294901760, %v8654_v48  ;;  %v8675_v45 = vld [vmem:[#allocation51_spill] sm:$0xff]  ;;  %v8783_v30 = vld [vmem:[#allocation110_spill] sm:$0xff] }
  0xc0   :  { %1384 = vmatprep.subr.mxu1 %v4207_v5  ;;  %1161 = vmatpush1.msra.mxu0 %v8639_v59  ;;  %v8643_v5 = vand.u32 4294901760, %v4424_v63  ;;  %v8657_v63 = vld [vmem:[#allocation39_spill] sm:$0xff]  ;;  %v8676_v59 = vand.u32 4294901760, %v8675_v45  ;;  %v8784_v27 = vand.u32 4294901760, %v8783_v30 }
  0xc1   :  { %1386 = vmatpush1.msra.mxu1 %v4209_v9  ;;  %1165 = vmatprep.subr.mxu0 %v8640_v0  ;;  %v8644_v9 = vand.u32 4294901760, %v4442_v55  ;;  %v8658_v6 = vand.u32 4294901760, %v8657_v63  ;;  %v8659_v55 = vld [vmem:[#allocation17_spill] sm:$0xff]  ;;  %v8677_v0 = vld [vmem:[#allocation23_spill] sm:$0xff] }
  0xc2   :  { %1388 = vmatprep.subr.mxu1 %v4211_v10  ;;  %1169 = vmatpush1.msra.mxu0 %v8641_v3  ;;  %v8645_v10 = vand.u32 4294901760, %v4455_v58  ;;  %v8660_v58 = vld [vmem:[#allocation41_spill] sm:$0xff]  ;;  %v8791_v30 = vld [vmem:[#allocation99_spill] sm:$0xff] }
  0xc3   :  { %1390 = vmatpush1.msra.mxu1 %v4213_v11  ;;  %1173 = vmatprep.subr.mxu0 %v8642_v4  ;;  %v8646_v11 = vand.u32 4294901760, %v4467_v60  ;;  %v8661_v53 = vand.u32 4294901760, %v8660_v58  ;;  %v8678_v3 = vld [vmem:[#allocation53_spill] sm:$0xff] }
  0xc4   :  { %1392 = vmatprep.subr.mxu1 %v4216_v15  ;;  %1177 = vmatpush1.msra.mxu0 %v8643_v5  ;;  %v8647_v15 = vand.u32 4294901760, %v8545_v34  ;;  %v8679_v4 = vand.u32 4294901760, %v8678_v3  ;;  %v8680_v5 = vld [vmem:[#allocation24_spill] sm:$0xff] }
  0xc5   :  { %1394 = vmatpush1.msra.mxu1 %v4218_v16  ;;  %1181 = vmatprep.subr.mxu0 %v8644_v9  ;;  %v8648_v16 = vand.u32 4294901760, %v8547_v51  ;;  %v8666_v51 = vld [vmem:[#allocation45_spill] sm:$0xff]  ;;  %v8681_v9 = vld [vmem:[#allocation55_spill] sm:$0xff] }
  0xc6   :  { %1396 = vmatprep.subr.mxu1 %v4220_v17  ;;  %1185 = vmatpush1.msra.mxu0 %v8645_v10  ;;  %v8649_v17 = vand.u32 4294901760, %v8549_v61  ;;  %v8668_v61 = vld [vmem:[#allocation20_spill] sm:$0xff]  ;;  %v8682_v10 = vand.u32 4294901760, %v8681_v9 }
  0xc7   :  { %1398 = vmatpush1.msra.mxu1 %v4233_v22  ;;  %1189 = vmatprep.subr.mxu0 %v8646_v11  ;;  %v8651_v22 = vld [vmem:[#allocation35_spill] sm:$0xff]  ;;  %v8683_v11 = vld [vmem:[#allocation25_spill] sm:$0xff] }
  0xc8   :  { %1400 = vmatprep.subr.mxu1 %v8544_v26  ;;  %1193 = vmatpush1.msra.mxu0 %v8647_v15  ;;  %v8652_v60 = vand.u32 4294901760, %v8651_v22  ;;  %v8663_v26 = vld [vmem:[#allocation43_spill] sm:$0xff]  ;;  %v8684_v15 = vld [vmem:[#allocation57_spill] sm:$0xff] }
  0xc9   :  { %1402 = vmatpush1.msra.mxu1 %v8546_v56  ;;  %1197 = vmatprep.subr.mxu0 %v8648_v16  ;;  %v8664_v34 = vand.u32 4294901760, %v8663_v26  ;;  %v8665_v56 = vld [vmem:[#allocation19_spill] sm:$0xff]  ;;  %v8685_v16 = vand.u32 4294901760, %v8684_v15 }
  0xca   :  { %1404 = vmatprep.subr.mxu1 %v8548_v44  ;;  %1201 = vmatpush1.msra.mxu0 %v8649_v17  ;;  %v8667_v44 = vand.u32 4294901760, %v8666_v51  ;;  %v8686_v17 = vld [vmem:[#allocation26_spill] sm:$0xff]  ;;  %v132_v51 = vld [vmem:[#allocation2 + $0x2e0] sm:$0xff] }
  0xcb   :  { %1406 = vmatpush1.msra.mxu1 %v8650_v8  ;;  %1205 = vmatprep.subr.mxu0 %v8652_v60  ;;  %v8687_v8 = vld [vmem:[#allocation59_spill] sm:$0xff]  ;;  %v5343_v3 = vand.u32 4294901760, %v132_v51 }
  0xcc   :  { %1408 = vmatprep.subr.mxu1 %v8653_v42  ;;  %1209 = vmatpush1.msra.mxu0 %v8655_v54  ;;  %v8688_v22 = vand.u32 4294901760, %v8687_v8  ;;  %v8689_v60 = vld [vmem:[#allocation27_spill] sm:$0xff]  ;;  %v8690_v42 = vld [vmem:[#allocation61_spill] sm:$0xff]  ;;  %v8692_v54 = vld [vmem:[#allocation28_spill] sm:$0xff] }
  0xcd   :  { %1410 = vmatpush1.msra.mxu1 %v8656_v57  ;;  %1213 = vmatprep.subr.mxu0 %v8658_v6  ;;  %v8691_v48 = vand.u32 4294901760, %v8690_v42  ;;  %v8693_v57 = vld [vmem:[#allocation63_spill] sm:$0xff]  ;;  %v8695_v6 = vld [vmem:[#allocation30_spill] sm:$0xff]  ;;  %v121_v8 = vld [vmem:[#allocation2 + $0x288] sm:$0xff] }
  0xce   :  { %1412 = vmatprep.subr.mxu1 %v8659_v55  ;;  %1217 = vmatpush1.msra.mxu0 %v8661_v53  ;;  %v8694_v63 = vand.u32 4294901760, %v8693_v57  ;;  %v8696_v55 = vld [vmem:[#allocation65_spill] sm:$0xff]  ;;  %v8698_v53 = vld [vmem:[#allocation32_spill] sm:$0xff] }
  0xcf   :  { %1414 = vmatpush1.msra.mxu1 %v8662_v1  ;;  %1221 = vmatprep.subr.mxu0 %v8664_v34  ;;  %v8697_v58 = vand.u32 4294901760, %v8696_v55  ;;  %v8699_v1 = vld [vmem:[#allocation67_spill] sm:$0xff]  ;;  %v8701_v34 = vld [vmem:[#allocation34_spill] sm:$0xff]  ;;  %v8722_v57 = vld [vmem:[#allocation81_spill] sm:$0xff] }
  0xd0   :  { %1416 = vmatprep.subr.mxu1 %v8665_v56  ;;  %1225 = vmatpush1.msra.mxu0 %v8667_v44  ;;  %v8700_v26 = vand.u32 4294901760, %v8699_v1  ;;  %v133_v56 = vld [vmem:[#allocation2 + $0x2e8] sm:$0xff]  ;;  %v8702_v44 = vld [vmem:[#allocation69_spill] sm:$0xff]  ;;  %v115_v55 = vld [vmem:[#allocation2 + $0x258] sm:$0xff] }
  0xd1   :  { %1418 = vmatpush1.msra.mxu1 %v8668_v61  ;;  %1229 = vmatprep.subr.mxu0 %v8670_v23  ;;  %v8703_v61 = vand.u32 4294901760, %v8702_v44  ;;  %v8705_v23 = vld [vmem:[#allocation71_spill] sm:$0xff] }
  0xd2   :  { %1420 = vmatprep.subr.mxu1 %v8671_v25  ;;  %1233 = vmatpush1.msra.mxu0 %v8673_v35  ;;  %v8706_v25 = vand.u32 4294901760, %v8705_v23  ;;  %v127_v35 = vld [vmem:[#allocation2 + $0x2b8] sm:$0xff] }
  0xd3   :  { %1422 = vmatpush1.msra.mxu1 %v8674_v40  ;;  %1237 = vmatprep.subr.mxu0 %v8676_v59  ;;  %v8708_v40 = vld [vmem:[#allocation73_spill] sm:$0xff]  ;;  %v8710_v59 = vld [vmem:[#allocation40_spill] sm:$0xff] }
  0xd4   :  { %1424 = vmatprep.subr.mxu1 %v8677_v0  ;;  %1241 = vmatpush1.msra.mxu0 %v8679_v4  ;;  %v8709_v45 = vand.u32 4294901760, %v8708_v40  ;;  %v5341_v0 = vand.u32 4294901760, %v133_v56  ;;  %v126_v4 = vld [vmem:[#allocation2 + $0x2b0] sm:$0xff]  ;;  %v109_v40 = vld [vmem:[#allocation2 + $0x228] sm:$0xff] }
  0xd5   :  { %1426 = vmatpush1.msra.mxu1 %v8680_v5  ;;  %1245 = vmatprep.subr.mxu0 %v8682_v10  ;;  %v8711_v5 = vld [vmem:[#allocation75_spill] sm:$0xff]  ;;  %v8713_v10 = vld [vmem:[#allocation42_spill] sm:$0xff] }
  0xd6   :  { %1428 = vmatprep.subr.mxu1 %v8683_v11  ;;  %1249 = vmatpush2.msra.mxu0 %v8685_v16  ;;  %v8712_v9 = vand.u32 4294901760, %v8711_v5  ;;  %v8714_v11 = vld [vmem:[#allocation77_spill] sm:$0xff]  ;;  %v8716_v16 = vld [vmem:[#allocation44_spill] sm:$0xff] }
  0xd7   :  { %1430 = vmatpush1.msra.mxu1 %v8686_v17  ;;  %1253 = vmatprep.subr.mxu0 %v8688_v22  ;;  %v8715_v15 = vand.u32 4294901760, %v8714_v11  ;;  %v5351_v17 = vand.u32 4294901760, %v127_v35  ;;  %v120_v22 = vld [vmem:[#allocation2 + $0x280] sm:$0xff]  ;;  %v102_v11 = vld [vmem:[#allocation2 + $0x1f0] sm:$0xff] }
  0xd8   :  { %1432 = vmatprep.subr.mxu1 %v8689_v60  ;;  %1257 = vmatpush2.msra.mxu0 %v8691_v48  ;;  %v8718_v60 = vld [vmem:[#allocation79_spill] sm:$0xff]  ;;  %v8720_v48 = vld [vmem:[#allocation46_spill] sm:$0xff]  ;;  %v5372_v44 = vand.u32 4294901760, %v120_v22 }
  0xd9   :  { %1434 = vmatpush1.msra.mxu1 %v8692_v54  ;;  %1261 = vmatprep.subr.mxu0 %v8694_v63  ;;  %8717 = vst [vmem:[#allocation11_spill] sm:$0xff] %v5351_v17  ;;  %v8719_v42 = vand.u32 4294901760, %v8718_v60  ;;  %v5356_v54 = vand.u32 4294901760, %v126_v4  ;;  %v8723_v63 = vand.u32 4294901760, %v8722_v57  ;;  %v5407_v60 = vand.u32 4294901760, %v109_v40 }
  0xda   :  { %1436 = vmatprep.subr.mxu1 %v8695_v6  ;;  %1265 = vmatpush2.msra.mxu0 %v8697_v58  ;;  %v5362_v6 = vsub.f32 %v132_v51, %v5343_v3  ;;  %v5365_v58 = vsub.f32 %v133_v56, %v5341_v0  ;;  %8728 = vst [vmem:[#allocation31_spill] sm:$0xff] %v5372_v44  ;;  %v8731_v56 = vld [vmem:[#allocation86_spill] sm:$0xff] }
  0xdb   :  { %1438 = vmatpush1.msra.mxu1 %v8698_v53  ;;  %1269 = vmatprep.subr.mxu0 %v8700_v26  ;;  %8721 = vst [vmem:[#allocation29_spill] sm:$0xff] %v5356_v54  ;;  %v8724_v53 = vld [vmem:[#allocation83_spill] sm:$0xff]  ;;  %v8726_v26 = vld [vmem:[#allocation50_spill] sm:$0xff]  ;;  %v8732_v51 = vand.u32 4294901760, %v8731_v56  ;;  %8743 = vst [vmem:[#allocation54_spill] sm:$0xff] %v5407_v60 }
  0xdc   :  { %1440 = vmatprep.subr.mxu1 %v8701_v34  ;;  %1273 = vmatpush2.msra.mxu0 %v8703_v61  ;;  %v8725_v1 = vand.u32 4294901760, %v8724_v53  ;;  %v5370_v34 = vand.u32 4294901760, %v121_v8  ;;  %v114_v61 = vld [vmem:[#allocation2 + $0x250] sm:$0xff]  ;;  %v8748_v53 = vld [vmem:[#allocation94_spill] sm:$0xff]  ;;  %v8752_v56 = vld [vmem:[#allocation95_spill] sm:$0xff] }
  0xdd   :  { %1442 = vmatpush1.msra.mxu1 %v8704_v18  ;;  %1277 = vmatprep.subr.mxu0 %v8706_v25  ;;  %v8729_v18 = vld [vmem:[#allocation85_spill] sm:$0xff]  ;;  %v5384_v25 = vsub.f32 %v126_v4, %v5356_v54  ;;  %v5399_v4 = vsub.f32 %v120_v22, %v5372_v44 }
  0xde   :  { %1444 = vmatprep.subr.mxu1 %v8707_v31  ;;  %1281 = vmatpush2.msra.mxu0 %v8709_v45  ;;  %8727 = vst [vmem:[#allocation12_spill] sm:$0xff] %v5370_v34  ;;  %v8730_v23 = vand.u32 4294901760, %v8729_v18  ;;  %v5386_v31 = vand.u32 4294901760, %v115_v55  ;;  %v108_v45 = vld [vmem:[#allocation2 + $0x220] sm:$0xff]  ;;  %v97_v18 = vld [vmem:[#allocation2 + $0x1c8] sm:$0xff] }
  0xdf   :  { %1446 = vmatpush2.msra.mxu1 %v8710_v59  ;;  %1285 = vmatprep.subr.mxu0 %v8712_v9  ;;  %v8734_v59 = vld [vmem:[#allocation87_spill] sm:$0xff]  ;;  %v8011_v9 = vand.u32 4294901760, %v5362_v6  ;;  %8739 = vst [vmem:[#allocation48_spill] sm:$0xff] %v5399_v4 }
  0xe0   :  { %1448 = vmatprep.subr.mxu1 %v8713_v10  ;;  %1289 = vmatpush2.msra.mxu0 %v8715_v15  ;;  %8733 = vst [vmem:[#allocation13_spill] sm:$0xff] %v5386_v31  ;;  %v8735_v5 = vand.u32 4294901760, %v8734_v59  ;;  %v8737_v10 = vld [vmem:[#allocation89_spill] sm:$0xff]  ;;  %v5402_v15 = vsub.f32 %v121_v8, %v5370_v34  ;;  %v8009_v8 = vand.u32 4294901760, %v5384_v25  ;;  %v5417_v22 = vsub.f32 %v115_v55, %v5386_v31 }
  0xe1   :  { %1450 = vmatpush2.msra.mxu1 %v8716_v16  ;;  %1293 = vmatprep.subr.mxu0 %v8719_v42  ;;  %v8741_v16 = vld [vmem:[#allocation91_spill] sm:$0xff]  ;;  %v5409_v42 = vand.u32 4294901760, %v108_v45  ;;  %v5435_v55 = vand.u32 4294901760, %v102_v11  ;;  %v8013_v59 = vand.u32 4294901760, %v5399_v4 }
  0xe2   :  { %1452 = vmatprep.subr.mxu1 %v8720_v48  ;;  %1297 = vmatpush2.msra.mxu0 %v8723_v63  ;;  %8740 = vst [vmem:[#allocation52_spill] sm:$0xff] %v5402_v15  ;;  %v103_v48 = vld [vmem:[#allocation2 + $0x1f8] sm:$0xff]  ;;  %8747 = vst [vmem:[#allocation58_spill] sm:$0xff] %v5417_v22 }
  0xe3   :  { %1454 = vmatpush2.msra.mxu1 %v8598_v12  ;;  %1301 = vmatprep.subr.mxu0 %v8725_v1  ;;  %v5378_v12 = vsub.f32 %v127_v35, %v5351_v17  ;;  %v8014_v35 = vand.u32 4294901760, %v5365_v58  ;;  %8744 = vst [vmem:[#allocation56_spill] sm:$0xff] %v5409_v42  ;;  %v8749_v1 = vand.u32 4294901760, %v8748_v53  ;;  %8751 = vst [vmem:[#allocation62_spill] sm:$0xff] %v5435_v55 }
  0xe4   :  { %1456 = vmatprep.subr.mxu1 %v8726_v26  ;;  %1305 = vmatpush2.msra.mxu0 %v8730_v23  ;;  %v96_v23 = vld [vmem:[#allocation2 + $0x1c0] sm:$0xff] }
  0xe5   :  { %1458 = vmatpush2.msra.mxu1 %v8602_v49  ;;  %1309 = vmatprep.subr.mxu0 %v8732_v51  ;;  %v5391_v49 = vand.u32 4294901760, %v114_v61  ;;  %v8010_v57 = vand.u32 4294901760, %v5378_v12  ;;  %v5428_v26 = vsub.f32 %v5365_v58, %v8014_v35  ;;  %v8753_v51 = vand.u32 4294901760, %v8752_v56  ;;  %v8771_v35 = vld [vmem:[#allocation106_spill] sm:$0xff] }
  0xe6   :  { %1460 = vmatprep.subr.mxu1 %v8604_v28  ;;  %1313 = vmatpush2.msra.mxu0 %v8735_v5  ;;  %v8738_v28 = vand.u32 4294901760, %v8737_v10  ;;  %v8755_v5 = vld [vmem:[#allocation96_spill] sm:$0xff]  ;;  %v5468_v53 = vand.u32 4294901760, %v96_v23  ;;  %v8015_v56 = vand.u32 4294901760, %v5417_v22 }
  0xe7   :  { %1462 = vmatpush2.msra.mxu1 %v8606_v52  ;;  %8736 = vst [vmem:[#allocation33_spill] sm:$0xff] %v5391_v49  ;;  %v8742_v52 = vand.u32 4294901760, %v8741_v16  ;;  %v8756_v10 = vand.u32 4294901760, %v8755_v5  ;;  %v5453_v16 = vsub.f32 %v5378_v12, %v8010_v57  ;;  %v84_v57 = vld [vmem:[#allocation2 + $0x160] sm:$0xff] }
  0xe8   :  { %1317 = vmatprep.subr.mxu0 %v8738_v28  ;;  %1464 = vmatprep.subr.mxu1 %v8608_v19  ;;  %v8745_v19 = vld [vmem:[#allocation93_spill] sm:$0xff]  ;;  %v5448_v28 = vsub.f32 %v108_v45, %v5409_v42  ;;  %v5466_v45 = vand.u32 4294901760, %v97_v18  ;;  %8762 = vst [vmem:[#allocation72_spill] sm:$0xff] %v5468_v53  ;;  %v8775_v5 = vld [vmem:[#allocation107_spill] sm:$0xff] }
  0xe9   :  { %1321 = vmatpush2.msra.mxu0 %v8742_v52  ;;  %1466 = vmatpush2.msra.mxu1 %v8609_v29  ;;  %v8746_v63 = vand.u32 4294901760, %v8745_v19  ;;  %v5423_v29 = vsub.f32 %v114_v61, %v5391_v49  ;;  %v8012_v61 = vand.u32 4294901760, %v5402_v15  ;;  %v5456_v52 = vsub.f32 %v109_v40, %v5407_v60  ;;  %v8759_v19 = vld [vmem:[#allocation98_spill] sm:$0xff] }
  0xea   :  { %1468 = vmatprep.subr.mxu1 %v8611_v21  ;;  %v5433_v21 = vsub.f32 %v5362_v6, %v8011_v9  ;;  %8757 = vst [vmem:[#allocation66_spill] sm:$0xff] %v5448_v28  ;;  %8761 = vst [vmem:[#allocation70_spill] sm:$0xff] %v5466_v45 }
  0xeb   :  { %1325 = vmatprep.subr.mxu0 %v8746_v63  ;;  %1470 = vmatpush2.msra.mxu1 %v8612_v41  ;;  %8750 = vst [vmem:[#allocation60_spill] sm:$0xff] %v5423_v29  ;;  %v5440_v41 = vand.u32 4294901760, %v103_v48  ;;  %8758 = vst [vmem:[#allocation68_spill] sm:$0xff] %v5456_v52  ;;  %v8760_v63 = vand.u32 4294901760, %v8759_v19  ;;  %v8016_v19 = vand.u32 4294901760, %v5423_v29 }
  0xec   :  { %1329 = vmatpush2.msra.mxu0 %v8749_v1  ;;  %1472 = vmatprep.subr.mxu1 %v8613_v7  ;;  %v90_v7 = vld [vmem:[#allocation2 + $0x190] sm:$0xff]  ;;  %v91_v1 = vld [vmem:[#allocation2 + $0x198] sm:$0xff] }
  0xed   :  { %1333 = vmatprep.subr.mxu0 %v8753_v51  ;;  %8754 = vst [vmem:[#allocation64_spill] sm:$0xff] %v5440_v41  ;;  %1474 = vmatpush2.msra.mxu1 %v8614_v24  ;;  %v5464_v24 = vsub.f32 %v5384_v25, %v8009_v8  ;;  %v8763_v51 = vld [vmem:[#allocation101_spill] sm:$0xff]  ;;  %v5496_v9 = vsub.f32 %v103_v48, %v5440_v41  ;;  %v8786_v48 = vand.u32 4294901760, %v5456_v52 }
  0xee   :  { %1337 = vmatpush2.msra.mxu0 %v8756_v10  ;;  %1476 = vmatprep.subr.mxu1 %v8615_v50  ;;  %v8764_v40 = vand.u32 4294901760, %v8763_v51  ;;  %v5477_v10 = vsub.f32 %v102_v11, %v5435_v55  ;;  %v5486_v51 = vsub.f32 %v5402_v15, %v8012_v61  ;;  %v85_v11 = vld [vmem:[#allocation2 + $0x168] sm:$0xff]  ;;  %v8772_v50 = vand.u32 4294901760, %v8771_v35  ;;  %v8781_v61 = vld [vmem:[#allocation82_spill] sm:$0xff] }
  0xef   :  { %1341 = vmatprep.subr.mxu0 %v8760_v63  ;;  %1478 = vmatpush2.msra.mxu1 %v8616_v39  ;;  %v8766_v63 = vld [vmem:[#allocation103_spill] sm:$0xff]  ;;  %v5491_v39 = vsub.f32 %v5399_v4, %v8013_v59  ;;  %8769 = vst [vmem:[#allocation78_spill] sm:$0xff] %v5496_v9  ;;  %v8776_v59 = vand.u32 4294901760, %v8775_v5  ;;  %v8777_v35 = vld [vmem:[#allocation80_spill] sm:$0xff] }
  0xf0   :  { %1345 = vmatpush2.msra.mxu0 %v8764_v40  ;;  %8765 = vst [vmem:[#allocation74_spill] sm:$0xff] %v5477_v10  ;;  %v8767_v8 = vand.u32 4294901760, %v8766_v63  ;;  %1480 = vmatprep.subr.mxu1 %v8617_v36  ;;  %v5493_v40 = vand.u32 4294901760, %v90_v7  ;;  %v5502_v63 = vand.u32 4294901760, %v91_v1  ;;  %v5519_v36 = vsub.f32 %v97_v18, %v5466_v45 }
  0xf1   :  { %1482 = vmatpush2.msra.mxu1 %v8618_v46  ;;  %v5516_v46 = vsub.f32 %v5417_v22, %v8015_v56  ;;  %v79_v56 = vld [vmem:[#allocation2 + $0x138] sm:$0xff]  ;;  %v8780_v18 = vand.u32 4294901760, %v5069_v33  ;;  %v5549_v33 = vsub.f32 %v5456_v52, %v8786_v48  ;;  %v66_v22 = vld [vmem:[#allocation2 + $0xd0] sm:$0xff] }
  0xf2   :  { %1349 = vmatprep.subr.mxu0 %v8767_v8  ;;  %8768 = vst [vmem:[#allocation76_spill] sm:$0xff] %v5493_v40  ;;  %v8770_v8 = vand.u32 4294901760, %v5030_v13  ;;  %1484 = vmatprep.subr.mxu1 %v8619_v47  ;;  %v5511_v13 = vsub.f32 %v96_v23, %v5468_v53  ;;  %8774 = vst [vmem:[#allocation90_spill] sm:$0xff] %v5519_v36  ;;  %v5527_v47 = vsub.f32 %v5423_v29, %v8016_v19  ;;  %v8785_v29 = vld [vmem:[#allocation97_spill] sm:$0xff]  ;;  %v67_v52 = vld [vmem:[#allocation2 + $0xd8] sm:$0xff] }
  0xf3   :  { %1486 = vmatpush2.msra.mxu1 %v8777_v35  ;;  %v5529_v23 = vand.u32 4294901760, %v85_v11  ;;  %v5540_v35 = vsub.f32 %v90_v7, %v5493_v40  ;;  %1371 = vmatprep.mubr.f32.mxu0 %v8785_v29  ;;  %v73_v7 = vld [vmem:[#allocation2 + $0x108] sm:$0xff]  ;;  %v5559_v19 = vsub.f32 %v91_v1, %v5502_v63  ;;  %v5564_v48 = vand.u32 4294901760, %v79_v56 }
  0xf4   :  { %1353 = vmatpush2.msra.mxu0 %v8770_v8  ;;  %8773 = vst [vmem:[#allocation88_spill] sm:$0xff] %v5511_v13  ;;  %v78_v8 = vld [vmem:[#allocation2 + $0x130] sm:$0xff]  ;;  %1488 = vmatprep.subr.mxu1 %v8781_v61  ;;  %v8787_v61 = vand.u32 4294901760, %v5448_v28 }
  0xf5   :  { %1357 = vmatprep.subr.mxu0 %v8772_v50  ;;  %8778 = vst [vmem:[#allocation92_spill] sm:$0xff] %v5529_v23  ;;  %v5531_v50 = vand.u32 4294901760, %v84_v57  ;;  %8782 = vst [vmem:[#allocation35_spill] sm:$0xff] %v5540_v35  ;;  %v5556_v5 = vand.u32 4294901760, %v78_v8  ;;  %v5580_v15 = vsub.f32 %v85_v11, %v5529_v23  ;;  %v5614_v11 = vand.u32 4294901760, %v66_v22  ;;  %1508 = vmatprep.mubr.f32.mxu1 %v8785_v29 }
  0xf6   :  { %1361 = vmatpush2.msra.mxu0 %v8776_v59  ;;  %v72_v59 = vld [vmem:[#allocation2 + $0x100] sm:$0xff]  ;;  %8789 = vst [vmem:[#allocation37_spill] sm:$0xff] %v5559_v19  ;;  %8792 = vst [vmem:[#allocation16_spill] sm:$0xff] %v5564_v48 }
  0xf7   :  { %8779 = vst [vmem:[#allocation14_spill] sm:$0xff] %v5531_v50  ;;  %1365 = vmatprep.subr.mxu0 %v8780_v18  ;;  %v5554_v18 = vsub.f32 %v5448_v28, %v8787_v61  ;;  %8788 = vst [vmem:[#allocation15_spill] sm:$0xff] %v5556_v5  ;;  %v5572_v1 = vsub.f32 %v84_v57, %v5531_v50  ;;  %v5589_v57 = vand.u32 4294901760, %v73_v7  ;;  %v5591_v61 = vand.u32 4294901760, %v72_v59 }
  0xf8   :  { %1369 = vmatpush2.msra.mxu0 %v8784_v27  ;;  %v8790_v27 = vld [vmem:[#allocation84_spill] sm:$0xff]  ;;  %8795 = vst [vmem:[#allocation17_spill] sm:$0xff] %v5580_v15  ;;  %8802 = vst [vmem:[#allocation19_spill] sm:$0xff] %v5614_v11 }
  0xf9   :  { %1490 = vmatpush2.msra.mxu1 %v8790_v27  ;;  %1373 = vmatmul.mubr.f32.vlgmr.msra.gmra.mxu0 %v8791_v30  ;;  %8793 = vst [vmem:[#allocation39_spill] sm:$0xff] %v5572_v1  ;;  %v8794_v27 = vand.u32 4294901760, %v5477_v10  ;;  %8797 = vst [vmem:[#allocation41_spill] sm:$0xff] %v5589_v57 }
  0xfa   :  { %1492 = vmatprep.subr.mxu1 %v4886_v43  ;;  %1517 = vmatprep.subr.mxu0 %v5341_v0  ;;  %v8796_v43 = vand.u32 4294901760, %v5496_v9  ;;  %8798 = vst [vmem:[#allocation18_spill] sm:$0xff] %v5591_v61 }
  0xfb   :  { %v5577_v4 = vsub.f32 %v5477_v10, %v8794_v27  ;;  %1494 = vmatpush2.msra.mxu1 %v4897_v37  ;;  %1519 = vmatpush1.msra.mxu0 %v5343_v3  ;;  %v5599_v10 = vsub.f32 %v78_v8, %v5556_v5  ;;  %v61_v8 = vld [vmem:[#allocation2 + $0xa8] sm:$0xff] }
  0xfc   :  { %v5587_v28 = vsub.f32 %v5496_v9, %v8796_v43  ;;  %1496 = vmatprep.subr.mxu1 %v8625_v20  ;;  %1521 = vmatprep.subr.mxu0 %v5351_v17  ;;  %v8800_v9 = vand.u32 4294901760, %v5519_v36  ;;  %v8801_v20 = vand.u32 4294901760, %v5511_v13  ;;  %v60_v17 = vld [vmem:[#allocation2 + $0xa0] sm:$0xff]  ;;  %v5617_v43 = vsub.f32 %v79_v56, %v5564_v48 }
  0xfd   :  { %8799 = vst [vmem:[#allocation43_spill] sm:$0xff] %v5599_v10  ;;  %1498 = vmatpush2.msra.mxu1 %v8627_v62  ;;  %1523 = vmatpush1.msra.mxu0 %v5356_v54  ;;  %v5630_v56 = vsub.f32 %v72_v59, %v5591_v61  ;;  %v54_v62 = vld [vmem:[#allocation2 + $0x70] sm:$0xff]  ;;  %v5638_v54 = vsub.f32 %v73_v7, %v5589_v57  ;;  %v5647_v59 = vand.u32 4294901760, %v61_v8 }
  0xfe   :  { %v5607_v27 = vsub.f32 %v5519_v36, %v8800_v9  ;;  %v5612_v37 = vsub.f32 %v5511_v13, %v8801_v20  ;;  %8803 = vst [vmem:[#allocation45_spill] sm:$0xff] %v5617_v43  ;;  %1500 = vmatprep.subr.mxu1 %v8629_v32  ;;  %1525 = vmatprep.subr.mxu0 %v5370_v34  ;;  %v5622_v9 = vand.u32 4294901760, %v67_v52  ;;  %v8806_v32 = vand.u32 4294901760, %v5540_v35  ;;  %v55_v36 = vld [vmem:[#allocation2 + $0x78] sm:$0xff] }
  0xff   :  { %1502 = vmatpush2.msra.mxu1 %v4952_v14  ;;  %1527 = vmatpush1.msra.mxu0 %v5372_v44  ;;  %8805 = vst [vmem:[#allocation47_spill] sm:$0xff] %v5630_v56  ;;  %8807 = vst [vmem:[#allocation21_spill] sm:$0xff] %v5638_v54  ;;  %v8808_v14 = vand.u32 4294901760, %v5559_v19  ;;  %v5649_v20 = vand.u32 4294901760, %v60_v17  ;;  %v5672_v7 = vand.u32 4294901760, %v54_v62  ;;  %v5698_v44 = vsub.f32 %v61_v8, %v5647_v59 }
 0x100   :  { %8804 = vst [vmem:[#allocation20_spill] sm:$0xff] %v5622_v9  ;;  %v5635_v34 = vsub.f32 %v5540_v35, %v8806_v32  ;;  %1504 = vmatprep.subr.mxu1 %v4965_v2  ;;  %1529 = vmatprep.subr.mxu0 %v5386_v31  ;;  %8809 = vst [vmem:[#allocation49_spill] sm:$0xff] %v5647_v59  ;;  %v5657_v35 = vsub.f32 %v66_v22, %v5614_v11  ;;  %v8812_v31 = vand.u32 4294901760, %v5580_v15  ;;  %v49_v22 = vld [vmem:[#allocation2 + $0x48] sm:$0xff] }
 0x101   :  { %v5645_v13 = vsub.f32 %v5559_v19, %v8808_v14  ;;  %8810 = vst [vmem:[#allocation22_spill] sm:$0xff] %v5649_v20  ;;  %1506 = vmatpush2.msra.mxu1 %v4981_v38  ;;  %1531 = vmatpush1.msra.mxu0 %v5391_v49  ;;  %v8813_v38 = vand.u32 4294901760, %v5572_v1  ;;  %8814 = vst [vmem:[#allocation23_spill] sm:$0xff] %v5672_v7  ;;  %v48_v19 = vld [vmem:[#allocation2 + $0x40] sm:$0xff]  ;;  %v5675_v14 = vsub.f32 %v67_v52, %v5622_v9 }
 0x102   :  { %8811 = vst [vmem:[#allocation51_spill] sm:$0xff] %v5657_v35  ;;  %1510 = vmatmul.mubr.f32.vlgmr.msra.gmra.mxu1 %v8791_v30  ;;  %v5665_v32 = vsub.f32 %v5580_v15, %v8812_v31  ;;  %1533 = vmatprep.subr.mxu0 %v5407_v60  ;;  %v8816_v49 = vand.u32 4294901760, %v5428_v26  ;;  %v5681_v15 = vand.u32 4294901760, %v55_v36  ;;  %v5690_v60 = vsub.f32 %v60_v17, %v5649_v20  ;;  %v42_v31 = vld [vmem:[#allocation2 + $0x10] sm:$0xff] }
 0x103   :  { %v5670_v2 = vsub.f32 %v5572_v1, %v8813_v38  ;;  %8815 = vst [vmem:[#allocation53_spill] sm:$0xff] %v5675_v14  ;;  %1535 = vmatpush1.msra.mxu0 %v5409_v42  ;;  %v8818_v1 = vand.u32 4294901760, %v5433_v21  ;;  %8821 = vst [vmem:[#allocation25_spill] sm:$0xff] %v5698_v44  ;;  %v8822_v38 = vand.u32 4294901760, %v5453_v16  ;;  %v8823_v21 = vand.u32 4294901760, %v5617_v43  ;;  %v228_v16 = vld [vmem:[#allocation2 + $0x5e0] sm:$0xff]  ;;  %2046 = vmatprep.mubr.f32.mxu1 %v8785_v29 }
 0x104   :  { %1666 = vmatprep.subr.mxu1 %v8816_v49  ;;  %8817 = vst [vmem:[#allocation24_spill] sm:$0xff] %v5681_v15  ;;  %8819 = vst [vmem:[#allocation55_spill] sm:$0xff] %v5690_v60  ;;  %v8820_v49 = vand.u32 4294901760, %v5599_v10  ;;  %1537 = vmatprep.subr.mxu0 %v5440_v41  ;;  %v5708_v17 = vand.u32 4294901760, %v49_v22  ;;  %v5710_v52 = vand.u32 4294901760, %v48_v19  ;;  %v8826_v8 = vand.u32 4294901760, %v5464_v24 }
 0x105   :  { %1672 = vmatpush1.msra.mxu1 %v8818_v1  ;;  %v5706_v1 = vsub.f32 %v5617_v43, %v8823_v21  ;;  %1539 = vmatpush1.msra.mxu0 %v5435_v55  ;;  %v5719_v41 = vsub.f32 %v54_v62, %v5672_v7  ;;  %v8828_v43 = vand.u32 4294901760, %v5486_v51  ;;  %v8830_v24 = vand.u32 4294901760, %v5630_v56  ;;  %v229_v62 = vld [vmem:[#allocation2 + $0x5e8] sm:$0xff]  ;;  %v8973_v29 = vld [vmem:[#allocation33_spill] sm:$0xff] }
 0x106   :  { %v5695_v26 = vsub.f32 %v5599_v10, %v8820_v49  ;;  %1678 = vmatprep.subr.mxu1 %v8822_v38  ;;  %8824 = vst [vmem:[#allocation57_spill] sm:$0xff] %v5708_v17  ;;  %8825 = vst [vmem:[#allocation26_spill] sm:$0xff] %v5710_v52  ;;  %v43_v49 = vld [vmem:[#allocation2 + $0x18] sm:$0xff]  ;;  %1541 = vmatprep.subr.mxu0 %v5466_v45  ;;  %v8829_v10 = vand.u32 4294901760, %v5638_v54  ;;  %v5735_v38 = vand.u32 4294901760, %v42_v31  ;;  %v8833_v51 = vand.u32 4294901760, %v5491_v39 }
 0x107   :  { %1684 = vmatpush1.msra.mxu1 %v8826_v8  ;;  %8827 = vst [vmem:[#allocation59_spill] sm:$0xff] %v5719_v41  ;;  %v5733_v8 = vsub.f32 %v5630_v56, %v8830_v24  ;;  %v5738_v21 = vsub.f32 %v55_v36, %v5681_v15  ;;  %1543 = vmatpush1.msra.mxu0 %v5468_v53  ;;  %v8835_v56 = vand.u32 4294901760, %v5516_v46  ;;  %v8837_v39 = vand.u32 4294901760, %v5657_v35 }
 0x108   :  { %1690 = vmatprep.subr.mxu1 %v8828_v43  ;;  %v5728_v55 = vsub.f32 %v5638_v54, %v8829_v10  ;;  %8831 = vst [vmem:[#allocation27_spill] sm:$0xff] %v5735_v38  ;;  %v5744_v43 = vand.u32 4294901760, %v43_v49  ;;  %1545 = vmatprep.subr.mxu0 %v5502_v63  ;;  %v5753_v53 = vsub.f32 %v48_v19, %v5710_v52  ;;  %v223_v10 = vld [vmem:[#allocation2 + $0x5b8] sm:$0xff]  ;;  %v222_v54 = vld [vmem:[#allocation2 + $0x5b0] sm:$0xff]  ;;  %v8839_v46 = vand.u32 4294901760, %v5527_v47 }
 0x109   :  { %8832 = vst [vmem:[#allocation61_spill] sm:$0xff] %v5738_v21  ;;  %1696 = vmatpush1.msra.mxu1 %v8833_v51  ;;  %v5758_v51 = vsub.f32 %v5657_v35, %v8837_v39  ;;  %v5761_v45 = vsub.f32 %v49_v22, %v5708_v17  ;;  %1547 = vmatpush1.msra.mxu0 %v5493_v40  ;;  %v5771_v36 = vand.u32 4294901760, %v229_v62  ;;  %v5773_v24 = vand.u32 4294901760, %v228_v16  ;;  %v217_v40 = vld [vmem:[#allocation2 + $0x588] sm:$0xff] }
 0x10a   :  { %8834 = vst [vmem:[#allocation28_spill] sm:$0xff] %v5744_v43  ;;  %1702 = vmatprep.subr.mxu1 %v8835_v56  ;;  %8836 = vst [vmem:[#allocation63_spill] sm:$0xff] %v5753_v53  ;;  %v8840_v56 = vand.u32 4294901760, %v5675_v14  ;;  %1549 = vmatprep.subr.mxu0 %v5529_v23  ;;  %v8843_v22 = vand.u32 4294901760, %v5549_v33  ;;  %v8845_v35 = vand.u32 4294901760, %v5554_v18  ;;  %v8846_v39 = vand.u32 4294901760, %v5698_v44 }
 0x10b   :  { %8838 = vst [vmem:[#allocation30_spill] sm:$0xff] %v5761_v45  ;;  %1708 = vmatpush1.msra.mxu1 %v8839_v46  ;;  %8841 = vst [vmem:[#allocation65_spill] sm:$0xff] %v5771_v36  ;;  %v5782_v46 = vsub.f32 %v42_v31, %v5735_v38  ;;  %1551 = vmatpush1.msra.mxu0 %v5531_v50  ;;  %v8847_v33 = vand.u32 4294901760, %v5690_v60  ;;  %v5798_v47 = vand.u32 4294901760, %v223_v10  ;;  %v5800_v31 = vand.u32 4294901760, %v222_v54  ;;  %v211_v50 = vld [vmem:[#allocation2 + $0x558] sm:$0xff] }
 0x10c   :  { %v5769_v19 = vsub.f32 %v5675_v14, %v8840_v56  ;;  %8842 = vst [vmem:[#allocation32_spill] sm:$0xff] %v5773_v24  ;;  %1714 = vmatprep.subr.mxu1 %v8843_v22  ;;  %v5791_v23 = vsub.f32 %v5698_v44, %v8846_v39  ;;  %v216_v56 = vld [vmem:[#allocation2 + $0x580] sm:$0xff]  ;;  %1553 = vmatprep.subr.mxu0 %v5564_v48  ;;  %v8852_v44 = vand.u32 4294901760, %v5577_v4  ;;  %v8856_v39 = vand.u32 4294901760, %v5607_v27 }
 0x10d   :  { %8844 = vst [vmem:[#allocation67_spill] sm:$0xff] %v5782_v46  ;;  %1720 = vmatpush1.msra.mxu1 %v8845_v35  ;;  %v5796_v22 = vsub.f32 %v5690_v60, %v8847_v33  ;;  %8848 = vst [vmem:[#allocation34_spill] sm:$0xff] %v5798_v47  ;;  %v8850_v35 = vand.u32 4294901760, %v5587_v28  ;;  %v5809_v33 = vsub.f32 %v43_v49, %v5744_v43  ;;  %v210_v60 = vld [vmem:[#allocation2 + $0x550] sm:$0xff]  ;;  %1555 = vmatpush1.msra.mxu0 %v5556_v5 }
 0x10e   :  { %8849 = vst [vmem:[#allocation69_spill] sm:$0xff] %v5800_v31  ;;  %v5816_v28 = vsub.f32 %v228_v16, %v5773_v24  ;;  %v5824_v49 = vsub.f32 %v229_v62, %v5771_v36  ;;  %1557 = vmatprep.subr.mxu0 %v5589_v57  ;;  %v5834_v16 = vand.u32 4294901760, %v217_v40  ;;  %v5836_v48 = vand.u32 4294901760, %v216_v56  ;;  %v205_v57 = vld [vmem:[#allocation2 + $0x528] sm:$0xff] }
 0x10f   :  { %1726 = vmatprep.subr.mxu1 %v8850_v35  ;;  %8851 = vst [vmem:[#allocation36_spill] sm:$0xff] %v5809_v33  ;;  %v8854_v35 = vand.u32 4294901760, %v5719_v41  ;;  %1559 = vmatpush1.msra.mxu0 %v5591_v61  ;;  %v8860_v62 = vand.u32 4294901760, %v5612_v37  ;;  %v8863_v5 = vand.u32 4294901760, %v5645_v13  ;;  %v8865_v37 = vand.u32 4294901760, %v5753_v53 }
 0x110   :  { %1732 = vmatpush1.msra.mxu1 %v8852_v44  ;;  %8853 = vst [vmem:[#allocation71_spill] sm:$0xff] %v5816_v28  ;;  %8855 = vst [vmem:[#allocation38_spill] sm:$0xff] %v5824_v49  ;;  %v8857_v44 = vand.u32 4294901760, %v5738_v21  ;;  %1561 = vmatprep.subr.mxu0 %v5622_v9  ;;  %v5862_v27 = vand.u32 4294901760, %v211_v50  ;;  %v8867_v13 = vand.u32 4294901760, %v5635_v34  ;;  %v5879_v34 = vsub.f32 %v216_v56, %v5836_v48  ;;  %v199_v9 = vld [vmem:[#allocation2 + $0x4f8] sm:$0xff] }
 0x111   :  { %v5821_v18 = vsub.f32 %v5719_v41, %v8854_v35  ;;  %1738 = vmatprep.subr.mxu1 %v8856_v39  ;;  %8858 = vst [vmem:[#allocation73_spill] sm:$0xff] %v5834_v16  ;;  %8859 = vst [vmem:[#allocation40_spill] sm:$0xff] %v5836_v48  ;;  %v5845_v39 = vsub.f32 %v222_v54, %v5800_v31  ;;  %v8864_v35 = vand.u32 4294901760, %v5761_v45  ;;  %v204_v41 = vld [vmem:[#allocation2 + $0x520] sm:$0xff]  ;;  %1563 = vmatpush1.msra.mxu0 %v5614_v11 }
 0x112   :  { %v5832_v4 = vsub.f32 %v5738_v21, %v8857_v44  ;;  %1744 = vmatpush1.msra.mxu1 %v8860_v62  ;;  %v5847_v44 = vand.u32 4294901760, %v210_v60  ;;  %v5860_v62 = vsub.f32 %v5753_v53, %v8865_v37  ;;  %8866 = vst [vmem:[#allocation77_spill] sm:$0xff] %v5862_v27  ;;  %v5872_v37 = vsub.f32 %v223_v10, %v5798_v47  ;;  %v198_v53 = vld [vmem:[#allocation2 + $0x4f0] sm:$0xff] }
 0x113   :  { %8861 = vst [vmem:[#allocation75_spill] sm:$0xff] %v5845_v39  ;;  %1750 = vmatprep.subr.mxu1 %v8863_v5  ;;  %v5855_v61 = vsub.f32 %v5761_v45, %v8864_v35  ;;  %1565 = vmatprep.subr.mxu0 %v5647_v59  ;;  %v8869_v54 = vand.u32 4294901760, %v5665_v32  ;;  %8870 = vst [vmem:[#allocation79_spill] sm:$0xff] %v5879_v34  ;;  %v5887_v10 = vsub.f32 %v217_v40, %v5834_v16  ;;  %v192_v59 = vld [vmem:[#allocation2 + $0x4c0] sm:$0xff] }
 0x114   :  { %8862 = vst [vmem:[#allocation42_spill] sm:$0xff] %v5847_v44  ;;  %1756 = vmatpush1.msra.mxu1 %v8867_v13  ;;  %8868 = vst [vmem:[#allocation44_spill] sm:$0xff] %v5872_v37  ;;  %v8871_v13 = vand.u32 4294901760, %v5782_v46  ;;  %1567 = vmatpush1.msra.mxu0 %v5649_v20  ;;  %v8873_v35 = vand.u32 4294901760, %v5670_v2  ;;  %v5893_v32 = vsub.f32 %v210_v60, %v5847_v44  ;;  %v5897_v56 = vand.u32 4294901760, %v204_v41 }
 0x115   :  { %1762 = vmatprep.subr.mxu1 %v8869_v54  ;;  %8872 = vst [vmem:[#allocation46_spill] sm:$0xff] %v5887_v10  ;;  %v5895_v54 = vand.u32 4294901760, %v205_v57  ;;  %1569 = vmatprep.subr.mxu0 %v5681_v15  ;;  %v8878_v2 = vand.u32 4294901760, %v5809_v33  ;;  %v8880_v11 = vand.u32 4294901760, %v5695_v26  ;;  %v8882_v20 = vand.u32 4294901760, %v5816_v28 }
 0x116   :  { %v5884_v5 = vsub.f32 %v5782_v46, %v8871_v13  ;;  %1768 = vmatpush1.msra.mxu1 %v8873_v35  ;;  %8874 = vst [vmem:[#allocation81_spill] sm:$0xff] %v5893_v32  ;;  %8876 = vst [vmem:[#allocation50_spill] sm:$0xff] %v5897_v56  ;;  %v8877_v13 = vand.u32 4294901760, %v5706_v1  ;;  %v5910_v35 = vand.u32 4294901760, %v198_v53  ;;  %1571 = vmatpush1.msra.mxu0 %v5672_v7  ;;  %v8881_v1 = vand.u32 4294901760, %v5824_v49  ;;  %v193_v46 = vld [vmem:[#allocation2 + $0x4c8] sm:$0xff] }
 0x117   :  { %8875 = vst [vmem:[#allocation83_spill] sm:$0xff] %v5895_v54  ;;  %v5908_v60 = vsub.f32 %v5809_v33, %v8878_v2  ;;  %v5923_v40 = vsub.f32 %v5816_v28, %v8882_v20  ;;  %v5925_v2 = vand.u32 4294901760, %v199_v9  ;;  %1573 = vmatprep.subr.mxu0 %v5708_v17  ;;  %v8884_v26 = vand.u32 4294901760, %v5728_v55  ;;  %v186_v20 = vld [vmem:[#allocation2 + $0x490] sm:$0xff]  ;;  %v187_v7 = vld [vmem:[#allocation2 + $0x498] sm:$0xff] }
 0x118   :  { %1774 = vmatprep.subr.mxu1 %v8877_v13  ;;  %8879 = vst [vmem:[#allocation85_spill] sm:$0xff] %v5910_v35  ;;  %v5918_v13 = vsub.f32 %v5824_v49, %v8881_v1  ;;  %v5935_v49 = vsub.f32 %v211_v50, %v5862_v27  ;;  %1575 = vmatpush1.msra.mxu0 %v5710_v52  ;;  %v8886_v15 = vand.u32 4294901760, %v5733_v8  ;;  %v8888_v55 = vand.u32 4294901760, %v5845_v39 }
 0x119   :  { %1780 = vmatpush1.msra.mxu1 %v8880_v11  ;;  %8883 = vst [vmem:[#allocation86_spill] sm:$0xff] %v5925_v2  ;;  %v5941_v17 = vsub.f32 %v204_v41, %v5897_v56  ;;  %v5948_v11 = vand.u32 4294901760, %v192_v59  ;;  %v5951_v50 = vsub.f32 %v205_v57, %v5895_v54  ;;  %1577 = vmatprep.subr.mxu0 %v5744_v43  ;;  %v8891_v1 = vand.u32 4294901760, %v5769_v19 }
 0x11a   :  { %1786 = vmatprep.subr.mxu1 %v8884_v26  ;;  %8885 = vst [vmem:[#allocation87_spill] sm:$0xff] %v5935_v49  ;;  %v5946_v26 = vsub.f32 %v5845_v39, %v8888_v55  ;;  %v5958_v41 = vsub.f32 %v198_v53, %v5910_v35  ;;  %v5960_v8 = vand.u32 4294901760, %v193_v46  ;;  %1579 = vmatpush1.msra.mxu0 %v5735_v38  ;;  %v8894_v52 = vand.u32 4294901760, %v5758_v51  ;;  %v181_v39 = vld [vmem:[#allocation2 + $0x468] sm:$0xff] }
 0x11b   :  { %1792 = vmatpush1.msra.mxu1 %v8886_v15  ;;  %8887 = vst [vmem:[#allocation89_spill] sm:$0xff] %v5941_v17  ;;  %8889 = vst [vmem:[#allocation91_spill] sm:$0xff] %v5948_v11  ;;  %v1845_v15 = vand.u32 4294901760, %v5908_v60  ;;  %v1857_v57 = vand.u32 4294901760, %v5918_v13  ;;  %v8895_v19 = vand.u32 4294901760, %v5872_v37  ;;  %v5973_v53 = vand.u32 4294901760, %v186_v20  ;;  %1581 = vmatprep.subr.mxu0 %v5771_v36 }
 0x11c   :  { %8890 = vst [vmem:[#allocation93_spill] sm:$0xff] %v5951_v50  ;;  %1798 = vmatprep.subr.mxu1 %v8891_v1  ;;  %8892 = vst [vmem:[#allocation94_spill] sm:$0xff] %v5958_v41  ;;  %v180_v1 = vld [vmem:[#allocation2 + $0x460] sm:$0xff]  ;;  %v8897_v55 = vand.u32 4294901760, %v5791_v23  ;;  %v8898_v51 = vand.u32 4294901760, %v5887_v10  ;;  %v8899_v13 = vand.u32 4294901760, %v5879_v34  ;;  %1583 = vmatpush2.msra.mxu0 %v5773_v24  ;;  %v6014_v36 = vsub.f32 %v193_v46, %v5960_v8 }
 0x11d   :  { %8893 = vst [vmem:[#allocation95_spill] sm:$0xff] %v5960_v8  ;;  %1804 = vmatpush1.msra.mxu1 %v8894_v52  ;;  %v5971_v60 = vsub.f32 %v5872_v37, %v8895_v19  ;;  %8896 = vst [vmem:[#allocation96_spill] sm:$0xff] %v5973_v53  ;;  %v5988_v19 = vand.u32 4294901760, %v187_v7  ;;  %v8901_v23 = vand.u32 4294901760, %v5796_v22  ;;  %1585 = vmatprep.subr.mxu0 %v5798_v47  ;;  %v8904_v38 = vand.u32 4294901760, %v5832_v4 }
 0x11e   :  { %1810 = vmatprep.subr.mxu1 %v8897_v55  ;;  %v5981_v52 = vsub.f32 %v5887_v10, %v8898_v51  ;;  %v5986_v43 = vsub.f32 %v5879_v34, %v8899_v13  ;;  %v5996_v51 = vsub.f32 %v192_v59, %v5948_v11  ;;  %v6000_v13 = vsub.f32 %v199_v9, %v5925_v2  ;;  %v174_v34 = vld [vmem:[#allocation2 + $0x430] sm:$0xff]  ;;  %v175_v55 = vld [vmem:[#allocation2 + $0x438] sm:$0xff] }
 0x11f   :  { %8900 = vst [vmem:[#allocation98_spill] sm:$0xff] %v5988_v19  ;;  %1816 = vmatpush1.msra.mxu1 %v8901_v23  ;;  %v8905_v24 = vand.u32 4294901760, %v5893_v32  ;;  %v6010_v23 = vand.u32 4294901760, %v180_v1  ;;  %8907 = vst [vmem:[#allocation107_spill] sm:$0xff] %v6014_v36  ;;  %1587 = vmatpush2.msra.mxu0 %v5800_v31  ;;  %v8908_v9 = vand.u32 4294901760, %v5821_v18  ;;  %v6021_v4 = vsub.f32 %v186_v20, %v5973_v53 }
 0x120   :  { %8902 = vst [vmem:[#allocation101_spill] sm:$0xff] %v5996_v51  ;;  %8903 = vst [vmem:[#allocation103_spill] sm:$0xff] %v6000_v13  ;;  %1822 = vmatprep.subr.mxu1 %v8904_v38  ;;  %v1869_v38 = vand.u32 4294901760, %v5971_v60  ;;  %1589 = vmatprep.subr.mxu0 %v5834_v16  ;;  %v8911_v59 = vand.u32 4294901760, %v5855_v61  ;;  %v1881_v46 = vand.u32 4294901760, %v5981_v52  ;;  %v1887_v31 = vand.u32 4294901760, %v5986_v43 }
 0x121   :  { %v6008_v22 = vsub.f32 %v5893_v32, %v8905_v24  ;;  %8906 = vst [vmem:[#allocation106_spill] sm:$0xff] %v6010_v23  ;;  %1828 = vmatpush1.msra.mxu1 %v8908_v9  ;;  %8909 = vst [vmem:[#allocation80_spill] sm:$0xff] %v6021_v4  ;;  %v6023_v24 = vand.u32 4294901760, %v181_v39  ;;  %v8912_v18 = vand.u32 4294901760, %v5935_v49  ;;  %v6036_v20 = vand.u32 4294901760, %v174_v34  ;;  %v168_v9 = vld [vmem:[#allocation2 + $0x400] sm:$0xff]  ;;  %1591 = vmatpush2.msra.mxu0 %v5836_v48 }
 0x122   :  { %1834 = vmatprep.subr.mxu1 %v8911_v59  ;;  %v8914_v47 = vand.u32 4294901760, %v5860_v62  ;;  %v8915_v61 = vand.u32 4294901760, %v5951_v50  ;;  %v6046_v52 = vand.u32 4294901760, %v175_v55  ;;  %v169_v16 = vld [vmem:[#allocation2 + $0x408] sm:$0xff]  ;;  %1593 = vmatprep.subr.mxu0 %v5862_v27  ;;  %v8919_v62 = vand.u32 4294901760, %v5941_v17  ;;  %v162_v43 = vld [vmem:[#allocation2 + $0x3d0] sm:$0xff] }
 0x123   :  { %8910 = vst [vmem:[#allocation82_spill] sm:$0xff] %v6023_v24  ;;  %v6034_v60 = vsub.f32 %v5935_v49, %v8912_v18  ;;  %8913 = vst [vmem:[#allocation110_spill] sm:$0xff] %v6036_v20  ;;  %v6050_v18 = vsub.f32 %v187_v7, %v5988_v19  ;;  %v1899_v48 = vand.u32 4294901760, %v6008_v22  ;;  %1595 = vmatpush2.msra.mxu0 %v5847_v44  ;;  %v8920_v7 = vand.u32 4294901760, %v5884_v5  ;;  %v163_v32 = vld [vmem:[#allocation2 + $0x3d8] sm:$0xff]  ;;  %v157_v44 = vld [vmem:[#allocation2 + $0x3a8] sm:$0xff] }
 0x124   :  { %1840 = vmatpush1.msra.mxu1 %v8914_v47  ;;  %v6044_v59 = vsub.f32 %v5951_v50, %v8915_v61  ;;  %8916 = vst [vmem:[#allocation84_spill] sm:$0xff] %v6046_v52  ;;  %v6055_v47 = vsub.f32 %v180_v1, %v6010_v23  ;;  %v6060_v61 = vsub.f32 %v5941_v17, %v8919_v62  ;;  %v6071_v1 = vand.u32 4294901760, %v168_v9 }
 0x125   :  { %8917 = vst [vmem:[#allocation111_spill] sm:$0xff] %v6050_v18  ;;  %1846 = vmatprep.subr.mxu1 %v1845_v15  ;;  %v8921_v15 = vand.u32 4294901760, %v5958_v41  ;;  %1597 = vmatprep.subr.mxu0 %v5895_v54  ;;  %v1893_v50 = vand.u32 4294901760, %v6034_v60  ;;  %v6078_v5 = vsub.f32 %v174_v34, %v6036_v20  ;;  %v8926_v27 = vand.u32 4294901760, %v5923_v40 }
 0x126   :  { %8918 = vst [vmem:[#allocation112_spill] sm:$0xff] %v6055_v47  ;;  %1852 = vmatpush1.msra.mxu1 %v8920_v7  ;;  %8922 = vst [vmem:[#allocation113_spill] sm:$0xff] %v6071_v1  ;;  %v6080_v7 = vand.u32 4294901760, %v169_v16  ;;  %1599 = vmatpush2.msra.mxu0 %v5897_v56  ;;  %v1905_v62 = vand.u32 4294901760, %v6044_v59  ;;  %v8927_v54 = vand.u32 4294901760, %v6000_v13  ;;  %v6093_v34 = vand.u32 4294901760, %v162_v43 }
 0x127   :  { %v6069_v22 = vsub.f32 %v5958_v41, %v8921_v15  ;;  %1858 = vmatprep.subr.mxu1 %v1857_v57  ;;  %8923 = vst [vmem:[#allocation114_spill] sm:$0xff] %v6078_v5  ;;  %v6083_v15 = vsub.f32 %v181_v39, %v6023_v24  ;;  %v156_v41 = vld [vmem:[#allocation2 + $0x3a0] sm:$0xff]  ;;  %1601 = vmatprep.subr.mxu0 %v5925_v2  ;;  %v1911_v39 = vand.u32 4294901760, %v6060_v61  ;;  %v8928_v40 = vand.u32 4294901760, %v6014_v36 }
 0x128   :  { %8924 = vst [vmem:[#allocation115_spill] sm:$0xff] %v6080_v7  ;;  %1864 = vmatpush2.msra.mxu1 %v8926_v27  ;;  %v1916_v57 = vsub.f32 %v6000_v13, %v8927_v54  ;;  %v6102_v59 = vand.u32 4294901760, %v163_v32  ;;  %v6105_v54 = vsub.f32 %v175_v55, %v6046_v52  ;;  %1603 = vmatpush2.msra.mxu0 %v5910_v35  ;;  %v8930_v60 = vand.u32 4294901760, %v5946_v26 }
 0x129   :  { %8925 = vst [vmem:[#allocation116_spill] sm:$0xff] %v6083_v15  ;;  %1870 = vmatprep.subr.mxu1 %v1869_v38  ;;  %v6100_v27 = vsub.f32 %v6014_v36, %v8928_v40  ;;  %v1923_v2 = vand.u32 4294901760, %v6069_v22  ;;  %v6112_v38 = vsub.f32 %v168_v9, %v6071_v1  ;;  %v8932_v61 = vand.u32 4294901760, %v5996_v51  ;;  %v150_v36 = vld [vmem:[#allocation2 + $0x370] sm:$0xff]  ;;  %1605 = vmatprep.subr.mxu0 %v5960_v8 }
 0x12a   :  { %8929 = vst [vmem:[#allocation117_spill] sm:$0xff] %v6105_v54  ;;  %1876 = vmatpush2.msra.mxu1 %v8930_v60  ;;  %v8933_v56 = vand.u32 4294901760, %v6021_v4  ;;  %v6125_v26 = vand.u32 4294901760, %v157_v44  ;;  %v6128_v9 = vand.u32 4294901760, %v156_v41  ;;  %v151_v60 = vld [vmem:[#allocation2 + $0x378] sm:$0xff]  ;;  %v6131_v35 = vsub.f32 %v169_v16, %v6080_v7  ;;  %1607 = vmatpush2.msra.mxu0 %v5948_v11 }
 0x12b   :  { %8931 = vst [vmem:[#allocation118_spill] sm:$0xff] %v6112_v38  ;;  %v6117_v40 = vsub.f32 %v5996_v51, %v8932_v61  ;;  %1882 = vmatprep.subr.mxu1 %v1881_v46  ;;  %v1917_v61 = vand.u32 4294901760, %v1916_v57  ;;  %v6138_v46 = vsub.f32 %v162_v43, %v6093_v34  ;;  %1609 = vmatprep.subr.mxu0 %v5988_v19  ;;  %v1929_v22 = vand.u32 4294901760, %v6100_v27  ;;  %v144_v27 = vld [vmem:[#allocation2 + $0x340] sm:$0xff] }
 0x12c   :  { %v6122_v55 = vsub.f32 %v6021_v4, %v8933_v56  ;;  %8934 = vst [vmem:[#allocation119_spill] sm:$0xff] %v6131_v35  ;;  %1888 = vmatpush2.msra.mxu1 %v1887_v31  ;;  %v8935_v56 = vand.u32 4294901760, %v6050_v18  ;;  %v6144_v51 = vand.u32 4294901760, %v150_v36  ;;  %v145_v31 = vld [vmem:[#allocation2 + $0x348] sm:$0xff]  ;;  %v6147_v57 = vsub.f32 %v163_v32, %v6102_v59  ;;  %1611 = vmatpush2.msra.mxu0 %v5973_v53 }
 0x12d   :  { %8936 = vst [vmem:[#allocation120_spill] sm:$0xff] %v6138_v46  ;;  %1894 = vmatprep.subr.mxu1 %v1893_v50  ;;  %v1935_v43 = vand.u32 4294901760, %v6117_v40  ;;  %v6152_v8 = vand.u32 4294901760, %v151_v60  ;;  %1613 = vmatprep.subr.mxu0 %v6023_v24  ;;  %v8938_v16 = vand.u32 4294901760, %v6083_v15  ;;  %v6160_v19 = vsub.f32 %v156_v41, %v6128_v9  ;;  %v139_v40 = vld [vmem:[#allocation2 + $0x318] sm:$0xff]  ;;  %v138_v41 = vld [vmem:[#allocation2 + $0x310] sm:$0xff] }
 0x12e   :  { %v1940_v4 = vsub.f32 %v6050_v18, %v8935_v56  ;;  %8937 = vst [vmem:[#allocation121_spill] sm:$0xff] %v6147_v57  ;;  %1900 = vmatpush2.msra.mxu1 %v1899_v48  ;;  %v1947_v56 = vand.u32 4294901760, %v6122_v55  ;;  %v6164_v55 = vsub.f32 %v157_v44, %v6125_v26  ;;  %1615 = vmatpush2.msra.mxu0 %v6010_v23  ;;  %v8939_v24 = vand.u32 4294901760, %v6055_v47 }
 0x12f   :  { %1906 = vmatprep.subr.mxu1 %v1905_v62  ;;  %v1952_v32 = vsub.f32 %v6083_v15, %v8938_v16  ;;  %v6170_v53 = vand.u32 4294901760, %v145_v31  ;;  %1617 = vmatprep.subr.mxu0 %v6046_v52  ;;  %v8940_v48 = vand.u32 4294901760, %v6105_v54  ;;  %v6178_v23 = vsub.f32 %v150_v36, %v6144_v51 }
 0x130   :  { %1912 = vmatpush2.msra.mxu1 %v1911_v39  ;;  %v1941_v50 = vand.u32 4294901760, %v1940_v4  ;;  %v1958_v62 = vsub.f32 %v6055_v47, %v8939_v24  ;;  %v6180_v4 = vand.u32 4294901760, %v144_v27  ;;  %1619 = vmatpush2.msra.mxu0 %v6036_v20  ;;  %v8942_v24 = vand.u32 4294901760, %v6078_v5 }
 0x131   :  { %1918 = vmatprep.subr.mxu1 %v1917_v61  ;;  %v1964_v44 = vsub.f32 %v6105_v54, %v8940_v48  ;;  %8941 = vst [vmem:[#allocation122_spill] sm:$0xff] %v6178_v23  ;;  %v6187_v52 = vand.u32 4294901760, %v139_v40  ;;  %v6191_v48 = vsub.f32 %v151_v60, %v6152_v8  ;;  %1621 = vmatprep.subr.mxu0 %v6080_v7  ;;  %v1953_v36 = vand.u32 4294901760, %v1952_v32 }
 0x132   :  { %1924 = vmatpush2.msra.mxu1 %v1923_v2  ;;  %v1970_v16 = vsub.f32 %v6078_v5, %v8942_v24  ;;  %v8944_v39 = vand.u32 4294901760, %v6131_v35  ;;  %v6197_v2 = vand.u32 4294901760, %v138_v41  ;;  %1623 = vmatpush2.msra.mxu0 %v6071_v1  ;;  %v1959_v24 = vand.u32 4294901760, %v1958_v62 }
 0x133   :  { %8943 = vst [vmem:[#allocation123_spill] sm:$0xff] %v6191_v48  ;;  %1930 = vmatprep.subr.mxu1 %v1929_v22  ;;  %v8945_v61 = vand.u32 4294901760, %v6112_v38  ;;  %v6205_v7 = vsub.f32 %v145_v31, %v6170_v53  ;;  %1625 = vmatprep.subr.mxu0 %v6102_v59  ;;  %v1965_v22 = vand.u32 4294901760, %v1964_v44  ;;  %v6209_v32 = vsub.f32 %v144_v27, %v6180_v4 }
 0x134   :  { %v1976_v20 = vsub.f32 %v6131_v35, %v8944_v39  ;;  %1936 = vmatpush2.msra.mxu1 %v1935_v43  ;;  %v8946_v39 = vand.u32 4294901760, %v6147_v57  ;;  %1627 = vmatpush2.msra.mxu0 %v6093_v34  ;;  %v1971_v62 = vand.u32 4294901760, %v1970_v16  ;;  %v8947_v31 = vand.u32 4294901760, %v6138_v46 }
 0x135   :  { %v1982_v60 = vsub.f32 %v6112_v38, %v8945_v61  ;;  %1942 = vmatprep.subr.mxu1 %v1941_v50  ;;  %v6221_v44 = vsub.f32 %v139_v40, %v6187_v52  ;;  %1629 = vmatprep.subr.mxu0 %v6125_v26  ;;  %v8949_v43 = vand.u32 4294901760, %v6164_v55  ;;  %v8181_v40 = vand.u32 4294901760, %v6205_v7 }
 0x136   :  { %v1988_v11 = vsub.f32 %v6147_v57, %v8946_v39  ;;  %1948 = vmatpush2.msra.mxu1 %v1947_v56  ;;  %v1994_v61 = vsub.f32 %v6138_v46, %v8947_v31  ;;  %v1977_v27 = vand.u32 4294901760, %v1976_v20  ;;  %v6225_v39 = vsub.f32 %v138_v41, %v6197_v2  ;;  %1631 = vmatpush2.msra.mxu0 %v6128_v9 }
 0x137   :  { %1954 = vmatprep.subr.mxu1 %v1953_v36  ;;  %v2000_v56 = vsub.f32 %v6164_v55, %v8949_v43  ;;  %v1983_v31 = vand.u32 4294901760, %v1982_v60  ;;  %1633 = vmatprep.subr.mxu0 %v6152_v8  ;;  %v8950_v20 = vand.u32 4294901760, %v6160_v19  ;;  %v8951_v16 = vand.u32 4294901760, %v6191_v48 }
 0x138   :  { %8948 = vst [vmem:[#allocation124_spill] sm:$0xff] %v6225_v39  ;;  %1960 = vmatpush2.msra.mxu1 %v1959_v24  ;;  %v1989_v36 = vand.u32 4294901760, %v1988_v11  ;;  %1635 = vmatpush2.msra.mxu0 %v6144_v51  ;;  %v1995_v43 = vand.u32 4294901760, %v1994_v61  ;;  %v8183_v60 = vand.u32 4294901760, %v6221_v44  ;;  %v8182_v50 = vand.u32 4294901760, %v6225_v39 }
 0x139   :  { %1966 = vmatprep.subr.mxu1 %v1965_v22  ;;  %v2006_v41 = vsub.f32 %v6160_v19, %v8950_v20  ;;  %v2012_v24 = vsub.f32 %v6191_v48, %v8951_v16  ;;  %1637 = vmatprep.subr.mxu0 %v6170_v53  ;;  %v2001_v11 = vand.u32 4294901760, %v2000_v56  ;;  %v8952_v22 = vand.u32 4294901760, %v6178_v23 }
 0x13a   :  { %1972 = vmatpush2.msra.mxu1 %v1971_v62  ;;  %1639 = vmatpush2.msra.mxu0 %v6180_v4  ;;  %v2024_v62 = vsub.f32 %v6205_v7, %v8181_v40 }
 0x13b   :  { %1978 = vmatprep.subr.mxu1 %v1977_v27  ;;  %v2018_v20 = vsub.f32 %v6178_v23, %v8952_v22  ;;  %1641 = vmatprep.subr.mxu0 %v6187_v52  ;;  %v2007_v61 = vand.u32 4294901760, %v2006_v41  ;;  %v8953_v27 = vand.u32 4294901760, %v6209_v32  ;;  %v2013_v16 = vand.u32 4294901760, %v2012_v24  ;;  %v8954_v22 = vld [vmem:[#allocation108_spill] sm:$0xff]  ;;  %v8955_v41 = vld [vmem:[#allocation109_spill] sm:$0xff] }
 0x13c   :  { %1984 = vmatpush2.msra.mxu1 %v1983_v31  ;;  %1643 = vmatpush2.msra.mxu0 %v6197_v2  ;;  %v2036_v31 = vsub.f32 %v6221_v44, %v8183_v60  ;;  %v8969_v60 = vld [vmem:[#allocation31_spill] sm:$0xff] }
 0x13d   :  { %1990 = vmatprep.subr.mxu1 %v1989_v36  ;;  %v2030_v56 = vsub.f32 %v6209_v32, %v8953_v27  ;;  %1649 = vmatprep.mubr.f32.mxu0 %v8954_v22  ;;  %v2019_v40 = vand.u32 4294901760, %v2018_v20  ;;  %v2042_v36 = vsub.f32 %v6225_v39, %v8182_v50  ;;  %v2025_v27 = vand.u32 4294901760, %v2024_v62  ;;  %v8956_v20 = vld [vmem:[#allocation52_spill] sm:$0xff]  ;;  %v8958_v62 = vld [vmem:[#allocation58_spill] sm:$0xff]  ;;  %v8971_v22 = vld [vmem:[#allocation13_spill] sm:$0xff] }
 0x13e   :  { %1996 = vmatpush2.msra.mxu1 %v1995_v43  ;;  %2056 = vmatprep.subr.mxu0 %v5365_v58  ;;  %v2037_v24 = vand.u32 4294901760, %v2036_v31  ;;  %v8957_v50 = vld [vmem:[#allocation48_spill] sm:$0xff]  ;;  %v8963_v31 = vld [vmem:[#allocation11_spill] sm:$0xff] }
 0x13f   :  { %2002 = vmatprep.subr.mxu1 %v2001_v11  ;;  %1655 = vmatmul.mubr.f32.vlgmr.msra.gmra.mxu0 %v8955_v41  ;;  %v2031_v43 = vand.u32 4294901760, %v2030_v56  ;;  %v2043_v11 = vand.u32 4294901760, %v2042_v36  ;;  %v8961_v56 = vld [vmem:[#allocation66_spill] sm:$0xff]  ;;  %v8970_v41 = vld [vmem:[#allocation37_spill] sm:$0xff] }
 0x140   :  { %2008 = vmatpush2.msra.mxu1 %v2007_v61  ;;  %2059 = vmatpush1.msra.mxu0 %v5362_v6  ;;  %v8959_v61 = vld [vmem:[#allocation60_spill] sm:$0xff]  ;;  %v8964_v36 = vld [vmem:[#allocation74_spill] sm:$0xff] }
 0x141   :  { %2014 = vmatprep.subr.mxu1 %v2013_v16  ;;  %2062 = vmatprep.subr.mxu0 %v5378_v12  ;;  %v8962_v16 = vld [vmem:[#allocation78_spill] sm:$0xff] }
 0x142   :  { %2020 = vmatpush2.msra.mxu1 %v2019_v40  ;;  %2065 = vmatpush1.msra.mxu0 %v5384_v25  ;;  %v8960_v40 = vld [vmem:[#allocation68_spill] sm:$0xff] }
 0x143   :  { %2026 = vmatprep.subr.mxu1 %v2025_v27  ;;  %2068 = vmatprep.subr.mxu0 %v8956_v20  ;;  %v8965_v27 = vld [vmem:[#allocation29_spill] sm:$0xff] }
 0x144   :  { %2032 = vmatpush2.msra.mxu1 %v2031_v43  ;;  %2071 = vmatpush1.msra.mxu0 %v8957_v50  ;;  %v8966_v43 = vld [vmem:[#allocation90_spill] sm:$0xff] }
 0x145   :  { %2038 = vmatprep.subr.mxu1 %v2037_v24  ;;  %2074 = vmatprep.subr.mxu0 %v8958_v62  ;;  %v8967_v24 = vld [vmem:[#allocation12_spill] sm:$0xff] }
 0x146   :  { %2044 = vmatpush2.msra.mxu1 %v2043_v11  ;;  %2077 = vmatpush1.msra.mxu0 %v8959_v61  ;;  %v8968_v11 = vld [vmem:[#allocation88_spill] sm:$0xff] }
 0x147   :  { %2048 = vmatmul.mubr.f32.vlgmr.msra.gmra.mxu1 %v8791_v30  ;;  %2080 = vmatprep.subr.mxu0 %v8960_v40  ;;  %v8972_v30 = vld [vmem:[#allocation35_spill] sm:$0xff] }
 0x148   :  { %2258 = vmatprep.subr.mxu1 %v5341_v0  ;;  %2083 = vmatpush1.msra.mxu0 %v8961_v56 }
 0x149   :  { %2260 = vmatpush1.msra.mxu1 %v5343_v3  ;;  %2086 = vmatprep.subr.mxu0 %v8962_v16 }
 0x14a   :  { %2262 = vmatprep.subr.mxu1 %v8963_v31  ;;  %2089 = vmatpush1.msra.mxu0 %v8964_v36  ;;  %v8974_v31 = vld [vmem:[#allocation17_spill] sm:$0xff]  ;;  %v8975_v36 = vld [vmem:[#allocation54_spill] sm:$0xff] }
 0x14b   :  { %2264 = vmatpush1.msra.mxu1 %v8965_v27  ;;  %2092 = vmatprep.subr.mxu0 %v8966_v43  ;;  %v8976_v27 = vld [vmem:[#allocation39_spill] sm:$0xff] }
 0x14c   :  { %2266 = vmatprep.subr.mxu1 %v8967_v24  ;;  %2095 = vmatpush1.msra.mxu0 %v8968_v11  ;;  %v8977_v24 = vld [vmem:[#allocation45_spill] sm:$0xff]  ;;  %v8978_v11 = vld [vmem:[#allocation64_spill] sm:$0xff] }
 0x14d   :  { %2268 = vmatpush1.msra.mxu1 %v8969_v60  ;;  %2098 = vmatprep.subr.mxu0 %v8970_v41  ;;  %v8979_v60 = vld [vmem:[#allocation43_spill] sm:$0xff]  ;;  %v8980_v41 = vld [vmem:[#allocation62_spill] sm:$0xff] }
 0x14e   :  { %2270 = vmatprep.subr.mxu1 %v8971_v22  ;;  %2101 = vmatpush1.msra.mxu0 %v8972_v30  ;;  %v8981_v22 = vld [vmem:[#allocation21_spill] sm:$0xff]  ;;  %v8982_v30 = vld [vmem:[#allocation70_spill] sm:$0xff] }
 0x14f   :  { %2272 = vmatpush1.msra.mxu1 %v8973_v29  ;;  %2104 = vmatprep.subr.mxu0 %v8974_v31  ;;  %v8983_v29 = vld [vmem:[#allocation47_spill] sm:$0xff]  ;;  %v8984_v31 = vld [vmem:[#allocation72_spill] sm:$0xff] }
 0x150   :  { %2274 = vmatprep.subr.mxu1 %v8975_v36  ;;  %2107 = vmatpush1.msra.mxu0 %v8976_v27 }
 0x151   :  { %2276 = vmatpush1.msra.mxu1 %v5409_v42  ;;  %2110 = vmatprep.subr.mxu0 %v8977_v24  ;;  %v8985_v42 = vld [vmem:[#allocation51_spill] sm:$0xff]  ;;  %v8986_v24 = vld [vmem:[#allocation76_spill] sm:$0xff] }
 0x152   :  { %2278 = vmatprep.subr.mxu1 %v8978_v11  ;;  %2113 = vmatpush1.msra.mxu0 %v8979_v60  ;;  %v8987_v11 = vld [vmem:[#allocation25_spill] sm:$0xff]  ;;  %v8988_v60 = vld [vmem:[#allocation92_spill] sm:$0xff] }
 0x153   :  { %2280 = vmatpush1.msra.mxu1 %v8980_v41  ;;  %2116 = vmatprep.subr.mxu0 %v8981_v22  ;;  %v8989_v41 = vld [vmem:[#allocation55_spill] sm:$0xff]  ;;  %v8990_v22 = vld [vmem:[#allocation14_spill] sm:$0xff] }
 0x154   :  { %2282 = vmatprep.subr.mxu1 %v8982_v30  ;;  %2119 = vmatpush1.msra.mxu0 %v8983_v29  ;;  %v8991_v29 = vld [vmem:[#allocation16_spill] sm:$0xff] }
 0x155   :  { %2284 = vmatpush1.msra.mxu1 %v8984_v31  ;;  %2122 = vmatprep.subr.mxu0 %v5675_v14  ;;  %v8992_v31 = vld [vmem:[#allocation59_spill] sm:$0xff] }
 0x156   :  { %2286 = vmatprep.subr.mxu1 %v5502_v63  ;;  %2125 = vmatpush1.msra.mxu0 %v8985_v42  ;;  %v8993_v14 = vld [vmem:[#allocation15_spill] sm:$0xff]  ;;  %v8994_v42 = vld [vmem:[#allocation41_spill] sm:$0xff] }
 0x157   :  { %2288 = vmatpush1.msra.mxu1 %v8986_v24  ;;  %2128 = vmatprep.subr.mxu0 %v8987_v11  ;;  %v8995_v24 = vld [vmem:[#allocation63_spill] sm:$0xff]  ;;  %v8996_v11 = vld [vmem:[#allocation18_spill] sm:$0xff] }
 0x158   :  { %2290 = vmatprep.subr.mxu1 %v8988_v60  ;;  %2131 = vmatpush1.msra.mxu0 %v8989_v41  ;;  %v8997_v41 = vld [vmem:[#allocation20_spill] sm:$0xff] }
 0x159   :  { %2292 = vmatpush1.msra.mxu1 %v8990_v22  ;;  %2134 = vmatprep.subr.mxu0 %v5738_v21  ;;  %v8998_v22 = vld [vmem:[#allocation67_spill] sm:$0xff] }
 0x15a   :  { %2294 = vmatprep.subr.mxu1 %v8991_v29  ;;  %2137 = vmatpush1.msra.mxu0 %v8992_v31  ;;  %v8999_v21 = vld [vmem:[#allocation19_spill] sm:$0xff]  ;;  %v9000_v29 = vld [vmem:[#allocation38_spill] sm:$0xff]  ;;  %v9001_v31 = vld [vmem:[#allocation49_spill] sm:$0xff] }
 0x15b   :  { %2296 = vmatpush1.msra.mxu1 %v8993_v14  ;;  %2140 = vmatprep.subr.mxu0 %v5761_v45  ;;  %v9002_v45 = vld [vmem:[#allocation22_spill] sm:$0xff] }
 0x15c   :  { %2298 = vmatprep.subr.mxu1 %v8994_v42  ;;  %2143 = vmatpush1.msra.mxu0 %v8995_v24  ;;  %v9003_v24 = vld [vmem:[#allocation24_spill] sm:$0xff] }
 0x15d   :  { %2300 = vmatpush1.msra.mxu1 %v8996_v11  ;;  %2146 = vmatprep.subr.mxu0 %v5809_v33  ;;  %v9004_v11 = vld [vmem:[#allocation75_spill] sm:$0xff] }
 0x15e   :  { %2302 = vmatprep.subr.mxu1 %v8997_v41  ;;  %2149 = vmatpush1.msra.mxu0 %v8998_v22  ;;  %v9005_v33 = vld [vmem:[#allocation23_spill] sm:$0xff]  ;;  %v9006_v22 = vld [vmem:[#allocation57_spill] sm:$0xff] }
 0x15f   :  { %2304 = vmatpush1.msra.mxu1 %v8999_v21  ;;  %2152 = vmatprep.subr.mxu0 %v9000_v29  ;;  %v9007_v21 = vld [vmem:[#allocation79_spill] sm:$0xff]  ;;  %v9008_v29 = vld [vmem:[#allocation26_spill] sm:$0xff] }
 0x160   :  { %2306 = vmatprep.subr.mxu1 %v9001_v31  ;;  %2155 = vmatpush2.msra.mxu0 %v5816_v28  ;;  %v9009_v28 = vld [vmem:[#allocation28_spill] sm:$0xff] }
 0x161   :  { %2308 = vmatpush1.msra.mxu1 %v9002_v45  ;;  %2158 = vmatprep.subr.mxu0 %v5872_v37  ;;  %v9010_v45 = vld [vmem:[#allocation81_spill] sm:$0xff]  ;;  %v9011_v37 = vld [vmem:[#allocation27_spill] sm:$0xff] }
 0x162   :  { %2310 = vmatprep.subr.mxu1 %v9003_v24  ;;  %2161 = vmatpush2.msra.mxu0 %v9004_v11  ;;  %v9012_v24 = vld [vmem:[#allocation93_spill] sm:$0xff] }
 0x163   :  { %2312 = vmatpush1.msra.mxu1 %v9005_v33  ;;  %2164 = vmatprep.subr.mxu0 %v5887_v10  ;;  %v9013_v11 = vld [vmem:[#allocation65_spill] sm:$0xff]  ;;  %v9014_v10 = vld [vmem:[#allocation32_spill] sm:$0xff] }
 0x164   :  { %2314 = vmatprep.subr.mxu1 %v9006_v22  ;;  %2167 = vmatpush2.msra.mxu0 %v9007_v21  ;;  %v9015_v21 = vld [vmem:[#allocation34_spill] sm:$0xff] }
 0x165   :  { %2316 = vmatpush1.msra.mxu1 %v9008_v29  ;;  %2170 = vmatprep.subr.mxu0 %v5935_v49  ;;  %v9016_v29 = vld [vmem:[#allocation94_spill] sm:$0xff]  ;;  %v9017_v49 = vld [vmem:[#allocation69_spill] sm:$0xff] }
 0x166   :  { %2318 = vmatprep.subr.mxu1 %v9009_v28  ;;  %2173 = vmatpush2.msra.mxu0 %v9010_v45  ;;  %v9018_v28 = vld [vmem:[#allocation107_spill] sm:$0xff]  ;;  %v9019_v45 = vld [vmem:[#allocation73_spill] sm:$0xff] }
 0x167   :  { %2320 = vmatpush1.msra.mxu1 %v9011_v37  ;;  %2176 = vmatprep.subr.mxu0 %v9012_v24  ;;  %v9020_v37 = vld [vmem:[#allocation101_spill] sm:$0xff]  ;;  %v9021_v24 = vld [vmem:[#allocation40_spill] sm:$0xff] }
 0x168   :  { %2322 = vmatprep.subr.mxu1 %v9013_v11  ;;  %2179 = vmatpush2.msra.mxu0 %v5941_v17  ;;  %v9022_v17 = vld [vmem:[#allocation77_spill] sm:$0xff] }
 0x169   :  { %2324 = vmatpush2.msra.mxu1 %v9014_v10  ;;  %2182 = vmatprep.subr.mxu0 %v6000_v13  ;;  %v9023_v10 = vld [vmem:[#allocation80_spill] sm:$0xff]  ;;  %v9024_v13 = vld [vmem:[#allocation42_spill] sm:$0xff] }
 0x16a   :  { %2326 = vmatprep.subr.mxu1 %v9015_v21  ;;  %2185 = vmatpush2.msra.mxu0 %v9016_v29  ;;  %v9025_v29 = vld [vmem:[#allocation83_spill] sm:$0xff] }
 0x16b   :  { %2328 = vmatpush2.msra.mxu1 %v9017_v49  ;;  %2188 = vmatprep.subr.mxu0 %v9018_v28  ;;  %v9026_v28 = vld [vmem:[#allocation50_spill] sm:$0xff] }
 0x16c   :  { %2330 = vmatprep.subr.mxu1 %v9019_v45  ;;  %2191 = vmatpush2.msra.mxu0 %v9020_v37  ;;  %v9027_v37 = vld [vmem:[#allocation86_spill] sm:$0xff] }
 0x16d   :  { %2332 = vmatpush2.msra.mxu1 %v9021_v24  ;;  %2194 = vmatprep.subr.mxu0 %v6050_v18  ;;  %v9028_v18 = vld [vmem:[#allocation85_spill] sm:$0xff] }
 0x16e   :  { %2334 = vmatprep.subr.mxu1 %v9022_v17  ;;  %2197 = vmatpush2.msra.mxu0 %v9023_v10  ;;  %v9029_v10 = vld [vmem:[#allocation95_spill] sm:$0xff] }
 0x16f   :  { %2336 = vmatpush2.msra.mxu1 %v9024_v13  ;;  %2200 = vmatprep.subr.mxu0 %v6083_v15  ;;  %v9030_v15 = vld [vmem:[#allocation91_spill] sm:$0xff] }
 0x170   :  { %2338 = vmatprep.subr.mxu1 %v9025_v29  ;;  %2203 = vmatpush2.msra.mxu0 %v6055_v47  ;;  %v9031_v47 = vld [vmem:[#allocation98_spill] sm:$0xff] }
 0x171   :  { %2340 = vmatpush2.msra.mxu1 %v9026_v28  ;;  %2206 = vmatprep.subr.mxu0 %v6105_v54  ;;  %v9032_v54 = vld [vmem:[#allocation96_spill] sm:$0xff] }
 0x172   :  { %2342 = vmatprep.subr.mxu1 %v9027_v37  ;;  %2209 = vmatpush2.msra.mxu0 %v6078_v5  ;;  %v9033_v5 = vld [vmem:[#allocation82_spill] sm:$0xff] }
 0x173   :  { %2344 = vmatpush2.msra.mxu1 %v9028_v18  ;;  %2212 = vmatprep.subr.mxu0 %v6131_v35  ;;  %v9034_v35 = vld [vmem:[#allocation106_spill] sm:$0xff] }
 0x174   :  { %2346 = vmatprep.subr.mxu1 %v9029_v10  ;;  %2215 = vmatpush2.msra.mxu0 %v6112_v38  ;;  %v9035_v38 = vld [vmem:[#allocation84_spill] sm:$0xff] }
 0x175   :  { %2348 = vmatpush2.msra.mxu1 %v9030_v15  ;;  %2218 = vmatprep.subr.mxu0 %v6147_v57  ;;  %v9036_v57 = vld [vmem:[#allocation110_spill] sm:$0xff] }
 0x176   :  { %2350 = vmatprep.subr.mxu1 %v9031_v47  ;;  %2221 = vmatpush2.msra.mxu0 %v6138_v46  ;;  %v9037_v46 = vld [vmem:[#allocation115_spill] sm:$0xff] }
 0x177   :  { %2352 = vmatpush2.msra.mxu1 %v9032_v54  ;;  %2224 = vmatprep.subr.mxu0 %v6164_v55 }
 0x178   :  { %2354 = vmatprep.subr.mxu1 %v9033_v5  ;;  %2227 = vmatpush2.msra.mxu0 %v6160_v19 }
 0x179   :  { %2356 = vmatpush2.msra.mxu1 %v9034_v35  ;;  %2230 = vmatprep.subr.mxu0 %v6191_v48  ;;  %v9038_v48 = vld [vmem:[#allocation100_spill] sm:$0xff] }
 0x17a   :  { %2358 = vmatprep.subr.mxu1 %v9035_v38  ;;  %2233 = vmatpush2.msra.mxu0 %v6178_v23  ;;  %v9039_v23 = vld [vmem:[#allocation102_spill] sm:$0xff] }
 0x17b   :  { %2360 = vmatpush2.msra.mxu1 %v9036_v57  ;;  %2236 = vmatprep.subr.mxu0 %v6205_v7 }
 0x17c   :  { %2362 = vmatprep.subr.mxu1 %v9037_v46  ;;  %2239 = vmatpush2.msra.mxu0 %v6209_v32  ;;  %v9040_v46 = vand.u32 4294901760, %v5365_v58  ;;  %v9044_v58 = vand.u32 4294901760, %v8956_v20  ;;  %v9053_v20 = vld [vmem:[#allocation11_spill] sm:$0xff] }
 0x17d   :  { %2364 = vmatpush2.msra.mxu1 %v6071_v1  ;;  %2242 = vmatprep.subr.mxu0 %v6221_v44  ;;  %v9041_v1 = vand.u32 4294901760, %v5362_v6  ;;  %v9045_v6 = vand.u32 4294901760, %v8957_v50  ;;  %v9051_v50 = vand.u32 4294901760, %v8961_v56 }
 0x17e   :  { %2366 = vmatprep.subr.mxu1 %v6102_v59  ;;  %2245 = vmatpush2.msra.mxu0 %v6225_v39  ;;  %v9042_v39 = vand.u32 4294901760, %v5378_v12  ;;  %v9046_v12 = vand.u32 4294901760, %v8958_v62  ;;  %v9054_v62 = vld [vmem:[#allocation74_spill] sm:$0xff] }
 0x17f   :  { %2248 = vmatprep.mubr.f32.mxu0 %v9038_v48  ;;  %2368 = vmatpush2.msra.mxu1 %v6093_v34  ;;  %v9043_v48 = vand.u32 4294901760, %v5384_v25  ;;  %v9048_v25 = vand.u32 4294901760, %v8959_v61  ;;  %v9055_v61 = vand.u32 4294901760, %v9054_v62  ;;  %v9070_v62 = vand.u32 4294901760, %v8976_v27 }
 0x180   :  { %2251 = vmatmul.mubr.f32.vlgmr.msra.gmra.mxu0 %v9039_v23  ;;  %2370 = vmatprep.subr.mxu1 %v6125_v26 }
 0x181   :  { %2401 = vmatprep.subr.mxu0 %v9040_v46  ;;  %2372 = vmatpush2.msra.mxu1 %v6128_v9  ;;  %v9049_v46 = vld [vmem:[#allocation105_spill] sm:$0xff] }
 0x182   :  { %2405 = vmatpush1.msra.mxu0 %v9041_v1  ;;  %2374 = vmatprep.subr.mxu1 %v6152_v8  ;;  %v9047_v1 = vld [vmem:[#allocation104_spill] sm:$0xff] }
 0x183   :  { %2409 = vmatprep.subr.mxu0 %v9042_v39  ;;  %2376 = vmatpush2.msra.mxu1 %v6144_v51  ;;  %v9052_v39 = vand.u32 4294901760, %v8962_v16 }
 0x184   :  { %2413 = vmatpush1.msra.mxu0 %v9043_v48  ;;  %2378 = vmatprep.subr.mxu1 %v6170_v53  ;;  %v9050_v48 = vand.u32 4294901760, %v8960_v40  ;;  %v9057_v40 = vand.u32 4294901760, %v8966_v43 }
 0x185   :  { %2417 = vmatprep.subr.mxu0 %v9044_v58  ;;  %2380 = vmatpush2.msra.mxu1 %v6180_v4  ;;  %v9056_v58 = vld [vmem:[#allocation29_spill] sm:$0xff] }
 0x186   :  { %2421 = vmatpush1.msra.mxu0 %v9045_v6  ;;  %2382 = vmatprep.subr.mxu1 %v6187_v52  ;;  %v9058_v6 = vld [vmem:[#allocation12_spill] sm:$0xff] }
 0x187   :  { %2425 = vmatprep.subr.mxu0 %v9046_v12  ;;  %2384 = vmatpush2.msra.mxu1 %v6197_v2  ;;  %v9061_v12 = vld [vmem:[#allocation31_spill] sm:$0xff] }
 0x188   :  { %2388 = vmatprep.mubr.f32.mxu1 %v9047_v1  ;;  %2429 = vmatpush1.msra.mxu0 %v9048_v25  ;;  %v9064_v25 = vld [vmem:[#allocation13_spill] sm:$0xff] }
 0x189   :  { %2392 = vmatmul.mubr.f32.vlgmr.msra.gmra.mxu1 %v9049_v46  ;;  %2433 = vmatprep.subr.mxu0 %v9050_v48  ;;  %v9065_v48 = vld [vmem:[#allocation35_spill] sm:$0xff] }
 0x18a   :  { %2664 = vmatprep.subr.mxu1 %v5341_v0  ;;  %2437 = vmatpush1.msra.mxu0 %v9051_v50  ;;  %v9059_v0 = vld [vmem:[#allocation88_spill] sm:$0xff]  ;;  %v9066_v50 = vand.u32 4294901760, %v9065_v48  ;;  %v9083_v48 = vld [vmem:[#allocation53_spill] sm:$0xff] }
 0x18b   :  { %2666 = vmatpush1.msra.mxu1 %v5343_v3  ;;  %2441 = vmatprep.subr.mxu0 %v9052_v39  ;;  %v9060_v56 = vand.u32 4294901760, %v9059_v0  ;;  %v9062_v3 = vld [vmem:[#allocation37_spill] sm:$0xff]  ;;  %v9075_v0 = vld [vmem:[#allocation43_spill] sm:$0xff] }
 0x18c   :  { %2668 = vmatprep.subr.mxu1 %v9053_v20  ;;  %2445 = vmatpush1.msra.mxu0 %v9055_v61  ;;  %v9063_v16 = vand.u32 4294901760, %v9062_v3  ;;  %v9067_v39 = vld [vmem:[#allocation33_spill] sm:$0xff]  ;;  %v9071_v61 = vld [vmem:[#allocation56_spill] sm:$0xff] }
 0x18d   :  { %2670 = vmatpush1.msra.mxu1 %v9056_v58  ;;  %2449 = vmatprep.subr.mxu0 %v9057_v40  ;;  %v9068_v20 = vld [vmem:[#allocation17_spill] sm:$0xff] }
 0x18e   :  { %2672 = vmatprep.subr.mxu1 %v9058_v6  ;;  %2453 = vmatpush1.msra.mxu0 %v9060_v56  ;;  %v9069_v43 = vand.u32 4294901760, %v9068_v20  ;;  %v9072_v58 = vld [vmem:[#allocation45_spill] sm:$0xff]  ;;  %v9074_v6 = vld [vmem:[#allocation64_spill] sm:$0xff]  ;;  %v9076_v56 = vand.u32 4294901760, %v9075_v0 }
 0x18f   :  { %2674 = vmatpush1.msra.mxu1 %v9061_v12  ;;  %2457 = vmatprep.subr.mxu0 %v9063_v16  ;;  %v9073_v40 = vand.u32 4294901760, %v9072_v58  ;;  %v9077_v12 = vld [vmem:[#allocation62_spill] sm:$0xff]  ;;  %v9078_v3 = vld [vmem:[#allocation21_spill] sm:$0xff] }
 0x190   :  { %2676 = vmatprep.subr.mxu1 %v9064_v25  ;;  %2461 = vmatpush1.msra.mxu0 %v9066_v50  ;;  %v9079_v16 = vand.u32 4294901760, %v9078_v3  ;;  %v9082_v25 = vld [vmem:[#allocation72_spill] sm:$0xff]  ;;  %v9084_v50 = vand.u32 4294901760, %v9083_v48  ;;  %v9098_v3 = vld [vmem:[#allocation30_spill] sm:$0xff] }
 0x191   :  { %2678 = vmatpush1.msra.mxu1 %v9067_v39  ;;  %2465 = vmatprep.subr.mxu0 %v9069_v43  ;;  %v9085_v39 = vld [vmem:[#allocation51_spill] sm:$0xff]  ;;  %v9087_v43 = vld [vmem:[#allocation76_spill] sm:$0xff] }
 0x192   :  { %2680 = vmatprep.subr.mxu1 %v8975_v36  ;;  %2469 = vmatpush1.msra.mxu0 %v9070_v62  ;;  %v9080_v36 = vld [vmem:[#allocation47_spill] sm:$0xff]  ;;  %v9086_v20 = vand.u32 4294901760, %v9085_v39  ;;  %v9088_v62 = vld [vmem:[#allocation25_spill] sm:$0xff] }
 0x193   :  { %2682 = vmatpush1.msra.mxu1 %v9071_v61  ;;  %2473 = vmatprep.subr.mxu0 %v9073_v40  ;;  %v9081_v27 = vand.u32 4294901760, %v9080_v36  ;;  %v9089_v61 = vand.u32 4294901760, %v9088_v62  ;;  %v9092_v40 = vld [vmem:[#allocation14_spill] sm:$0xff] }
 0x194   :  { %2684 = vmatprep.subr.mxu1 %v9074_v6  ;;  %2477 = vmatpush1.msra.mxu0 %v9076_v56  ;;  %v9093_v6 = vld [vmem:[#allocation61_spill] sm:$0xff]  ;;  %v9095_v56 = vld [vmem:[#allocation16_spill] sm:$0xff] }
 0x195   :  { %2686 = vmatpush1.msra.mxu1 %v9077_v12  ;;  %2481 = vmatprep.subr.mxu0 %v9079_v16  ;;  %v9094_v0 = vand.u32 4294901760, %v9093_v6  ;;  %v9099_v16 = vand.u32 4294901760, %v9098_v3  ;;  %v135_v3 = vld [vmem:[#allocation2 + $0x2f8] sm:$0xff] }
 0x196   :  { %2688 = vmatprep.subr.mxu1 %v8982_v30  ;;  %2485 = vmatpush1.msra.mxu0 %v9081_v27  ;;  %v9090_v30 = vld [vmem:[#allocation55_spill] sm:$0xff]  ;;  %v9102_v27 = vld [vmem:[#allocation18_spill] sm:$0xff] }
 0x197   :  { %2690 = vmatpush1.msra.mxu1 %v9082_v25  ;;  %2489 = vmatprep.subr.mxu0 %v9084_v50  ;;  %v9091_v58 = vand.u32 4294901760, %v9090_v30  ;;  %v9103_v25 = vld [vmem:[#allocation36_spill] sm:$0xff]  ;;  %v9105_v50 = vld [vmem:[#allocation67_spill] sm:$0xff] }
 0x198   :  { %2692 = vmatprep.subr.mxu1 %v5502_v63  ;;  %2493 = vmatpush1.msra.mxu0 %v9086_v20  ;;  %v9096_v63 = vld [vmem:[#allocation59_spill] sm:$0xff]  ;;  %v9104_v48 = vand.u32 4294901760, %v9103_v25  ;;  %v9106_v39 = vand.u32 4294901760, %v9105_v50  ;;  %v9113_v30 = vld [vmem:[#allocation44_spill] sm:$0xff]  ;;  %v9126_v25 = vld [vmem:[#allocation81_spill] sm:$0xff] }
 0x199   :  { %2694 = vmatpush1.msra.mxu1 %v9087_v43  ;;  %2497 = vmatprep.subr.mxu0 %v9089_v61  ;;  %v9097_v12 = vand.u32 4294901760, %v9096_v63  ;;  %v9107_v20 = vld [vmem:[#allocation19_spill] sm:$0xff]  ;;  %v9112_v61 = vld [vmem:[#allocation22_spill] sm:$0xff]  ;;  %v129_v50 = vld [vmem:[#allocation2 + $0x2c8] sm:$0xff] }
 0x19a   :  { %2696 = vmatprep.subr.mxu1 %v8988_v60  ;;  %2501 = vmatpush1.msra.mxu0 %v9091_v58  ;;  %v9100_v60 = vld [vmem:[#allocation63_spill] sm:$0xff]  ;;  %v9114_v58 = vand.u32 4294901760, %v9113_v30 }
 0x19b   :  { %2698 = vmatpush1.msra.mxu1 %v9092_v40  ;;  %2505 = vmatprep.subr.mxu0 %v9094_v0  ;;  %v9101_v36 = vand.u32 4294901760, %v9100_v60  ;;  %v9115_v40 = vld [vmem:[#allocation24_spill] sm:$0xff]  ;;  %v9118_v0 = vld [vmem:[#allocation46_spill] sm:$0xff] }
 0x19c   :  { %2700 = vmatprep.subr.mxu1 %v9095_v56  ;;  %2509 = vmatpush1.msra.mxu0 %v9097_v12  ;;  %v9119_v56 = vand.u32 4294901760, %v9118_v0  ;;  %v9122_v12 = vld [vmem:[#allocation26_spill] sm:$0xff]  ;;  %v6524_v0 = vand.u32 4294901760, %v129_v50 }
 0x19d   :  { %2702 = vmatpush1.msra.mxu1 %v8993_v14  ;;  %2513 = vmatprep.subr.mxu0 %v9099_v16  ;;  %v9108_v14 = vld [vmem:[#allocation38_spill] sm:$0xff]  ;;  %v9123_v16 = vld [vmem:[#allocation87_spill] sm:$0xff] }
 0x19e   :  { %2704 = vmatprep.subr.mxu1 %v8994_v42  ;;  %2517 = vmatpush1.msra.mxu0 %v9101_v36  ;;  %v9109_v43 = vand.u32 4294901760, %v9108_v14  ;;  %v9110_v42 = vld [vmem:[#allocation71_spill] sm:$0xff]  ;;  %v9124_v60 = vand.u32 4294901760, %v9123_v16  ;;  %v9125_v36 = vld [vmem:[#allocation28_spill] sm:$0xff]  ;;  %9136 = vst [vmem:[#allocation52_spill] sm:$0xff] %v6524_v0  ;;  %v111_v16 = vld [vmem:[#allocation2 + $0x238] sm:$0xff] }
 0x19f   :  { %2706 = vmatpush1.msra.mxu1 %v9102_v27  ;;  %2521 = vmatprep.subr.mxu0 %v9104_v48  ;;  %v9111_v62 = vand.u32 4294901760, %v9110_v42  ;;  %v134_v27 = vld [vmem:[#allocation2 + $0x2f0] sm:$0xff]  ;;  %v9127_v48 = vand.u32 4294901760, %v9126_v25 }
 0x1a0   :  { %2708 = vmatprep.subr.mxu1 %v8997_v41  ;;  %2525 = vmatpush1.msra.mxu0 %v9106_v39  ;;  %v9116_v41 = vld [vmem:[#allocation75_spill] sm:$0xff]  ;;  %v9131_v42 = vld [vmem:[#allocation89_spill] sm:$0xff]  ;;  %v6519_v30 = vand.u32 4294901760, %v134_v27 }
 0x1a1   :  { %2710 = vmatpush1.msra.mxu1 %v9107_v20  ;;  %2529 = vmatprep.subr.mxu0 %v9109_v43  ;;  %v9117_v6 = vand.u32 4294901760, %v9116_v41  ;;  %v128_v39 = vld [vmem:[#allocation2 + $0x2c0] sm:$0xff]  ;;  %v9129_v20 = vld [vmem:[#allocation93_spill] sm:$0xff]  ;;  %v6514_v43 = vand.u32 4294901760, %v135_v3 }
 0x1a2   :  { %2712 = vmatprep.subr.mxu1 %v9001_v31  ;;  %2533 = vmatpush2.msra.mxu0 %v9111_v62  ;;  %v9120_v31 = vld [vmem:[#allocation79_spill] sm:$0xff]  ;;  %v9130_v14 = vand.u32 4294901760, %v9129_v20  ;;  %v9132_v62 = vand.u32 4294901760, %v9131_v42  ;;  %v110_v42 = vld [vmem:[#allocation2 + $0x230] sm:$0xff] }
 0x1a3   :  { %2714 = vmatpush1.msra.mxu1 %v9112_v61  ;;  %2537 = vmatprep.subr.mxu0 %v9114_v58  ;;  %v9121_v63 = vand.u32 4294901760, %v9120_v31  ;;  %v9133_v61 = vld [vmem:[#allocation32_spill] sm:$0xff]  ;;  %v122_v58 = vld [vmem:[#allocation2 + $0x290] sm:$0xff]  ;;  %v9134_v41 = vld [vmem:[#allocation103_spill] sm:$0xff] }
 0x1a4   :  { %2716 = vmatprep.subr.mxu1 %v9115_v40  ;;  %2541 = vmatpush2.msra.mxu0 %v9117_v6  ;;  %v117_v40 = vld [vmem:[#allocation2 + $0x268] sm:$0xff]  ;;  %v9135_v6 = vand.u32 4294901760, %v9134_v41  ;;  %v116_v31 = vld [vmem:[#allocation2 + $0x260] sm:$0xff]  ;;  %v6536_v25 = vand.u32 4294901760, %v122_v58  ;;  %v6560_v41 = vsub.f32 %v129_v50, %v6524_v0 }
 0x1a5   :  { %2718 = vmatpush1.msra.mxu1 %v9005_v33  ;;  %2545 = vmatprep.subr.mxu0 %v9119_v56  ;;  %v9128_v33 = vld [vmem:[#allocation27_spill] sm:$0xff]  ;;  %v6526_v56 = vand.u32 4294901760, %v128_v39 }
 0x1a6   :  { %2720 = vmatprep.subr.mxu1 %v9006_v22  ;;  %2549 = vmatpush2.msra.mxu0 %v9121_v63  ;;  %v123_v22 = vld [vmem:[#allocation2 + $0x298] sm:$0xff]  ;;  %9142 = vst [vmem:[#allocation58_spill] sm:$0xff] %v6536_v25  ;;  %9153 = vst [vmem:[#allocation39_spill] sm:$0xff] %v6560_v41 }
 0x1a7   :  { %2722 = vmatpush1.msra.mxu1 %v9122_v12  ;;  %2553 = vmatprep.subr.mxu0 %v9124_v60  ;;  %v9138_v63 = vld [vmem:[#allocation94_spill] sm:$0xff]  ;;  %v9140_v60 = vld [vmem:[#allocation107_spill] sm:$0xff] }
 0x1a8   :  { %2724 = vmatprep.subr.mxu1 %v9125_v36  ;;  %2557 = vmatpush2.msra.mxu0 %v9127_v48  ;;  %v9139_v12 = vand.u32 4294901760, %v9138_v63  ;;  %v9141_v36 = vand.u32 4294901760, %v9140_v60  ;;  %v6541_v48 = vsub.f32 %v135_v3, %v6514_v43  ;;  %v6557_v3 = vand.u32 4294901760, %v111_v16  ;;  %v765_v63 = vpop.f32.mrf.mxu1 }
 0x1a9   :  { %2726 = vmatpush1.msra.mxu1 %v9128_v33  ;;  %2561 = vmatprep.subr.mxu0 %v9130_v14  ;;  %v9145_v33 = vld [vmem:[#allocation101_spill] sm:$0xff]  ;;  %v6549_v14 = vand.u32 4294901760, %v116_v31 }
 0x1aa   :  { %2728 = vmatprep.subr.mxu1 %v9013_v11  ;;  %2565 = vmatpush2.msra.mxu0 %v9132_v62  ;;  %v6528_v11 = vand.u32 4294901760, %v123_v22  ;;  %9144 = vst [vmem:[#allocation68_spill] sm:$0xff] %v6541_v48  ;;  %v9146_v20 = vand.u32 4294901760, %v9145_v33  ;;  %v9149_v62 = vld [vmem:[#allocation111_spill] sm:$0xff]  ;;  %9152 = vst [vmem:[#allocation54_spill] sm:$0xff] %v6557_v3  ;;  %v8210_v50 = vand.u32 4294901760, %v6541_v48  ;;  %v372_v33 = vpop.f32.mrf.mxu0 }
 0x1ab   :  { %2730 = vmatpush2.msra.mxu1 %v9133_v61  ;;  %2569 = vmatprep.subr.mxu0 %v9135_v6  ;;  %9148 = vst [vmem:[#allocation78_spill] sm:$0xff] %v6549_v14  ;;  %v6555_v61 = vsub.f32 %v128_v39, %v6526_v56  ;;  %v6575_v39 = vand.u32 4294901760, %v110_v42 }
 0x1ac   :  { %2732 = vmatprep.subr.mxu1 %v9015_v21  ;;  %9137 = vst [vmem:[#allocation48_spill] sm:$0xff] %v6528_v11  ;;  %2573 = vmatpush2.msra.mxu0 %v9139_v12  ;;  %v6538_v21 = vand.u32 4294901760, %v117_v40  ;;  %v9157_v12 = vld [vmem:[#allocation116_spill] sm:$0xff] }
 0x1ad   :  { %2734 = vmatpush2.msra.mxu1 %v9017_v49  ;;  %2577 = vmatprep.subr.mxu0 %v9141_v36  ;;  %v6547_v49 = vsub.f32 %v134_v27, %v6519_v30  ;;  %9151 = vst [vmem:[#allocation90_spill] sm:$0xff] %v6555_v61  ;;  %v9155_v27 = vld [vmem:[#allocation80_spill] sm:$0xff]  ;;  %v9158_v60 = vand.u32 4294901760, %v9157_v12  ;;  %9160 = vst [vmem:[#allocation15_spill] sm:$0xff] %v6575_v39 }
 0x1ae   :  { %2736 = vmatprep.subr.mxu1 %v9019_v45  ;;  %9143 = vst [vmem:[#allocation60_spill] sm:$0xff] %v6538_v21  ;;  %2581 = vmatpush2.msra.mxu0 %v9146_v20  ;;  %v9150_v45 = vand.u32 4294901760, %v9149_v62  ;;  %v9156_v6 = vand.u32 4294901760, %v9155_v27  ;;  %v6578_v36 = vsub.f32 %v117_v40, %v6538_v21  ;;  %v9162_v20 = vld [vmem:[#allocation112_spill] sm:$0xff]  ;;  %v6584_v62 = vsub.f32 %v116_v31, %v6549_v14 }
 0x1af   :  { %2738 = vmatpush2.msra.mxu1 %v9021_v24  ;;  %9147 = vst [vmem:[#allocation66_spill] sm:$0xff] %v6547_v49  ;;  %v6563_v24 = vsub.f32 %v123_v22, %v6528_v11  ;;  %v104_v22 = vld [vmem:[#allocation2 + $0x200] sm:$0xff]  ;;  %v105_v27 = vld [vmem:[#allocation2 + $0x208] sm:$0xff]  ;;  %v6614_v40 = vadd.f32 %v765_v63, %v372_v33  ;;  %v9179_v63 = vand.u32 4294901760, %v6560_v41 }
 0x1b0   :  { %2585 = vmatprep.subr.mxu0 %v9150_v45  ;;  %2740 = vmatprep.subr.mxu1 %v9022_v17  ;;  %v6572_v17 = vsub.f32 %v122_v58, %v6536_v25  ;;  %9161 = vst [vmem:[#allocation41_spill] sm:$0xff] %v6578_v36  ;;  %9164 = vst [vmem:[#allocation20_spill] sm:$0xff] %v6584_v62  ;;  %v9165_v58 = vld [vmem:[#allocation117_spill] sm:$0xff]  ;;  %v9182_v12 = vld [vmem:[#allocation120_spill] sm:$0xff] }
 0x1b1   :  { %9154 = vst [vmem:[#allocation70_spill] sm:$0xff] %v6563_v24  ;;  %2589 = vmatpush2.msra.mxu0 %v9156_v6  ;;  %2742 = vmatpush2.msra.mxu1 %v9024_v13  ;;  %v9163_v13 = vand.u32 4294901760, %v9162_v20  ;;  %v9166_v45 = vand.u32 4294901760, %v9165_v58  ;;  %v6599_v20 = vand.u32 4294901760, %v104_v22  ;;  %v9171_v58 = vld [vmem:[#allocation119_spill] sm:$0xff]  ;;  %v374_v6 = vpop.f32.mrf.mxu0  ;;  %v6633_v33 = vsub.f32 %v6560_v41, %v9179_v63 }
 0x1b2   :  { %2593 = vmatprep.subr.mxu0 %v9158_v60  ;;  %2744 = vmatprep.subr.mxu1 %v9025_v29  ;;  %9159 = vst [vmem:[#allocation92_spill] sm:$0xff] %v6572_v17  ;;  %v8211_v29 = vand.u32 4294901760, %v6547_v49  ;;  %v6594_v60 = vsub.f32 %v111_v16, %v6557_v3  ;;  %v6610_v16 = vsub.f32 %v110_v42, %v6575_v39  ;;  %v6624_v42 = vand.u32 4294901760, %v105_v27 }
 0x1b3   :  { %2597 = vmatpush2.msra.mxu0 %v9163_v13  ;;  %2746 = vmatpush2.msra.mxu1 %v9026_v28  ;;  %v9168_v28 = vld [vmem:[#allocation114_spill] sm:$0xff]  ;;  %9170 = vst [vmem:[#allocation23_spill] sm:$0xff] %v6599_v20  ;;  %v767_v13 = vpop.f32.mrf.mxu1  ;;  %v9183_v1 = vand.u32 4294901760, %v9182_v12  ;;  %v6652_v63 = vsub.f32 %v104_v22, %v6599_v20  ;;  %v9189_v22 = vand.u32 4294901760, %v6578_v36 }
 0x1b4   :  { %2601 = vmatprep.subr.mxu0 %v9166_v45  ;;  %2748 = vmatprep.subr.mxu1 %v9027_v37  ;;  %9167 = vst [vmem:[#allocation49_spill] sm:$0xff] %v6594_v60  ;;  %v9169_v31 = vand.u32 4294901760, %v9168_v28  ;;  %v9172_v37 = vand.u32 4294901760, %v9171_v58  ;;  %v6607_v45 = vsub.f32 %v6541_v48, %v8210_v50  ;;  %9173 = vst [vmem:[#allocation57_spill] sm:$0xff] %v6610_v16  ;;  %v99_v28 = vld [vmem:[#allocation2 + $0x1d8] sm:$0xff]  ;;  %v92_v50 = vld [vmem:[#allocation2 + $0x1a0] sm:$0xff] }
 0x1b5   :  { %2750 = vmatpush2.msra.mxu1 %v9028_v18  ;;  %v9174_v58 = vld [vmem:[#allocation118_spill] sm:$0xff]  ;;  %9176 = vst [vmem:[#allocation65_spill] sm:$0xff] %v6624_v42  ;;  %v9177_v18 = vld [vmem:[#allocation121_spill] sm:$0xff]  ;;  %9184 = vst [vmem:[#allocation34_spill] sm:$0xff] %v6652_v63  ;;  %v6670_v12 = vsub.f32 %v6578_v36, %v9189_v22  ;;  %v6685_v22 = vsub.f32 %v105_v27, %v6624_v42  ;;  %v1109_v27 = vpop.f32.mrf.mxu1 }
 0x1b6   :  { %2605 = vmatpush2.msra.mxu0 %v9169_v31  ;;  %2752 = vmatprep.subr.mxu1 %v9029_v10  ;;  %v98_v31 = vld [vmem:[#allocation2 + $0x1d0] sm:$0xff]  ;;  %v6622_v10 = vsub.f32 %v6547_v49, %v8211_v29  ;;  %v9178_v46 = vand.u32 4294901760, %v9177_v18  ;;  %v6646_v18 = vadd.f32 %v767_v13, %v374_v6  ;;  %v9188_v13 = vand.u32 4294901760, %v6572_v17  ;;  %v9194_v36 = vld [vmem:[#allocation123_spill] sm:$0xff] }
 0x1b7   :  { %2609 = vmatprep.subr.mxu0 %v9172_v37  ;;  %v9175_v37 = vand.u32 4294901760, %v9174_v58  ;;  %2754 = vmatpush2.msra.mxu1 %v9030_v15  ;;  %v9180_v15 = vand.u32 4294901760, %v6555_v61  ;;  %v6656_v23 = vand.u32 4294901760, %v98_v31 }
 0x1b8   :  { %2756 = vmatprep.subr.mxu1 %v9031_v47  ;;  %v968_v47 = vpop.f32.mrf.mxu0 }
 0x1b9   :  { %2613 = vmatpush2.msra.mxu0 %v9175_v37  ;;  %v6638_v58 = vsub.f32 %v6555_v61, %v9180_v15  ;;  %v9181_v37 = vand.u32 4294901760, %v6563_v24  ;;  %2758 = vmatpush2.msra.mxu1 %v9032_v54  ;;  %v6654_v15 = vand.u32 4294901760, %v99_v28  ;;  %9186 = vst [vmem:[#allocation73_spill] sm:$0xff] %v6656_v23  ;;  %v93_v54 = vld [vmem:[#allocation2 + $0x1a8] sm:$0xff]  ;;  %v9198_v61 = vld [vmem:[#allocation122_spill] sm:$0xff]  ;;  %v969_v48 = vadd.f32 %v968_v47, %v6614_v40 }
 0x1ba   :  { %2617 = vmatprep.subr.mxu0 %v9178_v46  ;;  %2760 = vmatprep.subr.mxu1 %v9033_v5  ;;  %v9195_v46 = vand.u32 4294901760, %v9194_v36  ;;  %v87_v5 = vld [vmem:[#allocation2 + $0x178] sm:$0xff]  ;;  %v9199_v41 = vand.u32 4294901760, %v9198_v61  ;;  %v6704_v36 = vand.u32 4294901760, %v93_v54  ;;  %v9203_v61 = vld [vmem:[#allocation115_spill] sm:$0xff] }
 0x1bb   :  { %v6643_v29 = vsub.f32 %v6563_v24, %v9181_v37  ;;  %2621 = vmatpush2.msra.mxu0 %v9183_v1  ;;  %9185 = vst [vmem:[#allocation69_spill] sm:$0xff] %v6654_v15  ;;  %v9187_v37 = vand.u32 4294901760, %v6164_v55  ;;  %v6665_v1 = vsub.f32 %v6572_v17, %v9188_v13  ;;  %v9190_v55 = vand.u32 4294901760, %v6160_v19  ;;  %2762 = vmatpush2.msra.mxu1 %v9034_v35  ;;  %v86_v17 = vld [vmem:[#allocation2 + $0x170] sm:$0xff] }
 0x1bc   :  { %v9192_v13 = vand.u32 4294901760, %v6584_v62  ;;  %2764 = vmatprep.subr.mxu1 %v9035_v38  ;;  %v9196_v24 = vand.u32 4294901760, %v6594_v60  ;;  %v6702_v38 = vsub.f32 %v98_v31, %v6656_v23  ;;  %9201 = vst [vmem:[#allocation50_spill] sm:$0xff] %v6704_v36  ;;  %v9202_v35 = vand.u32 4294901760, %v6205_v7 }
 0x1bd   :  { %2625 = vmatprep.subr.mxu0 %v9187_v37  ;;  %v6677_v37 = vand.u32 4294901760, %v92_v50  ;;  %2766 = vmatpush2.msra.mxu1 %v9036_v57  ;;  %v6717_v31 = vand.u32 4294901760, %v86_v17  ;;  %v9206_v19 = vand.u32 4294901760, %v6209_v32  ;;  %v6731_v57 = vand.u32 4294901760, %v87_v5 }
 0x1be   :  { %2629 = vmatpush2.msra.mxu0 %v9190_v55  ;;  %v6682_v6 = vsub.f32 %v6584_v62, %v9192_v13  ;;  %v6696_v13 = vsub.f32 %v6594_v60, %v9196_v24  ;;  %v970_v62 = vpop.f32.mrf.mxu0  ;;  %9200 = vst [vmem:[#allocation83_spill] sm:$0xff] %v6702_v38  ;;  %v80_v55 = vld [vmem:[#allocation2 + $0x140] sm:$0xff]  ;;  %v6710_v24 = vsub.f32 %v99_v28, %v6654_v15  ;;  %v9205_v60 = vand.u32 4294901760, %v6610_v16  ;;  %v9207_v28 = vld [vmem:[#allocation113_spill] sm:$0xff] }
 0x1bf   :  { %9191 = vst [vmem:[#allocation40_spill] sm:$0xff] %v6677_v37  ;;  %2633 = vmatprep.subr.mxu0 %v9195_v46  ;;  %v6706_v46 = vld [vmem:[#allocation2 + $0x148] sm:$0xff]  ;;  %2768 = vmatprep.subr.mxu1 %v9203_v61  ;;  %9204 = vst [vmem:[#allocation86_spill] sm:$0xff] %v6717_v31  ;;  %v74_v61 = vld [vmem:[#allocation2 + $0x110] sm:$0xff]  ;;  %v971_v32 = vadd.f32 %v970_v62, %v6646_v18 }
 0x1c0   :  { %9193 = vst [vmem:[#allocation77_spill] sm:$0xff] %v6682_v6  ;;  %9197 = vst [vmem:[#allocation42_spill] sm:$0xff] %v6696_v13  ;;  %2637 = vmatpush2.msra.mxu0 %v9199_v41  ;;  %v6722_v49 = vsub.f32 %v6610_v16, %v9205_v60  ;;  %2770 = vmatpush2.msra.mxu1 %v9207_v28  ;;  %v1374_v7 = vpop.f32.mrf.mxu0  ;;  %v9210_v60 = vand.u32 4294901760, %v6221_v44  ;;  %v75_v28 = vld [vmem:[#allocation2 + $0x118] sm:$0xff]  ;;  %v1111_v16 = vpop.f32.mrf.mxu1  ;;  %v9213_v6 = vld [vmem:[#allocation124_spill] sm:$0xff]  ;;  %v9216_v44 = vand.u32 4294901760, %v6652_v63 }
 0x1c1   :  { %2641 = vmatprep.subr.mxu0 %v9202_v35  ;;  %v6728_v35 = vsub.f32 %v92_v50, %v6677_v37  ;;  %9209 = vst [vmem:[#allocation95_spill] sm:$0xff] %v6731_v57  ;;  %2772 = vmatprep.subr.mxu1 %v6102_v59  ;;  %v6742_v50 = vand.u32 4294901760, %v80_v55  ;;  %v9214_v37 = vand.u32 4294901760, %v9213_v6  ;;  %v9215_v41 = vld [vmem:[#allocation97_spill] sm:$0xff]  ;;  %v1110_v13 = vadd.f32 %v1109_v27, %v969_v48  ;;  %v9218_v6 = vld [vmem:[#allocation99_spill] sm:$0xff] }
 0x1c2   :  { %2645 = vmatpush2.msra.mxu0 %v9206_v19  ;;  %v6740_v19 = vand.u32 4294901760, %v6706_v46  ;;  %2655 = vmatprep.mubr.f32.mxu0 %v9215_v41  ;;  %v6750_v40 = vsub.f32 %v6652_v63, %v9216_v44  ;;  %v1376_v47 = vpop.f32.mrf.mxu0  ;;  %v6771_v48 = vand.u32 4294901760, %v75_v28  ;;  %v68_v62 = vld [vmem:[#allocation2 + $0xe0] sm:$0xff]  ;;  %v1112_v18 = vadd.f32 %v1111_v16, %v971_v32  ;;  %v1511_v44 = vpop.f32.mrf.mxu1 }
 0x1c3   :  { %9208 = vst [vmem:[#allocation85_spill] sm:$0xff] %v6728_v35  ;;  %2649 = vmatprep.subr.mxu0 %v9210_v60  ;;  %9212 = vst [vmem:[#allocation98_spill] sm:$0xff] %v6742_v50  ;;  %v6755_v60 = vsub.f32 %v93_v54, %v6704_v36  ;;  %2774 = vmatpush2.msra.mxu1 %v6093_v34  ;;  %v9220_v54 = vand.u32 4294901760, %v6685_v22  ;;  %v6773_v34 = vand.u32 4294901760, %v74_v61  ;;  %v6800_v63 = vand.u32 4294901760, %v68_v62 }
 0x1c4   :  { %9211 = vst [vmem:[#allocation91_spill] sm:$0xff] %v6740_v19  ;;  %2653 = vmatpush2.msra.mxu0 %v9214_v37  ;;  %v6761_v37 = vsub.f32 %v86_v17, %v6717_v31  ;;  %2776 = vmatprep.subr.mxu1 %v6125_v26  ;;  %9221 = vst [vmem:[#allocation106_spill] sm:$0xff] %v6771_v48  ;;  %v6776_v17 = vsub.f32 %v87_v5, %v6731_v57  ;;  %v9225_v5 = vand.u32 4294901760, %v6710_v24 }
 0x1c5   :  { %9217 = vst [vmem:[#allocation96_spill] sm:$0xff] %v6755_v60  ;;  %2657 = vmatmul.mubr.f32.vlgmr.msra.gmra.mxu0 %v9218_v6  ;;  %2801 = vmatprep.subr.mxu0 %v6514_v43  ;;  %v6769_v59 = vsub.f32 %v6685_v22, %v9220_v54  ;;  %9222 = vst [vmem:[#allocation84_spill] sm:$0xff] %v6773_v34  ;;  %v1375_v27 = vadd.f32 %v1374_v7, %v1110_v13  ;;  %v63_v54 = vld [vmem:[#allocation2 + $0xb8] sm:$0xff] }
 0x1c6   :  { %9219 = vst [vmem:[#allocation82_spill] sm:$0xff] %v6761_v37  ;;  %9223 = vst [vmem:[#allocation110_spill] sm:$0xff] %v6776_v17  ;;  %2778 = vmatpush2.msra.mxu1 %v6128_v9  ;;  %2803 = vmatpush1.msra.mxu0 %v6519_v30  ;;  %v6781_v26 = vsub.f32 %v80_v55, %v6742_v50  ;;  %v6790_v16 = vsub.f32 %v6710_v24, %v9225_v5  ;;  %v9226_v9 = vand.u32 4294901760, %v6702_v38  ;;  %v69_v55 = vld [vmem:[#allocation2 + $0xe8] sm:$0xff] }
 0x1c7   :  { %2780 = vmatprep.subr.mxu1 %v6152_v8  ;;  %2805 = vmatprep.subr.mxu0 %v6524_v0  ;;  %v1377_v32 = vadd.f32 %v1376_v47, %v1112_v18  ;;  %v1512_v8 = vadd.f32 %v1511_v44, %v1375_v27  ;;  %9227 = vst [vmem:[#allocation74_spill] sm:$0xff] %v6800_v63  ;;  %v62_v0 = vld [vmem:[#allocation2 + $0xb0] sm:$0xff]  ;;  %v6816_v27 = vand.u32 4294901760, %v69_v55  ;;  %v6823_v47 = vld [vmem:[#allocation2 + $0x88] sm:$0xff] }
 0x1c8   :  { %9224 = vst [vmem:[#allocation11_spill] sm:$0xff] %v6781_v26  ;;  %v6795_v13 = vsub.f32 %v6702_v38, %v9226_v9  ;;  %2782 = vmatpush2.msra.mxu1 %v6144_v51  ;;  %2807 = vmatpush1.msra.mxu0 %v6526_v56  ;;  %v6804_v5 = vsub.f32 %v6706_v46, %v6740_v19  ;;  %v1513_v9 = vpop.f32.mrf.mxu1 }
 0x1c9   :  { %2784 = vmatprep.subr.mxu1 %v6170_v53  ;;  %2809 = vmatprep.subr.mxu0 %v6528_v11  ;;  %v6810_v51 = vsub.f32 %v74_v61, %v6773_v34  ;;  %4084 = vst [vmem:[#allocation7] sm:$0xff] %v1512_v8  ;;  %v1514_v46 = vadd.f32 %v1513_v9, %v1377_v32  ;;  %9230 = vst [vmem:[#allocation88_spill] sm:$0xff] %v6816_v27  ;;  %v9231_v53 = vand.u32 4294901760, %v6728_v35  ;;  %v56_v61 = vld [vmem:[#allocation2 + $0x80] sm:$0xff] }
 0x1ca   :  { %9228 = vst [vmem:[#allocation29_spill] sm:$0xff] %v6804_v5  ;;  %2786 = vmatpush2.msra.mxu1 %v6180_v4  ;;  %2811 = vmatpush1.msra.mxu0 %v6536_v25  ;;  %v6826_v44 = vsub.f32 %v75_v28, %v6771_v48  ;;  %v9233_v4 = vand.u32 4294901760, %v6755_v60  ;;  %v6835_v8 = vand.u32 4294901760, %v63_v54  ;;  %v6837_v9 = vand.u32 4294901760, %v62_v0 }
 0x1cb   :  { %9229 = vst [vmem:[#allocation12_spill] sm:$0xff] %v6810_v51  ;;  %v6821_v7 = vsub.f32 %v6728_v35, %v9231_v53  ;;  %2788 = vmatprep.subr.mxu1 %v6187_v52  ;;  %2813 = vmatprep.subr.mxu0 %v6538_v21  ;;  %4085 = vst [vmem:[#allocation7 + $0x8] sm:$0xff] %v1514_v46  ;;  %v6845_v18 = vsub.f32 %v68_v62, %v6800_v63  ;;  %v9237_v53 = vand.u32 4294901760, %v6776_v17  ;;  %v50_v35 = vld [vmem:[#allocation2 + $0x50] sm:$0xff]  ;;  %v45_v21 = vld [vmem:[#allocation2 + $0x28] sm:$0xff] }
 0x1cc   :  { %9232 = vst [vmem:[#allocation31_spill] sm:$0xff] %v6826_v44  ;;  %v6833_v32 = vsub.f32 %v6755_v60, %v9233_v4  ;;  %9234 = vst [vmem:[#allocation37_spill] sm:$0xff] %v6835_v8  ;;  %2790 = vmatpush2.msra.mxu1 %v6197_v2  ;;  %2792 = vmatprep.mubr.f32.mxu1 %v9215_v41  ;;  %v9238_v46 = vand.u32 4294901760, %v6761_v37  ;;  %v6861_v28 = vand.u32 4294901760, %v6823_v47  ;;  %v6863_v62 = vand.u32 4294901760, %v56_v61  ;;  %v51_v4 = vld [vmem:[#allocation2 + $0x58] sm:$0xff] }
 0x1cd   :  { %9235 = vst [vmem:[#allocation13_spill] sm:$0xff] %v6837_v9  ;;  %9236 = vst [vmem:[#allocation35_spill] sm:$0xff] %v6845_v18  ;;  %2815 = vmatpush1.msra.mxu0 %v6549_v14  ;;  %2794 = vmatmul.mubr.f32.vlgmr.msra.gmra.mxu1 %v9218_v6  ;;  %v6853_v2 = vsub.f32 %v6776_v17, %v9237_v53  ;;  %v9241_v14 = vand.u32 4294901760, %v6607_v45  ;;  %v9243_v60 = vand.u32 4294901760, %v6622_v10  ;;  %v9247_v17 = vand.u32 4294901760, %v6633_v33 }
 0x1ce   :  { %v6858_v52 = vsub.f32 %v6761_v37, %v9238_v46  ;;  %9239 = vst [vmem:[#allocation33_spill] sm:$0xff] %v6861_v28  ;;  %9240 = vst [vmem:[#allocation17_spill] sm:$0xff] %v6863_v62  ;;  %2817 = vmatprep.subr.mxu0 %v6557_v3  ;;  %v6872_v46 = vsub.f32 %v69_v55, %v6816_v27  ;;  %v44_v37 = vld [vmem:[#allocation2 + $0x20] sm:$0xff]  ;;  %v6879_v45 = vsub.f32 %v62_v0, %v6837_v9 }
 0x1cf   :  { %2950 = vmatprep.subr.mxu1 %v9241_v14  ;;  %2819 = vmatpush1.msra.mxu0 %v6575_v39  ;;  %v9245_v14 = vand.u32 4294901760, %v6781_v26  ;;  %v6887_v55 = vsub.f32 %v63_v54, %v6835_v8  ;;  %v9248_v10 = vand.u32 4294901760, %v6804_v5  ;;  %v6897_v0 = vand.u32 4294901760, %v51_v4  ;;  %v218_v39 = vld [vmem:[#allocation2 + $0x590] sm:$0xff] }
 0x1d0   :  { %9242 = vst [vmem:[#allocation56_spill] sm:$0xff] %v6872_v46  ;;  %2956 = vmatpush1.msra.mxu1 %v9243_v60  ;;  %9244 = vst [vmem:[#allocation45_spill] sm:$0xff] %v6879_v45  ;;  %2821 = vmatprep.subr.mxu0 %v6624_v42  ;;  %v6899_v3 = vand.u32 4294901760, %v50_v35  ;;  %v9251_v54 = vand.u32 4294901760, %v6638_v58  ;;  %v9254_v42 = vand.u32 4294901760, %v6643_v29  ;;  %v9256_v58 = vand.u32 4294901760, %v6810_v51 }
 0x1d1   :  { %v6884_v53 = vsub.f32 %v6781_v26, %v9245_v14  ;;  %9246 = vst [vmem:[#allocation64_spill] sm:$0xff] %v6887_v55  ;;  %2962 = vmatprep.subr.mxu1 %v9247_v17  ;;  %v6895_v60 = vsub.f32 %v6804_v5, %v9248_v10  ;;  %9249 = vst [vmem:[#allocation43_spill] sm:$0xff] %v6897_v0  ;;  %2823 = vmatpush1.msra.mxu0 %v6599_v20  ;;  %v6910_v10 = vand.u32 4294901760, %v44_v37  ;;  %v231_v26 = vld [vmem:[#allocation2 + $0x5f8] sm:$0xff]  ;;  %v230_v5 = vld [vmem:[#allocation2 + $0x5f0] sm:$0xff] }
 0x1d2   :  { %9250 = vst [vmem:[#allocation62_spill] sm:$0xff] %v6899_v3  ;;  %2968 = vmatpush1.msra.mxu1 %v9251_v54  ;;  %v6908_v17 = vsub.f32 %v56_v61, %v6863_v62  ;;  %2825 = vmatprep.subr.mxu0 %v6654_v15  ;;  %v9255_v14 = vand.u32 4294901760, %v6826_v44  ;;  %v6923_v54 = vsub.f32 %v6810_v51, %v9256_v58  ;;  %v6925_v33 = vand.u32 4294901760, %v45_v21  ;;  %v224_v51 = vld [vmem:[#allocation2 + $0x5c0] sm:$0xff] }
 0x1d3   :  { %9253 = vst [vmem:[#allocation47_spill] sm:$0xff] %v6910_v10  ;;  %2974 = vmatprep.subr.mxu1 %v9254_v42  ;;  %2827 = vmatpush1.msra.mxu0 %v6656_v23  ;;  %v9258_v29 = vand.u32 4294901760, %v6665_v1  ;;  %v6936_v58 = vsub.f32 %v6823_v47, %v6861_v28  ;;  %v9260_v61 = vand.u32 4294901760, %v6670_v12  ;;  %v6943_v1 = vsub.f32 %v50_v35, %v6899_v3  ;;  %v9264_v47 = vld [vmem:[#allocation40_spill] sm:$0xff] }
 0x1d4   :  { %9252 = vst [vmem:[#allocation21_spill] sm:$0xff] %v6908_v17  ;;  %v6918_v20 = vsub.f32 %v6826_v44, %v9255_v14  ;;  %9257 = vst [vmem:[#allocation72_spill] sm:$0xff] %v6925_v33  ;;  %2829 = vmatprep.subr.mxu0 %v6704_v36  ;;  %v6951_v15 = vsub.f32 %v51_v4, %v6897_v0  ;;  %v9265_v14 = vld [vmem:[#allocation77_spill] sm:$0xff]  ;;  %v6957_v12 = vsub.f32 %v44_v37, %v6910_v10  ;;  %v225_v23 = vld [vmem:[#allocation2 + $0x5c8] sm:$0xff] }
 0x1d5   :  { %2980 = vmatpush1.msra.mxu1 %v9258_v29  ;;  %9259 = vst [vmem:[#allocation53_spill] sm:$0xff] %v6936_v58  ;;  %9261 = vst [vmem:[#allocation51_spill] sm:$0xff] %v6943_v1  ;;  %v9262_v29 = vand.u32 4294901760, %v6845_v18  ;;  %2831 = vmatpush1.msra.mxu0 %v9264_v47  ;;  %v9266_v36 = vand.u32 4294901760, %v9265_v14  ;;  %v6961_v35 = vand.u32 4294901760, %v230_v5  ;;  %v9274_v44 = vand.u32 4294901760, %v6722_v49 }
 0x1d6   :  { %2986 = vmatprep.subr.mxu1 %v9260_v61  ;;  %9263 = vst [vmem:[#allocation76_spill] sm:$0xff] %v6951_v15  ;;  %9267 = vst [vmem:[#allocation25_spill] sm:$0xff] %v6957_v12  ;;  %v6959_v61 = vand.u32 4294901760, %v231_v26  ;;  %2833 = vmatprep.subr.mxu0 %v6731_v57  ;;  %v9276_v14 = vand.u32 4294901760, %v6879_v45  ;;  %v219_v57 = vld [vmem:[#allocation2 + $0x598] sm:$0xff]  ;;  %v9278_v49 = vand.u32 4294901760, %v6769_v59 }
 0x1d7   :  { %v6948_v42 = vsub.f32 %v6845_v18, %v9262_v29  ;;  %2992 = vmatpush1.msra.mxu1 %v9266_v36  ;;  %9269 = vst [vmem:[#allocation14_spill] sm:$0xff] %v6961_v35  ;;  %v9270_v29 = vld [vmem:[#allocation42_spill] sm:$0xff]  ;;  %v9272_v36 = vand.u32 4294901760, %v6872_v46  ;;  %v6974_v18 = vand.u32 4294901760, %v224_v51  ;;  %2835 = vmatpush1.msra.mxu0 %v6717_v31 }
 0x1d8   :  { %9268 = vst [vmem:[#allocation55_spill] sm:$0xff] %v6959_v61  ;;  %v9271_v4 = vand.u32 4294901760, %v9270_v29  ;;  %v9275_v29 = vand.u32 4294901760, %v6887_v55  ;;  %v6987_v47 = vsub.f32 %v6879_v45, %v9276_v14  ;;  %2837 = vmatprep.subr.mxu0 %v6740_v19  ;;  %v9282_v19 = vand.u32 4294901760, %v6908_v17  ;;  %v212_v45 = vld [vmem:[#allocation2 + $0x560] sm:$0xff]  ;;  %3330 = vmatprep.mubr.f32.mxu1 %v9215_v41 }
 0x1d9   :  { %v6972_v37 = vsub.f32 %v6872_v46, %v9272_v36  ;;  %9273 = vst [vmem:[#allocation61_spill] sm:$0xff] %v6974_v18  ;;  %v6991_v46 = vsub.f32 %v45_v21, %v6925_v33  ;;  %2839 = vmatpush1.msra.mxu0 %v6742_v50  ;;  %v9280_v36 = vand.u32 4294901760, %v6750_v40  ;;  %v7005_v21 = vsub.f32 %v230_v5, %v6961_v35  ;;  %v207_v5 = vld [vmem:[#allocation2 + $0x538] sm:$0xff]  ;;  %v9402_v41 = vld [vmem:[#allocation15_spill] sm:$0xff] }
 0x1da   :  { %2998 = vmatprep.subr.mxu1 %v9271_v4  ;;  %v6982_v4 = vsub.f32 %v6887_v55, %v9275_v29  ;;  %v6997_v29 = vand.u32 4294901760, %v225_v23  ;;  %v7010_v59 = vsub.f32 %v6908_v17, %v9282_v19  ;;  %v7015_v31 = vsub.f32 %v231_v26, %v6959_v61  ;;  %2841 = vmatprep.subr.mxu0 %v6771_v48  ;;  %v206_v17 = vld [vmem:[#allocation2 + $0x530] sm:$0xff] }
 0x1db   :  { %3004 = vmatpush1.msra.mxu1 %v9274_v44  ;;  %9277 = vst [vmem:[#allocation16_spill] sm:$0xff] %v6991_v46  ;;  %9281 = vst [vmem:[#allocation30_spill] sm:$0xff] %v7005_v21  ;;  %v213_v44 = vld [vmem:[#allocation2 + $0x568] sm:$0xff]  ;;  %v9285_v40 = vand.u32 4294901760, %v6790_v16  ;;  %v7024_v14 = vand.u32 4294901760, %v219_v57  ;;  %2843 = vmatpush1.msra.mxu0 %v6773_v34  ;;  %v9288_v50 = vand.u32 4294901760, %v6795_v13 }
 0x1dc   :  { %3010 = vmatprep.subr.mxu1 %v9278_v49  ;;  %9279 = vst [vmem:[#allocation59_spill] sm:$0xff] %v6997_v29  ;;  %v7012_v49 = vand.u32 4294901760, %v218_v39  ;;  %9284 = vst [vmem:[#allocation18_spill] sm:$0xff] %v7015_v31  ;;  %v9289_v16 = vand.u32 4294901760, %v6936_v58  ;;  %2845 = vmatprep.subr.mxu0 %v6816_v27  ;;  %v9290_v19 = vand.u32 4294901760, %v6833_v32  ;;  %v9292_v48 = vand.u32 4294901760, %v6943_v1 }
 0x1dd   :  { %3016 = vmatpush1.msra.mxu1 %v9280_v36  ;;  %v7022_v36 = vsub.f32 %v224_v51, %v6974_v18  ;;  %9287 = vst [vmem:[#allocation67_spill] sm:$0xff] %v7024_v14  ;;  %v7053_v51 = vand.u32 4294901760, %v212_v45  ;;  %2847 = vmatpush1.msra.mxu0 %v6800_v63  ;;  %v9295_v27 = vand.u32 4294901760, %v6821_v7  ;;  %v7064_v34 = vsub.f32 %v225_v23, %v6997_v29 }
 0x1de   :  { %9283 = vst [vmem:[#allocation63_spill] sm:$0xff] %v7012_v49  ;;  %3022 = vmatprep.subr.mxu1 %v9285_v40  ;;  %v7035_v40 = vsub.f32 %v6936_v58, %v9289_v16  ;;  %v7049_v26 = vsub.f32 %v6943_v1, %v9292_v48  ;;  %v7051_v16 = vand.u32 4294901760, %v213_v44  ;;  %v200_v48 = vld [vmem:[#allocation2 + $0x500] sm:$0xff]  ;;  %2849 = vmatprep.subr.mxu0 %v6835_v8  ;;  %v9298_v1 = vand.u32 4294901760, %v6853_v2 }
 0x1df   :  { %9286 = vst [vmem:[#allocation36_spill] sm:$0xff] %v7022_v36  ;;  %3028 = vmatpush1.msra.mxu1 %v9288_v50  ;;  %v9291_v50 = vand.u32 4294901760, %v6951_v15  ;;  %9294 = vst [vmem:[#allocation38_spill] sm:$0xff] %v7053_v51  ;;  %v9299_v63 = vand.u32 4294901760, %v6957_v12  ;;  %2851 = vmatpush1.msra.mxu0 %v6837_v9  ;;  %v9302_v23 = vand.u32 4294901760, %v6858_v52  ;;  %v9305_v32 = vand.u32 4294901760, %v6895_v60 }
 0x1e0   :  { %3034 = vmatprep.subr.mxu1 %v9290_v19  ;;  %9293 = vst [vmem:[#allocation19_spill] sm:$0xff] %v7051_v16  ;;  %v7060_v19 = vsub.f32 %v218_v39, %v7012_v49  ;;  %9297 = vst [vmem:[#allocation22_spill] sm:$0xff] %v7064_v34  ;;  %v7076_v39 = vand.u32 4294901760, %v206_v17  ;;  %v3105_v2 = vand.u32 4294901760, %v7035_v40  ;;  %2853 = vmatprep.subr.mxu0 %v6861_v28  ;;  %v7100_v9 = vand.u32 4294901760, %v200_v48  ;;  %v194_v52 = vld [vmem:[#allocation2 + $0x4d0] sm:$0xff] }
 0x1e1   :  { %v7044_v13 = vsub.f32 %v6951_v15, %v9291_v50  ;;  %3040 = vmatpush1.msra.mxu1 %v9295_v27  ;;  %v7072_v7 = vsub.f32 %v6957_v12, %v9299_v63  ;;  %v7074_v27 = vand.u32 4294901760, %v207_v5  ;;  %v201_v50 = vld [vmem:[#allocation2 + $0x508] sm:$0xff]  ;;  %v7090_v12 = vsub.f32 %v219_v57, %v7024_v14  ;;  %2855 = vmatpush1.msra.mxu0 %v6863_v62 }
 0x1e2   :  { %9296 = vst [vmem:[#allocation71_spill] sm:$0xff] %v7060_v19  ;;  %3046 = vmatprep.subr.mxu1 %v9298_v1  ;;  %9301 = vst [vmem:[#allocation24_spill] sm:$0xff] %v7076_v39  ;;  %v9303_v1 = vand.u32 4294901760, %v6991_v46  ;;  %v7098_v40 = vsub.f32 %v212_v45, %v7053_v51  ;;  %v9309_v57 = vand.u32 4294901760, %v7015_v31  ;;  %v7110_v60 = vand.u32 4294901760, %v201_v50  ;;  %2857 = vmatprep.subr.mxu0 %v6897_v0  ;;  %v189_v0 = vld [vmem:[#allocation2 + $0x4a8] sm:$0xff] }
 0x1e3   :  { %9300 = vst [vmem:[#allocation44_spill] sm:$0xff] %v7074_v27  ;;  %3052 = vmatpush1.msra.mxu1 %v9302_v23  ;;  %9304 = vst [vmem:[#allocation75_spill] sm:$0xff] %v7090_v12  ;;  %v195_v23 = vld [vmem:[#allocation2 + $0x4d8] sm:$0xff]  ;;  %v7114_v45 = vsub.f32 %v213_v44, %v7051_v16  ;;  %v9312_v62 = vand.u32 4294901760, %v6918_v20  ;;  %2859 = vmatpush1.msra.mxu0 %v6899_v3  ;;  %v9316_v44 = vand.u32 4294901760, %v6923_v54  ;;  %v182_v3 = vld [vmem:[#allocation2 + $0x470] sm:$0xff] }
 0x1e4   :  { %v7086_v8 = vsub.f32 %v6991_v46, %v9303_v1  ;;  %3058 = vmatprep.subr.mxu1 %v9305_v32  ;;  %9306 = vst [vmem:[#allocation46_spill] sm:$0xff] %v7098_v40  ;;  %9307 = vst [vmem:[#allocation79_spill] sm:$0xff] %v7100_v9  ;;  %v9308_v1 = vand.u32 4294901760, %v6884_v53  ;;  %v7108_v63 = vsub.f32 %v7015_v31, %v9309_v57  ;;  %v9314_v57 = vand.u32 4294901760, %v7005_v21 }
 0x1e5   :  { %9310 = vst [vmem:[#allocation26_spill] sm:$0xff] %v7110_v60  ;;  %9311 = vst [vmem:[#allocation87_spill] sm:$0xff] %v7114_v45  ;;  %v7129_v32 = vsub.f32 %v207_v5, %v7074_v27  ;;  %2861 = vmatprep.subr.mxu0 %v6925_v33  ;;  %v9318_v5 = vand.u32 4294901760, %v6972_v37  ;;  %v7146_v54 = vsub.f32 %v200_v48, %v7100_v9  ;;  %v9323_v33 = vand.u32 4294901760, %v7064_v34 }
 0x1e6   :  { %3064 = vmatpush1.msra.mxu1 %v9308_v1  ;;  %v7121_v1 = vsub.f32 %v206_v17, %v7076_v39  ;;  %v7126_v28 = vsub.f32 %v7005_v21, %v9314_v57  ;;  %v3129_v20 = vand.u32 4294901760, %v7086_v8  ;;  %v188_v21 = vld [vmem:[#allocation2 + $0x4a0] sm:$0xff]  ;;  %v7148_v8 = vand.u32 4294901760, %v195_v23  ;;  %2863 = vmatpush1.msra.mxu0 %v6910_v10 }
 0x1e7   :  { %3070 = vmatprep.subr.mxu1 %v9312_v62  ;;  %9315 = vst [vmem:[#allocation81_spill] sm:$0xff] %v7129_v32  ;;  %v9317_v62 = vand.u32 4294901760, %v7022_v36  ;;  %9319 = vst [vmem:[#allocation27_spill] sm:$0xff] %v7146_v54  ;;  %v9322_v57 = vand.u32 4294901760, %v6948_v42  ;;  %v3141_v53 = vand.u32 4294901760, %v7108_v63  ;;  %v7160_v37 = vsub.f32 %v7064_v34, %v9323_v33  ;;  %2865 = vmatprep.subr.mxu0 %v6959_v61 }
 0x1e8   :  { %9313 = vst [vmem:[#allocation28_spill] sm:$0xff] %v7121_v1  ;;  %3076 = vmatpush1.msra.mxu1 %v9316_v44  ;;  %9320 = vst [vmem:[#allocation93_spill] sm:$0xff] %v7148_v8  ;;  %v7150_v44 = vand.u32 4294901760, %v194_v52  ;;  %v3147_v42 = vand.u32 4294901760, %v7126_v28  ;;  %v7170_v63 = vand.u32 4294901760, %v189_v0  ;;  %2867 = vmatpush2.msra.mxu0 %v6961_v35  ;;  %v9328_v48 = vand.u32 4294901760, %v6987_v47 }
 0x1e9   :  { %v7138_v17 = vsub.f32 %v7022_v36, %v9317_v62  ;;  %3082 = vmatprep.subr.mxu1 %v9318_v5  ;;  %v183_v5 = vld [vmem:[#allocation2 + $0x478] sm:$0xff]  ;;  %v7164_v36 = vsub.f32 %v201_v50, %v7110_v60  ;;  %v9325_v62 = vand.u32 4294901760, %v6982_v4  ;;  %v9329_v61 = vand.u32 4294901760, %v7090_v12  ;;  %2869 = vmatprep.subr.mxu0 %v6997_v29  ;;  %v177_v35 = vld [vmem:[#allocation2 + $0x448] sm:$0xff] }
 0x1ea   :  { %9321 = vst [vmem:[#allocation89_spill] sm:$0xff] %v7150_v44  ;;  %3088 = vmatpush1.msra.mxu1 %v9322_v57  ;;  %9326 = vst [vmem:[#allocation103_spill] sm:$0xff] %v7170_v63  ;;  %v7172_v57 = vand.u32 4294901760, %v188_v21  ;;  %v9330_v28 = vand.u32 4294901760, %v7060_v19  ;;  %v7192_v47 = vsub.f32 %v194_v52, %v7150_v44  ;;  %v7201_v33 = vand.u32 4294901760, %v182_v3  ;;  %2871 = vmatpush2.msra.mxu0 %v6974_v18  ;;  %v171_v18 = vld [vmem:[#allocation2 + $0x418] sm:$0xff] }
 0x1eb   :  { %9324 = vst [vmem:[#allocation32_spill] sm:$0xff] %v7164_v36  ;;  %3094 = vmatprep.subr.mxu1 %v9325_v62  ;;  %v7182_v4 = vsub.f32 %v7090_v12, %v9329_v61  ;;  %v7199_v61 = vand.u32 4294901760, %v183_v5  ;;  %v9336_v52 = vand.u32 4294901760, %v7114_v45  ;;  %v7214_v29 = vsub.f32 %v195_v23, %v7148_v8  ;;  %2873 = vmatprep.subr.mxu0 %v7024_v14 }
 0x1ec   :  { %9327 = vst [vmem:[#allocation94_spill] sm:$0xff] %v7172_v57  ;;  %3100 = vmatpush1.msra.mxu1 %v9328_v48  ;;  %v7187_v62 = vsub.f32 %v7060_v19, %v9330_v28  ;;  %9331 = vst [vmem:[#allocation107_spill] sm:$0xff] %v7192_v47  ;;  %v9332_v48 = vand.u32 4294901760, %v7098_v40  ;;  %v9335_v28 = vand.u32 4294901760, %v7010_v59  ;;  %v7220_v59 = vsub.f32 %v188_v21, %v7172_v57 }
 0x1ed   :  { %3106 = vmatprep.subr.mxu1 %v3105_v2  ;;  %9333 = vst [vmem:[#allocation101_spill] sm:$0xff] %v7199_v61  ;;  %9334 = vst [vmem:[#allocation111_spill] sm:$0xff] %v7201_v33  ;;  %v3153_v2 = vand.u32 4294901760, %v7160_v37  ;;  %v7210_v10 = vsub.f32 %v7114_v45, %v9336_v52  ;;  %v9340_v37 = vand.u32 4294901760, %v7129_v32  ;;  %v176_v52 = vld [vmem:[#allocation2 + $0x440] sm:$0xff]  ;;  %2875 = vmatpush2.msra.mxu0 %v7012_v49  ;;  %v9342_v23 = vand.u32 4294901760, %v7049_v26 }
 0x1ee   :  { %v7197_v50 = vsub.f32 %v7098_v40, %v9332_v48  ;;  %3112 = vmatpush1.msra.mxu1 %v9335_v28  ;;  %9337 = vst [vmem:[#allocation80_spill] sm:$0xff] %v7214_v29  ;;  %v9338_v40 = vand.u32 4294901760, %v7044_v13  ;;  %9339 = vst [vmem:[#allocation116_spill] sm:$0xff] %v7220_v59  ;;  %v7229_v48 = vsub.f32 %v189_v0, %v7170_v63  ;;  %v3165_v13 = vand.u32 4294901760, %v7182_v4 }
 0x1ef   :  { %v7225_v28 = vsub.f32 %v7129_v32, %v9340_v37  ;;  %v3171_v21 = vand.u32 4294901760, %v7187_v62  ;;  %v7241_v14 = vand.u32 4294901760, %v177_v35  ;;  %2877 = vmatprep.subr.mxu0 %v7051_v16  ;;  %v7246_v26 = vsub.f32 %v182_v3, %v7201_v33  ;;  %v164_v62 = vld [vmem:[#allocation2 + $0x3e0] sm:$0xff] }
 0x1f0   :  { %3118 = vmatprep.subr.mxu1 %v9338_v40  ;;  %9341 = vst [vmem:[#allocation112_spill] sm:$0xff] %v7229_v48  ;;  %v9343_v40 = vand.u32 4294901760, %v7121_v1  ;;  %v3183_v0 = vand.u32 4294901760, %v7197_v50  ;;  %v7250_v49 = vsub.f32 %v183_v5, %v7199_v61  ;;  %2879 = vmatpush2.msra.mxu0 %v7053_v51  ;;  %v3177_v16 = vand.u32 4294901760, %v7210_v10  ;;  %v158_v51 = vld [vmem:[#allocation2 + $0x3b0] sm:$0xff] }
 0x1f1   :  { %3124 = vmatpush1.msra.mxu1 %v9342_v23  ;;  %9344 = vst [vmem:[#allocation117_spill] sm:$0xff] %v7246_v26  ;;  %v170_v23 = vld [vmem:[#allocation2 + $0x410] sm:$0xff]  ;;  %v7261_v3 = vand.u32 4294901760, %v176_v52  ;;  %2881 = vmatprep.subr.mxu0 %v7074_v27  ;;  %v3189_v5 = vand.u32 4294901760, %v7225_v28  ;;  %v7271_v10 = vand.u32 4294901760, %v171_v18  ;;  %v159_v27 = vld [vmem:[#allocation2 + $0x3b8] sm:$0xff] }
 0x1f2   :  { %v7239_v37 = vsub.f32 %v7121_v1, %v9343_v40  ;;  %3130 = vmatprep.subr.mxu1 %v3129_v20  ;;  %9345 = vst [vmem:[#allocation114_spill] sm:$0xff] %v7250_v49  ;;  %v9346_v40 = vand.u32 4294901760, %v7072_v7  ;;  %v9347_v20 = vand.u32 4294901760, %v7164_v36  ;;  %v165_v1 = vld [vmem:[#allocation2 + $0x3e8] sm:$0xff]  ;;  %v9349_v7 = vand.u32 4294901760, %v7146_v54  ;;  %2883 = vmatpush2.msra.mxu0 %v7076_v39 }
 0x1f3   :  { %9348 = vst [vmem:[#allocation119_spill] sm:$0xff] %v7261_v3  ;;  %9350 = vst [vmem:[#allocation118_spill] sm:$0xff] %v7271_v10  ;;  %2885 = vmatprep.subr.mxu0 %v7110_v60  ;;  %v9354_v28 = vand.u32 4294901760, %v7138_v17 }
 0x1f4   :  { %3136 = vmatpush1.msra.mxu1 %v9346_v40  ;;  %v7259_v50 = vsub.f32 %v7164_v36, %v9347_v20  ;;  %v7269_v40 = vsub.f32 %v7146_v54, %v9349_v7  ;;  %v3195_v4 = vand.u32 4294901760, %v7239_v37  ;;  %v7276_v36 = vand.u32 4294901760, %v170_v23  ;;  %2887 = vmatpush2.msra.mxu0 %v7100_v9  ;;  %v152_v9 = vld [vmem:[#allocation2 + $0x380] sm:$0xff] }
 0x1f5   :  { %3142 = vmatprep.subr.mxu1 %v3141_v53  ;;  %v7278_v53 = vand.u32 4294901760, %v164_v62  ;;  %v9352_v7 = vand.u32 4294901760, %v7192_v47  ;;  %v7287_v54 = vand.u32 4294901760, %v165_v1  ;;  %v7291_v37 = vsub.f32 %v177_v35, %v7241_v14  ;;  %2889 = vmatprep.subr.mxu0 %v7148_v8 }
 0x1f6   :  { %3148 = vmatpush2.msra.mxu1 %v3147_v42  ;;  %9351 = vst [vmem:[#allocation121_spill] sm:$0xff] %v7276_v36  ;;  %v3201_v60 = vand.u32 4294901760, %v7259_v50  ;;  %v3207_v35 = vand.u32 4294901760, %v7269_v40  ;;  %v9357_v42 = vand.u32 4294901760, %v7229_v48  ;;  %v7312_v50 = vand.u32 4294901760, %v159_v27  ;;  %2891 = vmatpush2.msra.mxu0 %v7150_v44 }
 0x1f7   :  { %3154 = vmatprep.subr.mxu1 %v3153_v2  ;;  %v7285_v20 = vsub.f32 %v7192_v47, %v9352_v7  ;;  %9353 = vst [vmem:[#allocation120_spill] sm:$0xff] %v7291_v37  ;;  %v7298_v2 = vsub.f32 %v176_v52, %v7261_v3  ;;  %v9356_v7 = vand.u32 4294901760, %v7214_v29  ;;  %v7303_v47 = vand.u32 4294901760, %v158_v51  ;;  %v153_v52 = vld [vmem:[#allocation2 + $0x388] sm:$0xff]  ;;  %2893 = vmatprep.subr.mxu0 %v7170_v63  ;;  %v146_v63 = vld [vmem:[#allocation2 + $0x350] sm:$0xff] }
 0x1f8   :  { %3160 = vmatpush2.msra.mxu1 %v9354_v28  ;;  %v7310_v17 = vsub.f32 %v7229_v48, %v9357_v42  ;;  %v7315_v28 = vsub.f32 %v171_v18, %v7271_v10  ;;  %v9360_v40 = vand.u32 4294901760, %v7220_v59  ;;  %v7335_v48 = vsub.f32 %v165_v1, %v7287_v54  ;;  %2895 = vmatpush2.msra.mxu0 %v7172_v57  ;;  %v141_v57 = vld [vmem:[#allocation2 + $0x328] sm:$0xff] }
 0x1f9   :  { %9355 = vst [vmem:[#allocation123_spill] sm:$0xff] %v7298_v2  ;;  %v3212_v39 = vsub.f32 %v7214_v29, %v9356_v7  ;;  %3166 = vmatprep.subr.mxu1 %v3165_v13  ;;  %v7319_v7 = vsub.f32 %v170_v23, %v7276_v36  ;;  %v7322_v13 = vsub.f32 %v164_v62, %v7278_v53  ;;  %v3219_v18 = vand.u32 4294901760, %v7285_v20  ;;  %v147_v62 = vld [vmem:[#allocation2 + $0x358] sm:$0xff] }
 0x1fa   :  { %9358 = vst [vmem:[#allocation122_spill] sm:$0xff] %v7315_v28  ;;  %3172 = vmatpush2.msra.mxu1 %v3171_v21  ;;  %v3230_v42 = vsub.f32 %v7220_v59, %v9360_v40  ;;  %v9361_v21 = vand.u32 4294901760, %v7250_v49  ;;  %9362 = vst [vmem:[#allocation113_spill] sm:$0xff] %v7335_v48  ;;  %v7339_v8 = vsub.f32 %v158_v51, %v7303_v47  ;;  %2897 = vmatprep.subr.mxu0 %v7199_v61 }
 0x1fb   :  { %9359 = vst [vmem:[#allocation115_spill] sm:$0xff] %v7322_v13  ;;  %3178 = vmatprep.subr.mxu1 %v3177_v16  ;;  %v3213_v40 = vand.u32 4294901760, %v3212_v39  ;;  %v7341_v16 = vand.u32 4294901760, %v153_v52  ;;  %v7346_v44 = vand.u32 4294901760, %v152_v9  ;;  %v7350_v39 = vsub.f32 %v159_v27, %v7312_v50  ;;  %2899 = vmatpush2.msra.mxu0 %v7201_v33 }
 0x1fc   :  { %v3236_v23 = vsub.f32 %v7250_v49, %v9361_v21  ;;  %3184 = vmatpush2.msra.mxu1 %v3183_v0  ;;  %v3225_v21 = vand.u32 4294901760, %v7310_v17  ;;  %v3231_v51 = vand.u32 4294901760, %v3230_v42  ;;  %v9364_v0 = vand.u32 4294901760, %v7246_v26  ;;  %v140_v17 = vld [vmem:[#allocation2 + $0x320] sm:$0xff]  ;;  %2901 = vmatprep.subr.mxu0 %v7241_v14 }
 0x1fd   :  { %3190 = vmatprep.subr.mxu1 %v3189_v5  ;;  %9363 = vst [vmem:[#allocation124_spill] sm:$0xff] %v7350_v39  ;;  %v7356_v61 = vand.u32 4294901760, %v147_v62  ;;  %v9365_v27 = vand.u32 4294901760, %v7291_v37  ;;  %v7363_v33 = vand.u32 4294901760, %v146_v63  ;;  %2903 = vmatpush2.msra.mxu0 %v7261_v3  ;;  %v9366_v42 = vand.u32 4294901760, %v7298_v2 }
 0x1fe   :  { %3196 = vmatpush2.msra.mxu1 %v3195_v4  ;;  %v3242_v20 = vsub.f32 %v7246_v26, %v9364_v0  ;;  %v3237_v1 = vand.u32 4294901760, %v3236_v23  ;;  %v7370_v5 = vand.u32 4294901760, %v141_v57  ;;  %v7374_v23 = vsub.f32 %v153_v52, %v7341_v16  ;;  %2905 = vmatprep.subr.mxu0 %v7271_v10 }
 0x1ff   :  { %3202 = vmatprep.subr.mxu1 %v3201_v60  ;;  %v3248_v49 = vsub.f32 %v7291_v37, %v9365_v27  ;;  %v3254_v0 = vsub.f32 %v7298_v2, %v9366_v42  ;;  %v7378_v27 = vsub.f32 %v152_v9, %v7346_v44  ;;  %v9370_v4 = vand.u32 4294901760, %v7315_v28  ;;  %2907 = vmatpush2.msra.mxu0 %v7276_v36 }
 0x200   :  { %3208 = vmatpush2.msra.mxu1 %v3207_v35  ;;  %9367 = vst [vmem:[#allocation77_spill] sm:$0xff] %v7370_v5  ;;  %9368 = vst [vmem:[#allocation42_spill] sm:$0xff] %v7374_v23  ;;  %v7383_v3 = vand.u32 4294901760, %v140_v17  ;;  %v3243_v60 = vand.u32 4294901760, %v3242_v20  ;;  %v9372_v52 = vand.u32 4294901760, %v7319_v7  ;;  %2909 = vmatprep.subr.mxu0 %v7287_v54  ;;  %v9373_v42 = vand.u32 4294901760, %v7335_v48 }
 0x201   :  { %3214 = vmatprep.subr.mxu1 %v3213_v40  ;;  %9369 = vst [vmem:[#allocation125_spill] sm:$0xff] %v7378_v27  ;;  %v3260_v35 = vsub.f32 %v7315_v28, %v9370_v4  ;;  %v7391_v40 = vsub.f32 %v147_v62, %v7356_v61  ;;  %v3249_v9 = vand.u32 4294901760, %v3248_v49  ;;  %v7395_v4 = vsub.f32 %v146_v63, %v7363_v33 }
 0x202   :  { %9371 = vst [vmem:[#allocation126_spill] sm:$0xff] %v7383_v3  ;;  %3220 = vmatpush2.msra.mxu1 %v3219_v18  ;;  %v3266_v10 = vsub.f32 %v7319_v7, %v9372_v52  ;;  %v3272_v36 = vsub.f32 %v7335_v48, %v9373_v42  ;;  %2911 = vmatpush2.msra.mxu0 %v7278_v53  ;;  %v3255_v20 = vand.u32 4294901760, %v3254_v0  ;;  %v9374_v62 = vand.u32 4294901760, %v7322_v13 }
 0x203   :  { %3226 = vmatprep.subr.mxu1 %v3225_v21  ;;  %v7407_v49 = vsub.f32 %v141_v57, %v7370_v5  ;;  %2913 = vmatprep.subr.mxu0 %v7312_v50  ;;  %v3261_v63 = vand.u32 4294901760, %v3260_v35  ;;  %v7411_v42 = vsub.f32 %v140_v17, %v7383_v3  ;;  %v9376_v18 = vand.u32 4294901760, %v7350_v39 }
 0x204   :  { %3232 = vmatpush2.msra.mxu1 %v3231_v51  ;;  %v3278_v52 = vsub.f32 %v7322_v13, %v9374_v62  ;;  %2915 = vmatpush2.msra.mxu0 %v7303_v47  ;;  %v3267_v62 = vand.u32 4294901760, %v3266_v10  ;;  %v8378_v57 = vand.u32 4294901760, %v7391_v40  ;;  %v9377_v35 = vand.u32 4294901760, %v7339_v8 }
 0x205   :  { %3238 = vmatprep.subr.mxu1 %v3237_v1  ;;  %9375 = vst [vmem:[#allocation127_spill] sm:$0xff] %v7411_v42  ;;  %v3284_v51 = vsub.f32 %v7350_v39, %v9376_v18  ;;  %2917 = vmatprep.subr.mxu0 %v7341_v16  ;;  %v3273_v1 = vand.u32 4294901760, %v3272_v36  ;;  %v9378_v0 = vand.u32 4294901760, %v7374_v23  ;;  %v8384_v21 = vand.u32 4294901760, %v7411_v42 }
 0x206   :  { %3244 = vmatpush2.msra.mxu1 %v3243_v60  ;;  %v3290_v17 = vsub.f32 %v7339_v8, %v9377_v35  ;;  %2919 = vmatpush2.msra.mxu0 %v7346_v44  ;;  %v3279_v18 = vand.u32 4294901760, %v3278_v52  ;;  %v8383_v60 = vand.u32 4294901760, %v7407_v49 }
 0x207   :  { %3250 = vmatprep.subr.mxu1 %v3249_v9  ;;  %v3296_v10 = vsub.f32 %v7374_v23, %v9378_v0  ;;  %2921 = vmatprep.subr.mxu0 %v7356_v61  ;;  %v3285_v36 = vand.u32 4294901760, %v3284_v51  ;;  %v9379_v9 = vand.u32 4294901760, %v7378_v27 }
 0x208   :  { %3256 = vmatpush2.msra.mxu1 %v3255_v20  ;;  %2923 = vmatpush2.msra.mxu0 %v7363_v33  ;;  %v3308_v20 = vsub.f32 %v7391_v40, %v8378_v57  ;;  %v3291_v52 = vand.u32 4294901760, %v3290_v17  ;;  %v9382_v17 = vld [vmem:[#allocation68_spill] sm:$0xff] }
 0x209   :  { %3262 = vmatprep.subr.mxu1 %v3261_v63  ;;  %v3302_v35 = vsub.f32 %v7378_v27, %v9379_v9  ;;  %2925 = vmatprep.subr.mxu0 %v7370_v5  ;;  %v9380_v63 = vand.u32 4294901760, %v7395_v4  ;;  %v3297_v0 = vand.u32 4294901760, %v3296_v10  ;;  %v9381_v9 = vld [vmem:[#allocation108_spill] sm:$0xff]  ;;  %v9383_v5 = vld [vmem:[#allocation109_spill] sm:$0xff] }
 0x20a   :  { %3268 = vmatpush2.msra.mxu1 %v3267_v62  ;;  %2927 = vmatpush2.msra.mxu0 %v7383_v3  ;;  %v3320_v62 = vsub.f32 %v7407_v49, %v8383_v60  ;;  %v9385_v3 = vld [vmem:[#allocation39_spill] sm:$0xff] }
 0x20b   :  { %3274 = vmatprep.subr.mxu1 %v3273_v1  ;;  %v3314_v51 = vsub.f32 %v7395_v4, %v9380_v63  ;;  %2933 = vmatprep.mubr.f32.mxu0 %v9381_v9  ;;  %v3303_v57 = vand.u32 4294901760, %v3302_v35  ;;  %v3326_v1 = vsub.f32 %v7411_v42, %v8384_v21  ;;  %v3309_v63 = vand.u32 4294901760, %v3308_v20  ;;  %v9387_v9 = vld [vmem:[#allocation70_spill] sm:$0xff]  ;;  %v9388_v21 = vld [vmem:[#allocation92_spill] sm:$0xff] }
 0x20c   :  { %3280 = vmatpush2.msra.mxu1 %v3279_v18  ;;  %3340 = vmatprep.subr.mxu0 %v9382_v17  ;;  %v9384_v18 = vld [vmem:[#allocation66_spill] sm:$0xff]  ;;  %v3321_v60 = vand.u32 4294901760, %v3320_v62  ;;  %v9390_v20 = vld [vmem:[#allocation20_spill] sm:$0xff] }
 0x20d   :  { %3286 = vmatprep.subr.mxu1 %v3285_v36  ;;  %2939 = vmatmul.mubr.f32.vlgmr.msra.gmra.mxu0 %v9383_v5  ;;  %v3315_v10 = vand.u32 4294901760, %v3314_v51  ;;  %v9386_v36 = vld [vmem:[#allocation90_spill] sm:$0xff]  ;;  %v3327_v35 = vand.u32 4294901760, %v3326_v1  ;;  %v9389_v5 = vld [vmem:[#allocation41_spill] sm:$0xff]  ;;  %v9396_v62 = vld [vmem:[#allocation60_spill] sm:$0xff] }
 0x20e   :  { %3292 = vmatpush2.msra.mxu1 %v3291_v52  ;;  %3343 = vmatpush1.msra.mxu0 %v9384_v18  ;;  %v9392_v52 = vld [vmem:[#allocation57_spill] sm:$0xff]  ;;  %v9394_v51 = vld [vmem:[#allocation34_spill] sm:$0xff] }
 0x20f   :  { %3298 = vmatprep.subr.mxu1 %v3297_v0  ;;  %3346 = vmatprep.subr.mxu0 %v9385_v3  ;;  %v9395_v0 = vld [vmem:[#allocation96_spill] sm:$0xff]  ;;  %v9397_v1 = vld [vmem:[#allocation85_spill] sm:$0xff] }
 0x210   :  { %3304 = vmatpush2.msra.mxu1 %v3303_v57  ;;  %3349 = vmatpush1.msra.mxu0 %v9386_v36  ;;  %v9391_v57 = vld [vmem:[#allocation49_spill] sm:$0xff] }
 0x211   :  { %3310 = vmatprep.subr.mxu1 %v3309_v63  ;;  %3352 = vmatprep.subr.mxu0 %v9387_v9  ;;  %v9398_v63 = vld [vmem:[#allocation78_spill] sm:$0xff] }
 0x212   :  { %3316 = vmatpush2.msra.mxu1 %v3315_v10  ;;  %3355 = vmatpush1.msra.mxu0 %v9388_v21  ;;  %v9399_v10 = vld [vmem:[#allocation110_spill] sm:$0xff] }
 0x213   :  { %3322 = vmatprep.subr.mxu1 %v3321_v60  ;;  %3358 = vmatprep.subr.mxu0 %v9389_v5  ;;  %v9393_v60 = vld [vmem:[#allocation52_spill] sm:$0xff] }
 0x214   :  { %3328 = vmatpush2.msra.mxu1 %v3327_v35  ;;  %3361 = vmatpush1.msra.mxu0 %v9390_v20  ;;  %v9400_v35 = vld [vmem:[#allocation54_spill] sm:$0xff] }
 0x215   :  { %3332 = vmatmul.mubr.f32.vlgmr.msra.gmra.mxu1 %v9218_v6  ;;  %3364 = vmatprep.subr.mxu0 %v9391_v57  ;;  %v9401_v6 = vld [vmem:[#allocation82_spill] sm:$0xff] }
 0x216   :  { %3542 = vmatprep.subr.mxu1 %v6514_v43  ;;  %3367 = vmatpush1.msra.mxu0 %v9392_v52 }
 0x217   :  { %3544 = vmatpush1.msra.mxu1 %v6519_v30  ;;  %3370 = vmatprep.subr.mxu0 %v6685_v22 }
 0x218   :  { %3546 = vmatprep.subr.mxu1 %v9393_v60  ;;  %3373 = vmatpush1.msra.mxu0 %v9394_v51 }
 0x219   :  { %3548 = vmatpush1.msra.mxu1 %v6526_v56  ;;  %3376 = vmatprep.subr.mxu0 %v6710_v24 }
 0x21a   :  { %3550 = vmatprep.subr.mxu1 %v6528_v11  ;;  %3379 = vmatpush1.msra.mxu0 %v6702_v38  ;;  %v9403_v11 = vld [vmem:[#allocation29_spill] sm:$0xff] }
 0x21b   :  { %3552 = vmatpush1.msra.mxu1 %v6536_v25  ;;  %3382 = vmatprep.subr.mxu0 %v9395_v0  ;;  %v9404_v38 = vld [vmem:[#allocation65_spill] sm:$0xff]  ;;  %v9405_v25 = vld [vmem:[#allocation11_spill] sm:$0xff] }
 0x21c   :  { %3554 = vmatprep.subr.mxu1 %v9396_v62  ;;  %3385 = vmatpush1.msra.mxu0 %v9397_v1  ;;  %v9406_v0 = vld [vmem:[#allocation23_spill] sm:$0xff]  ;;  %v9408_v1 = vld [vmem:[#allocation69_spill] sm:$0xff] }
 0x21d   :  { %3556 = vmatpush1.msra.mxu1 %v9398_v63  ;;  %3388 = vmatprep.subr.mxu0 %v9399_v10  ;;  %v9407_v62 = vld [vmem:[#allocation31_spill] sm:$0xff]  ;;  %v9409_v63 = vld [vmem:[#allocation12_spill] sm:$0xff]  ;;  %v9410_v10 = vld [vmem:[#allocation73_spill] sm:$0xff] }
 0x21e   :  { %3558 = vmatprep.subr.mxu1 %v9400_v35  ;;  %3391 = vmatpush1.msra.mxu0 %v9401_v6  ;;  %v9411_v35 = vld [vmem:[#allocation56_spill] sm:$0xff]  ;;  %v9412_v6 = vld [vmem:[#allocation50_spill] sm:$0xff] }
 0x21f   :  { %3560 = vmatpush1.msra.mxu1 %v9402_v41  ;;  %3394 = vmatprep.subr.mxu0 %v9403_v11  ;;  %v9413_v41 = vld [vmem:[#allocation35_spill] sm:$0xff]  ;;  %v9414_v11 = vld [vmem:[#allocation40_spill] sm:$0xff] }
 0x220   :  { %3562 = vmatprep.subr.mxu1 %v9404_v38  ;;  %3397 = vmatpush1.msra.mxu0 %v9405_v25  ;;  %v9415_v25 = vld [vmem:[#allocation95_spill] sm:$0xff] }
 0x221   :  { %3564 = vmatpush1.msra.mxu1 %v9406_v0  ;;  %3400 = vmatprep.subr.mxu0 %v9407_v62  ;;  %v9416_v0 = vld [vmem:[#allocation45_spill] sm:$0xff]  ;;  %v9417_v62 = vld [vmem:[#allocation86_spill] sm:$0xff] }
 0x222   :  { %3566 = vmatprep.subr.mxu1 %v9408_v1  ;;  %3403 = vmatpush1.msra.mxu0 %v9409_v63  ;;  %v9418_v63 = vld [vmem:[#allocation91_spill] sm:$0xff] }
 0x223   :  { %3568 = vmatpush1.msra.mxu1 %v9410_v10  ;;  %3406 = vmatprep.subr.mxu0 %v9411_v35  ;;  %v9419_v10 = vld [vmem:[#allocation21_spill] sm:$0xff]  ;;  %v9420_v35 = vld [vmem:[#allocation98_spill] sm:$0xff] }
 0x224   :  { %3570 = vmatprep.subr.mxu1 %v9412_v6  ;;  %3409 = vmatpush1.msra.mxu0 %v9413_v41  ;;  %v9421_v41 = vld [vmem:[#allocation106_spill] sm:$0xff] }
 0x225   :  { %3572 = vmatpush1.msra.mxu1 %v9414_v11  ;;  %3412 = vmatprep.subr.mxu0 %v6887_v55  ;;  %v9422_v11 = vld [vmem:[#allocation51_spill] sm:$0xff]  ;;  %v9423_v55 = vld [vmem:[#allocation84_spill] sm:$0xff] }
 0x226   :  { %3574 = vmatprep.subr.mxu1 %v9415_v25  ;;  %3415 = vmatpush1.msra.mxu0 %v9416_v0  ;;  %v9424_v0 = vld [vmem:[#allocation88_spill] sm:$0xff] }
 0x227   :  { %3576 = vmatpush1.msra.mxu1 %v9417_v62  ;;  %3418 = vmatprep.subr.mxu0 %v6936_v58  ;;  %v9425_v62 = vld [vmem:[#allocation25_spill] sm:$0xff]  ;;  %v9426_v58 = vld [vmem:[#allocation74_spill] sm:$0xff] }
 0x228   :  { %3578 = vmatprep.subr.mxu1 %v9418_v63  ;;  %3421 = vmatpush1.msra.mxu0 %v9419_v10  ;;  %v9427_v10 = vld [vmem:[#allocation37_spill] sm:$0xff] }
 0x229   :  { %3580 = vmatpush1.msra.mxu1 %v9420_v35  ;;  %3424 = vmatprep.subr.mxu0 %v6951_v15  ;;  %v9428_v35 = vld [vmem:[#allocation30_spill] sm:$0xff]  ;;  %v9429_v15 = vld [vmem:[#allocation13_spill] sm:$0xff] }
 0x22a   :  { %3582 = vmatprep.subr.mxu1 %v9421_v41  ;;  %3427 = vmatpush1.msra.mxu0 %v9422_v11  ;;  %v9430_v11 = vld [vmem:[#allocation33_spill] sm:$0xff] }
 0x22b   :  { %3584 = vmatpush1.msra.mxu1 %v9423_v55  ;;  %3430 = vmatprep.subr.mxu0 %v6991_v46  ;;  %v9431_v55 = vld [vmem:[#allocation36_spill] sm:$0xff]  ;;  %v9432_v46 = vld [vmem:[#allocation17_spill] sm:$0xff] }
 0x22c   :  { %3586 = vmatprep.subr.mxu1 %v9424_v0  ;;  %3433 = vmatpush1.msra.mxu0 %v9425_v62  ;;  %v9433_v62 = vld [vmem:[#allocation43_spill] sm:$0xff] }
 0x22d   :  { %3588 = vmatpush1.msra.mxu1 %v9426_v58  ;;  %3436 = vmatprep.subr.mxu0 %v7015_v31  ;;  %v9434_v31 = vld [vmem:[#allocation62_spill] sm:$0xff] }
 0x22e   :  { %3590 = vmatprep.subr.mxu1 %v9427_v10  ;;  %3439 = vmatpush2.msra.mxu0 %v9428_v35  ;;  %v9435_v35 = vld [vmem:[#allocation72_spill] sm:$0xff] }
 0x22f   :  { %3592 = vmatpush1.msra.mxu1 %v9429_v15  ;;  %3442 = vmatprep.subr.mxu0 %v7064_v34  ;;  %v9436_v15 = vld [vmem:[#allocation46_spill] sm:$0xff]  ;;  %v9437_v34 = vld [vmem:[#allocation47_spill] sm:$0xff] }
 0x230   :  { %3594 = vmatprep.subr.mxu1 %v9430_v11  ;;  %3445 = vmatpush2.msra.mxu0 %v9431_v55  ;;  %v9438_v55 = vld [vmem:[#allocation55_spill] sm:$0xff] }
 0x231   :  { %3596 = vmatpush1.msra.mxu1 %v9432_v46  ;;  %3448 = vmatprep.subr.mxu0 %v7090_v12  ;;  %v9439_v46 = vld [vmem:[#allocation28_spill] sm:$0xff]  ;;  %v9440_v12 = vld [vmem:[#allocation14_spill] sm:$0xff] }
 0x232   :  { %3598 = vmatprep.subr.mxu1 %v9433_v62  ;;  %3451 = vmatpush2.msra.mxu0 %v7060_v19  ;;  %v9441_v62 = vld [vmem:[#allocation32_spill] sm:$0xff]  ;;  %v9442_v19 = vld [vmem:[#allocation59_spill] sm:$0xff] }
 0x233   :  { %3600 = vmatpush1.msra.mxu1 %v9434_v31  ;;  %3454 = vmatprep.subr.mxu0 %v7114_v45  ;;  %v9443_v31 = vld [vmem:[#allocation27_spill] sm:$0xff]  ;;  %v9444_v45 = vld [vmem:[#allocation61_spill] sm:$0xff] }
 0x234   :  { %3602 = vmatprep.subr.mxu1 %v9435_v35  ;;  %3457 = vmatpush2.msra.mxu0 %v9436_v15  ;;  %v9445_v15 = vld [vmem:[#allocation67_spill] sm:$0xff] }
 0x235   :  { %3604 = vmatpush1.msra.mxu1 %v9437_v34  ;;  %3460 = vmatprep.subr.mxu0 %v7129_v32  ;;  %v9446_v34 = vld [vmem:[#allocation107_spill] sm:$0xff] }
 0x236   :  { %3606 = vmatprep.subr.mxu1 %v9438_v55  ;;  %3463 = vmatpush2.msra.mxu0 %v9439_v46  ;;  %v9447_v32 = vld [vmem:[#allocation63_spill] sm:$0xff]  ;;  %v9448_v55 = vld [vmem:[#allocation112_spill] sm:$0xff] }
 0x237   :  { %3608 = vmatpush2.msra.mxu1 %v9440_v12  ;;  %3466 = vmatprep.subr.mxu0 %v9441_v62  ;;  %v9449_v46 = vld [vmem:[#allocation19_spill] sm:$0xff]  ;;  %v9450_v62 = vld [vmem:[#allocation38_spill] sm:$0xff] }
 0x238   :  { %3610 = vmatprep.subr.mxu1 %v9442_v19  ;;  %3469 = vmatpush2.msra.mxu0 %v9443_v31  ;;  %v9451_v19 = vld [vmem:[#allocation114_spill] sm:$0xff]  ;;  %v9452_v31 = vld [vmem:[#allocation44_spill] sm:$0xff] }
 0x239   :  { %3612 = vmatpush2.msra.mxu1 %v9444_v45  ;;  %3472 = vmatprep.subr.mxu0 %v7214_v29  ;;  %v9453_v29 = vld [vmem:[#allocation24_spill] sm:$0xff] }
 0x23a   :  { %3614 = vmatprep.subr.mxu1 %v9445_v15  ;;  %3475 = vmatpush2.msra.mxu0 %v9446_v34  ;;  %v9454_v34 = vld [vmem:[#allocation26_spill] sm:$0xff] }
 0x23b   :  { %3616 = vmatpush2.msra.mxu1 %v9447_v32  ;;  %3478 = vmatprep.subr.mxu0 %v9448_v55  ;;  %v9455_v55 = vld [vmem:[#allocation79_spill] sm:$0xff] }
 0x23c   :  { %3618 = vmatprep.subr.mxu1 %v9449_v46  ;;  %3481 = vmatpush2.msra.mxu0 %v7220_v59  ;;  %v9456_v59 = vld [vmem:[#allocation93_spill] sm:$0xff] }
 0x23d   :  { %3620 = vmatpush2.msra.mxu1 %v9450_v62  ;;  %3484 = vmatprep.subr.mxu0 %v9451_v19  ;;  %v9457_v19 = vld [vmem:[#allocation89_spill] sm:$0xff] }
 0x23e   :  { %3622 = vmatprep.subr.mxu1 %v9452_v31  ;;  %3487 = vmatpush2.msra.mxu0 %v7246_v26  ;;  %v9458_v26 = vld [vmem:[#allocation103_spill] sm:$0xff] }
 0x23f   :  { %3624 = vmatpush2.msra.mxu1 %v9453_v29  ;;  %3490 = vmatprep.subr.mxu0 %v7291_v37  ;;  %v9459_v37 = vld [vmem:[#allocation94_spill] sm:$0xff] }
 0x240   :  { %3626 = vmatprep.subr.mxu1 %v9454_v34  ;;  %3493 = vmatpush2.msra.mxu0 %v7298_v2  ;;  %v9460_v2 = vld [vmem:[#allocation101_spill] sm:$0xff] }
 0x241   :  { %3628 = vmatpush2.msra.mxu1 %v9455_v55  ;;  %3496 = vmatprep.subr.mxu0 %v7315_v28  ;;  %v9461_v28 = vld [vmem:[#allocation111_spill] sm:$0xff] }
 0x242   :  { %3630 = vmatprep.subr.mxu1 %v9456_v59  ;;  %3499 = vmatpush2.msra.mxu0 %v7319_v7 }
 0x243   :  { %3632 = vmatpush2.msra.mxu1 %v9457_v19  ;;  %3502 = vmatprep.subr.mxu0 %v7335_v48  ;;  %v9462_v48 = vld [vmem:[#allocation119_spill] sm:$0xff] }
 0x244   :  { %3634 = vmatprep.subr.mxu1 %v9458_v26  ;;  %3505 = vmatpush2.msra.mxu0 %v7322_v13  ;;  %v9463_v13 = vld [vmem:[#allocation118_spill] sm:$0xff] }
 0x245   :  { %3636 = vmatpush2.msra.mxu1 %v9459_v37  ;;  %3508 = vmatprep.subr.mxu0 %v7350_v39  ;;  %v9464_v39 = vld [vmem:[#allocation121_spill] sm:$0xff] }
 0x246   :  { %3638 = vmatprep.subr.mxu1 %v9460_v2  ;;  %3511 = vmatpush2.msra.mxu0 %v7339_v8 }
 0x247   :  { %3640 = vmatpush2.msra.mxu1 %v9461_v28  ;;  %3514 = vmatprep.subr.mxu0 %v7374_v23  ;;  %v9465_v23 = vld [vmem:[#allocation100_spill] sm:$0xff] }
 0x248   :  { %3642 = vmatprep.subr.mxu1 %v7241_v14  ;;  %3517 = vmatpush2.msra.mxu0 %v7378_v27  ;;  %v9466_v27 = vld [vmem:[#allocation102_spill] sm:$0xff] }
 0x249   :  { %3644 = vmatpush2.msra.mxu1 %v9462_v48  ;;  %3520 = vmatprep.subr.mxu0 %v7391_v40 }
 0x24a   :  { %3646 = vmatprep.subr.mxu1 %v9463_v13  ;;  %3523 = vmatpush2.msra.mxu0 %v7395_v4  ;;  %v9467_v13 = vand.u32 4294901760, %v9382_v17  ;;  %v9476_v17 = vld [vmem:[#allocation104_spill] sm:$0xff] }
 0x24b   :  { %3648 = vmatpush2.msra.mxu1 %v9464_v39  ;;  %3526 = vmatprep.subr.mxu0 %v7407_v49  ;;  %v9468_v39 = vand.u32 4294901760, %v9384_v18  ;;  %v9477_v18 = vand.u32 4294901760, %v9390_v20  ;;  %v9482_v20 = vand.u32 4294901760, %v9394_v51 }
 0x24c   :  { %3650 = vmatprep.subr.mxu1 %v7287_v54  ;;  %3529 = vmatpush2.msra.mxu0 %v7411_v42  ;;  %v9469_v42 = vand.u32 4294901760, %v9385_v3  ;;  %v9474_v3 = vand.u32 4294901760, %v9389_v5  ;;  %v9481_v5 = vand.u32 4294901760, %v6685_v22 }
 0x24d   :  { %3532 = vmatprep.mubr.f32.mxu0 %v9465_v23  ;;  %3652 = vmatpush2.msra.mxu1 %v7278_v53  ;;  %v9470_v23 = vand.u32 4294901760, %v9386_v36  ;;  %v9478_v36 = vld [vmem:[#allocation105_spill] sm:$0xff] }
 0x24e   :  { %3535 = vmatmul.mubr.f32.vlgmr.msra.gmra.mxu0 %v9466_v27  ;;  %3654 = vmatprep.subr.mxu1 %v7312_v50  ;;  %v9471_v27 = vand.u32 4294901760, %v9387_v9  ;;  %v9479_v9 = vand.u32 4294901760, %v9391_v57  ;;  %v9483_v57 = vand.u32 4294901760, %v6710_v24 }
 0x24f   :  { %3685 = vmatprep.subr.mxu0 %v9467_v13  ;;  %3656 = vmatpush2.msra.mxu1 %v7303_v47  ;;  %v9472_v13 = vand.u32 4294901760, %v9388_v21  ;;  %v9480_v21 = vand.u32 4294901760, %v9392_v52 }
 0x250   :  { %3689 = vmatpush1.msra.mxu0 %v9468_v39  ;;  %3658 = vmatprep.subr.mxu1 %v7341_v16  ;;  %v9473_v39 = vld [vmem:[#allocation77_spill] sm:$0xff] }
 0x251   :  { %3693 = vmatprep.subr.mxu0 %v9469_v42  ;;  %3660 = vmatpush2.msra.mxu1 %v7346_v44  ;;  %v9475_v42 = vld [vmem:[#allocation126_spill] sm:$0xff] }
 0x252   :  { %3697 = vmatpush1.msra.mxu0 %v9470_v23  ;;  %3662 = vmatprep.subr.mxu1 %v7356_v61  ;;  %v9484_v23 = vld [vmem:[#allocation48_spill] sm:$0xff] }
 0x253   :  { %3701 = vmatprep.subr.mxu0 %v9471_v27  ;;  %3664 = vmatpush2.msra.mxu1 %v7363_v33  ;;  %v9487_v27 = vld [vmem:[#allocation58_spill] sm:$0xff] }
 0x254   :  { %3705 = vmatpush1.msra.mxu0 %v9472_v13  ;;  %3666 = vmatprep.subr.mxu1 %v9473_v39  ;;  %v9490_v13 = vld [vmem:[#allocation60_spill] sm:$0xff] }
 0x255   :  { %3709 = vmatprep.subr.mxu0 %v9474_v3  ;;  %3668 = vmatpush2.msra.mxu1 %v9475_v42  ;;  %v9493_v3 = vld [vmem:[#allocation78_spill] sm:$0xff] }
 0x256   :  { %3672 = vmatprep.mubr.f32.mxu1 %v9476_v17  ;;  %3713 = vmatpush1.msra.mxu0 %v9477_v18  ;;  %v9496_v17 = vld [vmem:[#allocation54_spill] sm:$0xff] }
 0x257   :  { %3676 = vmatmul.mubr.f32.vlgmr.msra.gmra.mxu1 %v9478_v36  ;;  %3717 = vmatprep.subr.mxu0 %v9479_v9  ;;  %v9497_v18 = vld [vmem:[#allocation82_spill] sm:$0xff]  ;;  %v9499_v9 = vld [vmem:[#allocation15_spill] sm:$0xff] }
 0x258   :  { %3948 = vmatprep.subr.mxu1 %v6514_v43  ;;  %3721 = vmatpush1.msra.mxu0 %v9480_v21  ;;  %v9485_v43 = vld [vmem:[#allocation83_spill] sm:$0xff]  ;;  %v9498_v36 = vand.u32 4294901760, %v9497_v18  ;;  %v9500_v21 = vld [vmem:[#allocation29_spill] sm:$0xff]  ;;  %v9519_v18 = vld [vmem:[#allocation86_spill] sm:$0xff] }
 0x259   :  { %3950 = vmatpush1.msra.mxu1 %v6519_v30  ;;  %3725 = vmatprep.subr.mxu0 %v9481_v5  ;;  %v9486_v52 = vand.u32 4294901760, %v9485_v43  ;;  %v9488_v30 = vld [vmem:[#allocation96_spill] sm:$0xff]  ;;  %v9501_v5 = vand.u32 4294901760, %v9500_v21  ;;  %v9505_v43 = vld [vmem:[#allocation31_spill] sm:$0xff] }
 0x25a   :  { %3952 = vmatprep.subr.mxu1 %v9393_v60  ;;  %3729 = vmatpush1.msra.mxu0 %v9482_v20  ;;  %v9489_v22 = vand.u32 4294901760, %v9488_v30  ;;  %v9491_v60 = vld [vmem:[#allocation85_spill] sm:$0xff]  ;;  %v9502_v20 = vld [vmem:[#allocation11_spill] sm:$0xff] }
 0x25b   :  { %3954 = vmatpush1.msra.mxu1 %v6526_v56  ;;  %3733 = vmatprep.subr.mxu0 %v9483_v57  ;;  %v9492_v51 = vand.u32 4294901760, %v9491_v60  ;;  %v9494_v56 = vld [vmem:[#allocation110_spill] sm:$0xff]  ;;  %v9503_v57 = vand.u32 4294901760, %v9502_v20  ;;  %v9525_v20 = vld [vmem:[#allocation76_spill] sm:$0xff] }
 0x25c   :  { %3956 = vmatprep.subr.mxu1 %v9484_v23  ;;  %3737 = vmatpush1.msra.mxu0 %v9486_v52  ;;  %v9495_v24 = vand.u32 4294901760, %v9494_v56  ;;  %v9504_v23 = vld [vmem:[#allocation23_spill] sm:$0xff]  ;;  %v9506_v52 = vand.u32 4294901760, %v9505_v43  ;;  %v9515_v56 = vld [vmem:[#allocation64_spill] sm:$0xff] }
 0x25d   :  { %3958 = vmatpush1.msra.mxu1 %v9487_v27  ;;  %3741 = vmatprep.subr.mxu0 %v9489_v22  ;;  %v9507_v27 = vld [vmem:[#allocation12_spill] sm:$0xff]  ;;  %v9509_v22 = vld [vmem:[#allocation73_spill] sm:$0xff] }
 0x25e   :  { %3960 = vmatprep.subr.mxu1 %v9490_v13  ;;  %3745 = vmatpush1.msra.mxu0 %v9492_v51  ;;  %v9508_v30 = vand.u32 4294901760, %v9507_v27  ;;  %v9510_v13 = vld [vmem:[#allocation56_spill] sm:$0xff] }
 0x25f   :  { %3962 = vmatpush1.msra.mxu1 %v9493_v3  ;;  %3749 = vmatprep.subr.mxu0 %v9495_v24  ;;  %v9511_v60 = vand.u32 4294901760, %v9510_v13  ;;  %v9514_v3 = vld [vmem:[#allocation40_spill] sm:$0xff]  ;;  %v9516_v24 = vand.u32 4294901760, %v9515_v56 }
 0x260   :  { %3964 = vmatprep.subr.mxu1 %v9496_v17  ;;  %3753 = vmatpush1.msra.mxu0 %v9498_v36  ;;  %v9520_v36 = vld [vmem:[#allocation53_spill] sm:$0xff]  ;;  %v9529_v43 = vld [vmem:[#allocation84_spill] sm:$0xff] }
 0x261   :  { %3966 = vmatpush1.msra.mxu1 %v9499_v9  ;;  %3757 = vmatprep.subr.mxu0 %v9501_v5  ;;  %v9521_v9 = vand.u32 4294901760, %v9520_v36  ;;  %v9524_v5 = vld [vmem:[#allocation98_spill] sm:$0xff] }
 0x262   :  { %3968 = vmatprep.subr.mxu1 %v9404_v38  ;;  %3761 = vmatpush1.msra.mxu0 %v9503_v57  ;;  %v9512_v38 = vld [vmem:[#allocation35_spill] sm:$0xff]  ;;  %v9526_v57 = vand.u32 4294901760, %v9525_v20  ;;  %v9549_v36 = vld [vmem:[#allocation62_spill] sm:$0xff]  ;;  %v9555_v20 = vld [vmem:[#allocation81_spill] sm:$0xff] }
 0x263   :  { %3970 = vmatpush1.msra.mxu1 %v9504_v23  ;;  %3765 = vmatprep.subr.mxu0 %v9506_v52  ;;  %v9513_v51 = vand.u32 4294901760, %v9512_v38  ;;  %v9530_v52 = vld [vmem:[#allocation16_spill] sm:$0xff]  ;;  %v9538_v38 = vld [vmem:[#allocation13_spill] sm:$0xff] }
 0x264   :  { %3972 = vmatprep.subr.mxu1 %v9408_v1  ;;  %3769 = vmatpush1.msra.mxu0 %v9508_v30  ;;  %v9517_v1 = vld [vmem:[#allocation45_spill] sm:$0xff]  ;;  %v9531_v27 = vand.u32 4294901760, %v9530_v52  ;;  %v9560_v52 = vld [vmem:[#allocation32_spill] sm:$0xff] }
 0x265   :  { %3974 = vmatpush1.msra.mxu1 %v9509_v22  ;;  %3773 = vmatprep.subr.mxu0 %v9511_v60  ;;  %v9518_v17 = vand.u32 4294901760, %v9517_v1  ;;  %v9534_v22 = vld [vmem:[#allocation18_spill] sm:$0xff] }
 0x266   :  { %3976 = vmatprep.subr.mxu1 %v9412_v6  ;;  %3777 = vmatpush1.msra.mxu0 %v9513_v51  ;;  %v9522_v6 = vld [vmem:[#allocation21_spill] sm:$0xff]  ;;  %v9535_v13 = vand.u32 4294901760, %v9534_v22  ;;  %v9539_v51 = vld [vmem:[#allocation22_spill] sm:$0xff]  ;;  %v9565_v22 = vld [vmem:[#allocation80_spill] sm:$0xff] }
 0x267   :  { %3978 = vmatpush1.msra.mxu1 %v9514_v3  ;;  %3781 = vmatprep.subr.mxu0 %v9516_v24  ;;  %v9523_v21 = vand.u32 4294901760, %v9522_v6  ;;  %v9540_v3 = vand.u32 4294901760, %v9539_v51  ;;  %v9543_v24 = vld [vmem:[#allocation17_spill] sm:$0xff]  ;;  %v9571_v51 = vld [vmem:[#allocation116_spill] sm:$0xff] }
 0x268   :  { %3980 = vmatprep.subr.mxu1 %v9415_v25  ;;  %3785 = vmatpush1.msra.mxu0 %v9518_v17  ;;  %v9527_v25 = vld [vmem:[#allocation51_spill] sm:$0xff] }
 0x269   :  { %3982 = vmatpush1.msra.mxu1 %v9519_v18  ;;  %3789 = vmatprep.subr.mxu0 %v9521_v9  ;;  %v9528_v23 = vand.u32 4294901760, %v9527_v25  ;;  %v9546_v17 = vld [vmem:[#allocation43_spill] sm:$0xff] }
 0x26a   :  { %3984 = vmatprep.subr.mxu1 %v9418_v63  ;;  %3793 = vmatpush1.msra.mxu0 %v9523_v21  ;;  %v9532_v63 = vld [vmem:[#allocation25_spill] sm:$0xff]  ;;  %v9550_v9 = vld [vmem:[#allocation87_spill] sm:$0xff] }
 0x26b   :  { %3986 = vmatpush1.msra.mxu1 %v9524_v5  ;;  %3797 = vmatprep.subr.mxu0 %v9526_v57  ;;  %v9533_v30 = vand.u32 4294901760, %v9532_v63  ;;  %v9551_v6 = vand.u32 4294901760, %v9550_v9  ;;  %v9554_v5 = vld [vmem:[#allocation47_spill] sm:$0xff]  ;;  %v9556_v57 = vand.u32 4294901760, %v9555_v20  ;;  %v9593_v20 = vld [vmem:[#allocation125_spill] sm:$0xff] }
 0x26c   :  { %3988 = vmatprep.subr.mxu1 %v9421_v41  ;;  %3801 = vmatpush1.msra.mxu0 %v9528_v23  ;;  %v9536_v41 = vld [vmem:[#allocation30_spill] sm:$0xff]  ;;  %v9557_v25 = vld [vmem:[#allocation55_spill] sm:$0xff]  ;;  %v9558_v23 = vld [vmem:[#allocation28_spill] sm:$0xff] }
 0x26d   :  { %3990 = vmatpush1.msra.mxu1 %v9529_v43  ;;  %3805 = vmatprep.subr.mxu0 %v9531_v27  ;;  %v9537_v60 = vand.u32 4294901760, %v9536_v41  ;;  %v9559_v43 = vand.u32 4294901760, %v9558_v23  ;;  %v9561_v27 = vand.u32 4294901760, %v9560_v52  ;;  %v9562_v63 = vld [vmem:[#allocation59_spill] sm:$0xff]  ;;  %v9599_v52 = vand.u32 4294901760, %v7407_v49 }
 0x26e   :  { %3992 = vmatprep.subr.mxu1 %v9424_v0  ;;  %3809 = vmatpush1.msra.mxu0 %v9533_v30  ;;  %v9541_v0 = vld [vmem:[#allocation36_spill] sm:$0xff]  ;;  %v9567_v41 = vld [vmem:[#allocation107_spill] sm:$0xff] }
 0x26f   :  { %3994 = vmatpush1.msra.mxu1 %v9426_v58  ;;  %3813 = vmatprep.subr.mxu0 %v9535_v13  ;;  %v9542_v56 = vand.u32 4294901760, %v9541_v0  ;;  %v9544_v58 = vld [vmem:[#allocation75_spill] sm:$0xff]  ;;  %v9566_v13 = vand.u32 4294901760, %v9565_v22 }
 0x270   :  { %3996 = vmatprep.subr.mxu1 %v9427_v10  ;;  %3817 = vmatpush2.msra.mxu0 %v9537_v60  ;;  %v9545_v1 = vand.u32 4294901760, %v9544_v58  ;;  %v9547_v10 = vld [vmem:[#allocation71_spill] sm:$0xff]  ;;  %v9568_v60 = vand.u32 4294901760, %v9567_v41 }
 0x271   :  { %3998 = vmatpush1.msra.mxu1 %v9538_v38  ;;  %3821 = vmatprep.subr.mxu0 %v9540_v3  ;;  %v9548_v18 = vand.u32 4294901760, %v9547_v10  ;;  %v9572_v3 = vand.u32 4294901760, %v9571_v51  ;;  %v2049_v10 = vpop.f32.mrf.mxu1  ;;  %v9586_v9 = vld [vmem:[#allocation115_spill] sm:$0xff] }
 0x272   :  { %4000 = vmatprep.subr.mxu1 %v9430_v11  ;;  %3825 = vmatpush2.msra.mxu0 %v9542_v56  ;;  %v9552_v11 = vld [vmem:[#allocation46_spill] sm:$0xff]  ;;  %v9575_v56 = vld [vmem:[#allocation117_spill] sm:$0xff] }
 0x273   :  { %4002 = vmatpush1.msra.mxu1 %v9543_v24  ;;  %3829 = vmatprep.subr.mxu0 %v9545_v1  ;;  %v9553_v21 = vand.u32 4294901760, %v9552_v11  ;;  %v9576_v24 = vand.u32 4294901760, %v9575_v56  ;;  %v9590_v11 = vand.u32 4294901760, %v7339_v8  ;;  %v9596_v8 = vld [vmem:[#allocation118_spill] sm:$0xff] }
 0x274   :  { %4004 = vmatprep.subr.mxu1 %v9546_v17  ;;  %3833 = vmatpush2.msra.mxu0 %v9548_v18  ;;  %v9583_v18 = vand.u32 4294901760, %v7319_v7  ;;  %v2051_v7 = vpop.f32.mrf.mxu1 }
 0x275   :  { %4006 = vmatpush1.msra.mxu1 %v9549_v36  ;;  %3837 = vmatprep.subr.mxu0 %v9551_v6  ;;  %v9588_v6 = vld [vmem:[#allocation124_spill] sm:$0xff] }
 0x276   :  { %4008 = vmatprep.subr.mxu1 %v9435_v35  ;;  %3841 = vmatpush2.msra.mxu0 %v9553_v21  ;;  %v9563_v35 = vld [vmem:[#allocation27_spill] sm:$0xff] }
 0x277   :  { %4010 = vmatpush1.msra.mxu1 %v9554_v5  ;;  %3845 = vmatprep.subr.mxu0 %v9556_v57  ;;  %v9564_v30 = vand.u32 4294901760, %v9563_v35  ;;  %v2393_v5 = vpop.f32.mrf.mxu1 }
 0x278   :  { %4012 = vmatprep.subr.mxu1 %v9557_v25  ;;  %3849 = vmatpush2.msra.mxu0 %v9559_v43  ;;  %v9598_v25 = vld [vmem:[#allocation121_spill] sm:$0xff] }
 0x279   :  { %4014 = vmatpush2.msra.mxu1 %v9440_v12  ;;  %3853 = vmatprep.subr.mxu0 %v9561_v27  ;;  %v9569_v12 = vld [vmem:[#allocation112_spill] sm:$0xff]  ;;  %v9600_v27 = vld [vmem:[#allocation127_spill] sm:$0xff] }
 0x27a   :  { %4016 = vmatprep.subr.mxu1 %v9562_v63  ;;  %3857 = vmatpush2.msra.mxu0 %v9564_v30  ;;  %v9570_v38 = vand.u32 4294901760, %v9569_v12  ;;  %v9601_v63 = vand.u32 4294901760, %v9600_v27 }
 0x27b   :  { %4018 = vmatpush2.msra.mxu1 %v9444_v45  ;;  %3861 = vmatprep.subr.mxu0 %v9566_v13  ;;  %v9573_v45 = vld [vmem:[#allocation114_spill] sm:$0xff] }
 0x27c   :  { %4020 = vmatprep.subr.mxu1 %v9445_v15  ;;  %3865 = vmatpush2.msra.mxu0 %v9568_v60  ;;  %v9574_v0 = vand.u32 4294901760, %v9573_v45  ;;  %v1656_v15 = vpop.f32.mrf.mxu0 }
 0x27d   :  { %4022 = vmatpush2.msra.mxu1 %v9447_v32  ;;  %3869 = vmatprep.subr.mxu0 %v9570_v38  ;;  %v9577_v32 = vld [vmem:[#allocation120_spill] sm:$0xff]  ;;  %v2050_v57 = vadd.f32 %v2049_v10, %v1656_v15 }
 0x27e   :  { %4024 = vmatprep.subr.mxu1 %v9449_v46  ;;  %3873 = vmatpush2.msra.mxu0 %v9572_v3  ;;  %v9578_v58 = vand.u32 4294901760, %v9577_v32  ;;  %v9579_v46 = vld [vmem:[#allocation123_spill] sm:$0xff] }
 0x27f   :  { %4026 = vmatpush2.msra.mxu1 %v9450_v62  ;;  %3877 = vmatprep.subr.mxu0 %v9574_v0  ;;  %v9580_v1 = vand.u32 4294901760, %v9579_v46  ;;  %v9581_v62 = vld [vmem:[#allocation122_spill] sm:$0xff] }
 0x280   :  { %4028 = vmatprep.subr.mxu1 %v9452_v31  ;;  %3881 = vmatpush2.msra.mxu0 %v9576_v24  ;;  %v9582_v17 = vand.u32 4294901760, %v9581_v62  ;;  %v1658_v31 = vpop.f32.mrf.mxu0 }
 0x281   :  { %4030 = vmatpush2.msra.mxu1 %v9453_v29  ;;  %3885 = vmatprep.subr.mxu0 %v9578_v58  ;;  %v9584_v29 = vld [vmem:[#allocation113_spill] sm:$0xff] }
 0x282   :  { %4032 = vmatprep.subr.mxu1 %v9454_v34  ;;  %3889 = vmatpush2.msra.mxu0 %v9580_v1  ;;  %v9585_v36 = vand.u32 4294901760, %v9584_v29  ;;  %v2252_v34 = vpop.f32.mrf.mxu0 }
 0x283   :  { %4034 = vmatpush2.msra.mxu1 %v9455_v55  ;;  %3893 = vmatprep.subr.mxu0 %v9582_v17  ;;  %v9587_v55 = vand.u32 4294901760, %v9586_v9  ;;  %v2253_v43 = vadd.f32 %v2252_v34, %v2050_v57 }
 0x284   :  { %4036 = vmatprep.subr.mxu1 %v9456_v59  ;;  %3897 = vmatpush2.msra.mxu0 %v9583_v18  ;;  %v9589_v59 = vand.u32 4294901760, %v9588_v6 }
 0x285   :  { %4038 = vmatpush2.msra.mxu1 %v9457_v19  ;;  %3901 = vmatprep.subr.mxu0 %v9585_v36  ;;  %v9591_v19 = vld [vmem:[#allocation42_spill] sm:$0xff]  ;;  %v2394_v30 = vadd.f32 %v2393_v5, %v2253_v43 }
 0x286   :  { %4040 = vmatprep.subr.mxu1 %v9458_v26  ;;  %3905 = vmatpush2.msra.mxu0 %v9587_v55  ;;  %v9592_v21 = vand.u32 4294901760, %v9591_v19  ;;  %v2254_v26 = vpop.f32.mrf.mxu0 }
 0x287   :  { %4042 = vmatpush2.msra.mxu1 %v9459_v37  ;;  %3909 = vmatprep.subr.mxu0 %v9589_v59  ;;  %v9594_v37 = vand.u32 4294901760, %v9593_v20 }
 0x288   :  { %4044 = vmatprep.subr.mxu1 %v9460_v2  ;;  %3913 = vmatpush2.msra.mxu0 %v9590_v11  ;;  %v9595_v2 = vand.u32 4294901760, %v7391_v40  ;;  %v2658_v23 = vpop.f32.mrf.mxu0  ;;  %v9602_v40 = vld [vmem:[#allocation97_spill] sm:$0xff] }
 0x289   :  { %4046 = vmatpush2.msra.mxu1 %v9461_v28  ;;  %3917 = vmatprep.subr.mxu0 %v9592_v21  ;;  %v9597_v28 = vand.u32 4294901760, %v7395_v4  ;;  %v9603_v4 = vld [vmem:[#allocation99_spill] sm:$0xff]  ;;  %v2659_v13 = vadd.f32 %v2658_v23, %v2394_v30 }
 0x28a   :  { %4048 = vmatprep.subr.mxu1 %v7241_v14  ;;  %3921 = vmatpush2.msra.mxu0 %v9594_v37  ;;  %v2052_v14 = vadd.f32 %v2051_v7, %v1658_v31  ;;  %v2660_v22 = vpop.f32.mrf.mxu0 }
 0x28b   :  { %4050 = vmatpush2.msra.mxu1 %v9462_v48  ;;  %3925 = vmatprep.subr.mxu0 %v9595_v2  ;;  %v2395_v48 = vpop.f32.mrf.mxu1 }
 0x28c   :  { %4052 = vmatprep.subr.mxu1 %v9596_v8  ;;  %3929 = vmatpush2.msra.mxu0 %v9597_v28  ;;  %v2255_v35 = vadd.f32 %v2254_v26, %v2052_v14 }
 0x28d   :  { %4054 = vmatpush2.msra.mxu1 %v9598_v25  ;;  %3933 = vmatprep.subr.mxu0 %v9599_v52 }
 0x28e   :  { %4056 = vmatprep.subr.mxu1 %v7287_v54  ;;  %3937 = vmatpush2.msra.mxu0 %v9601_v63  ;;  %v2396_v49 = vadd.f32 %v2395_v48, %v2255_v35  ;;  %v2795_v54 = vpop.f32.mrf.mxu1 }
 0x28f   :  { %3939 = vmatprep.mubr.f32.mxu0 %v9602_v40  ;;  %4058 = vmatpush2.msra.mxu1 %v7278_v53  ;;  %v2796_v60 = vadd.f32 %v2795_v54, %v2659_v13 }
 0x290   :  { %3941 = vmatmul.mubr.f32.vlgmr.msra.gmra.mxu0 %v9603_v4  ;;  %4060 = vmatprep.subr.mxu1 %v7312_v50  ;;  %v2661_v41 = vadd.f32 %v2660_v22, %v2396_v49  ;;  %v2797_v53 = vpop.f32.mrf.mxu1 }
 0x291   :  { %4076 = vmatprep.mubr.f32.mxu1 %v9602_v40  ;;  %4062 = vmatpush2.msra.mxu1 %v7303_v47  ;;  %4086 = vst [vmem:[#allocation7 + $0x10] sm:$0xff] %v2796_v60 }
 0x292   :  { %4064 = vmatprep.subr.mxu1 %v7341_v16  ;;  %v2798_v50 = vadd.f32 %v2797_v53, %v2661_v41 }
 0x293   :  { %4066 = vmatpush2.msra.mxu1 %v7346_v44 }
 0x294   :  { %4068 = vmatprep.subr.mxu1 %v7356_v61  ;;  %4087 = vst [vmem:[#allocation7 + $0x18] sm:$0xff] %v2798_v50 }
 0x295   :  { %4070 = vmatpush2.msra.mxu1 %v7363_v33 }
 0x296   :  { %4072 = vmatprep.subr.mxu1 %v9473_v39 }
 0x297   :  { %4074 = vmatpush2.msra.mxu1 %v9475_v42 }
 0x298   :  { %4078 = vmatmul.mubr.f32.vlgmr.msra.gmra.mxu1 %v9603_v4 }
 0x2cd   :  { %v2940_v47 = vpop.f32.mrf.mxu0 }
 0x2cf   :  { %v2942_v16 = vpop.f32.mrf.mxu0 }
 0x2d5   :  { %v3333_v12 = vpop.f32.mrf.mxu1 }
 0x2d6   :  { %v3334_v61 = vadd.f32 %v3333_v12, %v2940_v47 }
 0x2d7   :  { %v3335_v44 = vpop.f32.mrf.mxu1 }
 0x2d8   :  { %v3336_v0 = vadd.f32 %v3335_v44, %v2942_v16 }
 0x30e   :  { %v3536_v38 = vpop.f32.mrf.mxu0 }
 0x30f   :  { %v3537_v33 = vadd.f32 %v3536_v38, %v3334_v61 }
 0x310   :  { %v3538_v51 = vpop.f32.mrf.mxu0 }
 0x311   :  { %v3539_v56 = vadd.f32 %v3538_v51, %v3336_v0 }
 0x317   :  { %v3677_v3 = vpop.f32.mrf.mxu1 }
 0x318   :  { %v3678_v24 = vadd.f32 %v3677_v3, %v3537_v33 }
 0x319   :  { %v3679_v15 = vpop.f32.mrf.mxu1 }
 0x31a   :  { %v3680_v32 = vadd.f32 %v3679_v15, %v3539_v56 }
 0x350   :  { %v3942_v45 = vpop.f32.mrf.mxu0 }
 0x351   :  { %v3943_v42 = vadd.f32 %v3942_v45, %v3678_v24 }
 0x352   :  { %v3944_v39 = vpop.f32.mrf.mxu0 }
 0x353   :  { %v3945_v46 = vadd.f32 %v3944_v39, %v3680_v32 }
 0x358   :  { %v4079_v58 = vpop.f32.mrf.mxu1 }
 0x359   :  { %v4080_v1 = vadd.f32 %v4079_v58, %v3943_v42 }
 0x35a   :  { %v4081_v62 = vpop.f32.mrf.mxu1 }
 0x35b   :  { %4088 = vst [vmem:[#allocation7 + $0x20] sm:$0xff] %v4080_v1  ;;  %v4082_v17 = vadd.f32 %v4081_v62, %v3945_v46 }
 0x35d   :  { %4089 = vst [vmem:[#allocation7 + $0x28] sm:$0xff] %v4082_v17 }
 0x35e   :  { %4162 = shalt.err (!%p4159_p0)
}
 0x35f   :  { %4099 = dma.vmem_to_hbm [thread:$0]  %s4097_s1, 768, %s7786_s2, [#allocation4]  }
 0x360   :  { %4175 = dma.done.wait [#allocation4], 768  }
 0x361   :  { %4176 = vsyncadd [#allocation4], 4294966528 }
 0x362   :  { %4103 = vsyncpa [#allocation3], 1 }
 0x363   :  { %4104 = vsyncpa [#allocation6], 1 }
 0x364   :  { %4105 = vsyncpa [#allocation4], 1 }

</bundles_post_ra>
